<compile_context>
chip_gen: v5e
topology: v5e:2x2
jax: 0.10.0
libtpu: 0.0.40
codegen_flags: <defaults>
</compile_context>

<pallas_src>
import functools

import jax
import jax.numpy as jnp
from jax.experimental import pallas as pl
from jax.experimental.pallas import tpu as pltpu

HIDDEN = 768    # fixed by the module (torch.nn.Linear(n_inputs * 768, 768))
_TM_MAX = 512   # row-tile cap: ~85% HBM-roofline plateau, VMEM-safe on v5e/v6e/v7x


def _cdiv(a, b):
    return -(-a // b)


def _round_up(x, mult):
    return ((x + mult - 1) // mult) * mult


@functools.lru_cache(maxsize=1)
def _num_tensorcores_per_chip():
    """2 on v7x (two TCs share a chip), 1 on v5e/v6e.  Defensive: default to 1."""
    try:
        kind = jax.devices()[0].device_kind.lower()
    except Exception:
        return 1
    return 2 if ("v7" in kind or "7x" in kind) else 1


@functools.lru_cache(maxsize=1)
def _vmem_limit_bytes():
    """Explicit scoped-VMEM budget: min(96 MiB, 3/4 of physical).
    v5e/v6e (128 MiB physical) -> 96 MiB; v7x (64 MiB per TC) -> 48 MiB.
    Falls back to 48 MiB (safe on every generation) if the query fails."""
    try:
        cap = int(pltpu.get_tpu_info().vmem_capacity_bytes)
        return min(96 * 1024 * 1024, (cap * 3) // 4)
    except Exception:
        return 48 * 1024 * 1024


def _weighted_avg_kernel(x1_ref, x2_ref, w1_ref, w2_ref, b_ref, o_ref):
    x1 = x1_ref[...]
    x2 = x2_ref[...]
    mxu_dtype = w1_ref.dtype  # bf16 by default; f32 if strict parity requested
    # Linear over the (virtual) concatenated input: two MXU matmuls, f32 accum.
    z = jnp.dot(x1.astype(mxu_dtype), w1_ref[...],
                preferred_element_type=jnp.float32)
    z = z + jnp.dot(x2.astype(mxu_dtype), w2_ref[...],
                    preferred_element_type=jnp.float32)
    z = z + b_ref[...]                      # (1, 768) broadcasts over rows, f32
    alpha = jax.nn.sigmoid(z)               # EUP slot; hides under MXU pushes
    x1f = x1.astype(jnp.float32)            # no-op for f32 activations
    x2f = x2.astype(jnp.float32)
    # alpha*x1 + (1-alpha)*x2  ==  x2 + alpha*(x1 - x2)   (saves one VPU mul)
    o_ref[...] = (x2f + alpha * (x1f - x2f)).astype(o_ref.dtype)


def prepare_params(w_t, b, mxu_dtype=jnp.bfloat16):
    """One-time parameter prep (hoisted out of the hot path).

    w_t: (1536, 768) = torch Linear weight transposed to (in, out).
    b:   (768,) bias.
    Returns (w1, w2, b2): split weights in the MXU operand dtype and an f32
    (1, 768) bias.  The concat is never materialized: z = x1@W1 + x2@W2 + b.
    """
    assert w_t.shape == (2 * HIDDEN, HIDDEN) and b.shape == (HIDDEN,)
    w1 = jnp.asarray(w_t[:HIDDEN], dtype=mxu_dtype)   # multiplies input1
    w2 = jnp.asarray(w_t[HIDDEN:], dtype=mxu_dtype)   # multiplies input2
    b2 = jnp.asarray(b, dtype=jnp.float32).reshape(1, HIDDEN)
    return w1, w2, b2


def _pick_tm(m, act_dtype, ncores):
    """Row tile: sublane-aligned, as large as possible, TC-count aware."""
    sub = 8 if jnp.dtype(act_dtype).itemsize >= 4 else 16  # f32 -> 8, bf16 -> 16
    m = max(int(m), 1)
    if ncores <= 1:
        # Single TensorCore (v5e/v6e): one big step if it fits, else the cap.
        return min(_round_up(m, sub), _TM_MAX)
    # v7x: keep the number of grid steps even so the "parallel" axis splits
    # evenly across the two TensorCores.
    if _round_up(m, sub) <= _TM_MAX:
        return max(sub, min(_round_up(_cdiv(m, 2), sub), _TM_MAX))
    tm = _TM_MAX
    steps = _cdiv(m, tm)
    if steps % 2 == 1:
        tm = _round_up(_cdiv(m, steps + 1), sub)
    return max(sub, min(tm, _TM_MAX))


def linear_weighted_avg(input1, input2, w1, w2, b2, *, tm=None):
    """input1/input2: (..., 768); (w1, w2, b2) from prepare_params()."""
    orig_shape = input1.shape
    assert orig_shape[-1] == HIDDEN and input2.shape == orig_shape
    assert w1.shape == (HIDDEN, HIDDEN) and w2.shape == (HIDDEN, HIDDEN)

    x1 = input1.reshape(-1, HIDDEN)         # metadata-only reshape, no HBM copy
    x2 = input2.reshape(-1, HIDDEN)
    m = x1.shape[0]
    if tm is None:
        tm = _pick_tm(m, input1.dtype, _num_tensorcores_per_chip())
    grid = (_cdiv(m, tm),)   # partial last block handled by Pallas (no pad)

    x_spec = pl.BlockSpec((tm, HIDDEN), lambda i: (i, 0))
    # Weights/bias have constant block indices -> DMA'd once, kept resident.
    w_spec = pl.BlockSpec((HIDDEN, HIDDEN), lambda i: (0, 0))
    b_spec = pl.BlockSpec((1, HIDDEN), lambda i: (0, 0))

    out = pl.pallas_call(
        _weighted_avg_kernel,
        out_shape=jax.ShapeDtypeStruct((m, HIDDEN), input1.dtype),
        grid_spec=pltpu.PrefetchScalarGridSpec(
            num_scalar_prefetch=0,
            grid=grid,
            in_specs=[x_spec, x_spec, w_spec, w_spec, b_spec],
            out_specs=pl.BlockSpec((tm, HIDDEN), lambda i: (i, 0)),
        ),
        compiler_params=pltpu.CompilerParams(
            dimension_semantics=("parallel",),
            vmem_limit_bytes=_vmem_limit_bytes(),
        ),
    )(x1, x2, w1, w2, b2)
    return out.reshape(orig_shape)


def _reference(input1, input2, w_t, b):
    x = jnp.concatenate([input1, input2], axis=-1)
    alpha = jax.nn.sigmoid(x @ w_t + b)
    return alpha * input1 + (1.0 - alpha) * input2


if __name__ == "__main__":
    key = jax.random.PRNGKey(0)
    k1, k2, kw, kb = jax.random.split(key, 4)

    batch, seq = 2, 8
    n_inputs = 2

    input1 = jax.random.normal(k1, (batch, seq, HIDDEN), dtype=jnp.float32)
    input2 = jax.random.normal(k2, (batch, seq, HIDDEN), dtype=jnp.float32)

    # Deterministic "Linear(n_inputs*768, 768)" params, already (in, out) layout.
    bound = 1.0 / jnp.sqrt(n_inputs * HIDDEN)
    w_t = jax.random.uniform(kw, (n_inputs * HIDDEN, HIDDEN),
                             minval=-bound, maxval=bound, dtype=jnp.float32)
    b = jax.random.uniform(kb, (HIDDEN,), minval=-bound, maxval=bound,
                           dtype=jnp.float32)

    ref = _reference(input1, input2, w_t, b)

    # --- default (fast) path: bf16 MXU operands, f32 accumulation + f32 mix ---
    w1_bf, w2_bf, b2 = prepare_params(w_t, b, mxu_dtype=jnp.bfloat16)
    out_bf = jax.block_until_ready(
        linear_weighted_avg(input1, input2, w1_bf, w2_bf, b2))
    assert out_bf.shape == (batch, seq, HIDDEN)
    assert jnp.allclose(out_bf, ref, atol=3e-2, rtol=3e-2), \
        float(jnp.max(jnp.abs(out_bf - ref)))

    # --- strict f32-parity path (opt-in) ---
    w1_f, w2_f, b2_f = prepare_params(w_t, b, mxu_dtype=jnp.float32)
    out_f = jax.block_until_ready(
        linear_weighted_avg(input1, input2, w1_f, w2_f, b2_f))
    assert jnp.allclose(out_f, ref, atol=1e-4, rtol=1e-4), \
        float(jnp.max(jnp.abs(out_f - ref)))

    # --- uneven row count: exercises the pad-free partial last block ---
    in1_u, in2_u = input1[:, :7], input2[:, :7]
    out_u = jax.block_until_ready(
        linear_weighted_avg(in1_u, in2_u, w1_bf, w2_bf, b2))
    ref_u = _reference(in1_u, in2_u, w_t, b)
    assert jnp.allclose(out_u, ref_u, atol=3e-2, rtol=3e-2), \
        float(jnp.max(jnp.abs(out_u - ref_u)))

    print("KERNEL_OK")
</pallas_src>

<mosaic_0001>
module attributes {stable_mosaic.version = 11 : i64} {
  func.func @_weighted_avg_kernel(%arg0: i32, %arg1: memref<16x768xf32, #tpu.memory_space<vmem>>, %arg2: memref<16x768xf32, #tpu.memory_space<vmem>>, %arg3: memref<768x768xbf16, #tpu.memory_space<vmem>>, %arg4: memref<768x768xbf16, #tpu.memory_space<vmem>>, %arg5: memref<1x768xf32, #tpu.memory_space<vmem>>, %arg6: memref<16x768xf32, #tpu.memory_space<vmem>>) attributes {dimension_semantics = [#tpu.dimension_semantics<parallel>], iteration_bounds = array<i64: 1>, scalar_prefetch = 0 : i64, scratch_operands = 0 : i64, tpu.core_type = #tpu.core_type<tc>, window_params = [{transform_indices = @transform_0, window_bounds = array<i64: 16, 768>}, {transform_indices = @transform_1, window_bounds = array<i64: 16, 768>}, {pipeline_mode = #tpu.pipeline_mode<synchronous>, transform_indices = @transform_2, window_bounds = array<i64: 768, 768>}, {pipeline_mode = #tpu.pipeline_mode<synchronous>, transform_indices = @transform_3, window_bounds = array<i64: 768, 768>}, {pipeline_mode = #tpu.pipeline_mode<synchronous>, transform_indices = @transform_4, window_bounds = array<i64: 1, 768>}, {transform_indices = @transform_5, window_bounds = array<i64: 16, 768>}]} {
    %c0 = arith.constant 0 : index
    %c0_0 = arith.constant 0 : index
    %0 = vector.load %arg1[%c0, %c0_0] : memref<16x768xf32, #tpu.memory_space<vmem>>, vector<16x768xf32>
    %c0_1 = arith.constant 0 : index
    %c0_2 = arith.constant 0 : index
    %1 = vector.load %arg2[%c0_1, %c0_2] : memref<16x768xf32, #tpu.memory_space<vmem>>, vector<16x768xf32>
    %2 = arith.truncf %0 : vector<16x768xf32> to vector<16x768xbf16>
    %c0_3 = arith.constant 0 : index
    %c0_4 = arith.constant 0 : index
    %3 = vector.load %arg3[%c0_3, %c0_4] : memref<768x768xbf16, #tpu.memory_space<vmem>>, vector<768x768xbf16>
    %cst = arith.constant dense<0.000000e+00> : vector<16x768xf32>
    %4 = tpu.matmul %2, %3, %cst {dimension_numbers = #tpu.dot_dimension_numbers<[1], [0], [0], [1], [0, 0, 1, 1], [], []>} : vector<16x768xbf16>, vector<768x768xbf16>, vector<16x768xf32> -> vector<16x768xf32>
    %5 = arith.truncf %1 : vector<16x768xf32> to vector<16x768xbf16>
    %c0_5 = arith.constant 0 : index
    %c0_6 = arith.constant 0 : index
    %6 = vector.load %arg4[%c0_5, %c0_6] : memref<768x768xbf16, #tpu.memory_space<vmem>>, vector<768x768xbf16>
    %cst_7 = arith.constant dense<0.000000e+00> : vector<16x768xf32>
    %7 = tpu.matmul %5, %6, %cst_7 {dimension_numbers = #tpu.dot_dimension_numbers<[1], [0], [0], [1], [0, 0, 1, 1], [], []>} : vector<16x768xbf16>, vector<768x768xbf16>, vector<16x768xf32> -> vector<16x768xf32>
    %8 = arith.addf %4, %7 : vector<16x768xf32>
    %c0_8 = arith.constant 0 : index
    %c0_9 = arith.constant 0 : index
    %9 = vector.load %arg5[%c0_8, %c0_9] : memref<1x768xf32, #tpu.memory_space<vmem>>, vector<1x768xf32>
    %10 = vector.broadcast %9 : vector<1x768xf32> to vector<16x768xf32>
    %11 = arith.addf %8, %10 : vector<16x768xf32>
    %12 = arith.negf %11 : vector<16x768xf32>
    %13 = math.exp %12 : vector<16x768xf32>
    %cst_10 = arith.constant 1.000000e+00 : f32
    %14 = vector.broadcast %cst_10 : f32 to vector<16x768xf32>
    %15 = arith.addf %14, %13 : vector<16x768xf32>
    %16 = arith.divf %14, %15 : vector<16x768xf32>
    %17 = arith.subf %0, %1 : vector<16x768xf32>
    %18 = arith.mulf %16, %17 : vector<16x768xf32>
    %19 = arith.addf %1, %18 : vector<16x768xf32>
    %c0_11 = arith.constant 0 : index
    %c0_12 = arith.constant 0 : index
    %20 = vector.load %arg6[%c0_11, %c0_12] : memref<16x768xf32, #tpu.memory_space<vmem>>, vector<16x768xf32>
    tpu.vector_store %arg6[%c0_11, %c0_12], %19 {strides = array<i32>} : memref<16x768xf32, #tpu.memory_space<vmem>>, vector<16x768xf32>,
    return
  }
  func.func @transform_0(%arg0: i32) -> (i32, i32) {
    %c0_i32 = arith.constant 0 : i32
    %c0_i32_0 = arith.constant 0 : i32
    return %arg0, %c0_i32 : i32, i32
  }
  func.func @transform_1(%arg0: i32) -> (i32, i32) {
    %c0_i32 = arith.constant 0 : i32
    %c0_i32_0 = arith.constant 0 : i32
    return %arg0, %c0_i32 : i32, i32
  }
  func.func @transform_2(%arg0: i32) -> (i32, i32) {
    %c0_i32 = arith.constant 0 : i32
    %c0_i32_0 = arith.constant 0 : i32
    %c0_i32_1 = arith.constant 0 : i32
    return %c0_i32, %c0_i32_0 : i32, i32
  }
  func.func @transform_3(%arg0: i32) -> (i32, i32) {
    %c0_i32 = arith.constant 0 : i32
    %c0_i32_0 = arith.constant 0 : i32
    %c0_i32_1 = arith.constant 0 : i32
    return %c0_i32, %c0_i32_0 : i32, i32
  }
  func.func @transform_4(%arg0: i32) -> (i32, i32) {
    %c0_i32 = arith.constant 0 : i32
    %c0_i32_0 = arith.constant 0 : i32
    %c0_i32_1 = arith.constant 0 : i32
    return %c0_i32, %c0_i32_0 : i32, i32
  }
  func.func @transform_5(%arg0: i32) -> (i32, i32) {
    %c0_i32 = arith.constant 0 : i32
    %c0_i32_0 = arith.constant 0 : i32
    return %arg0, %c0_i32 : i32, i32
  }
}

</mosaic_0001>

<bundles_post_ra>
// kernel: tpu_custom_call.1
= control target key start
LH: loop header
LB: loop body
LE: loop exit
PB: predicated region body
PF: predicated region fallthrough
CT: control target
= control target key end

     0   :  { %10 = vsyncpa [#allocation3], 0  ;;  %s8438_s0 = inlined_call_operand.hbm [shape: f32[16,768], index: 0, kind: input, shape index: {}]   ;;  %s8439_s1 = inlined_call_operand.hbm [shape: f32[16,768], index: 1, kind: input, shape index: {}]   ;;  %s8440_s2 = inlined_call_operand.hbm [shape: bf16[768,768], index: 2, kind: input, shape index: {}]   ;;  %s8441_s3 = inlined_call_operand.hbm [shape: bf16[768,768], index: 3, kind: input, shape index: {}]   ;;  %s8442_s4 = inlined_call_operand.hbm [shape: f32[1,768], index: 4, kind: input, shape index: {}]   ;;  %s8443_s5 = inlined_call_operand.hbm [shape: f32[16,768], index: 5, kind: output, shape index: {}]  }
   0x1   :  { %11 = vsyncpa [#allocation6], 0 }
   0x2   :  { %12 = vsyncpa [#allocation9], 0 }
   0x3   :  { %13 = vsyncpa [#allocation4], 0  ;;  %s31_s20 = sshll.u32 %s8439_s1, 4  ;;  %s8047_s21 = smov [#allocation5]   ;;  %s32_s20 = int_to_ptr.hbm [resolvable:$true] %s31_s20 }
   0x4   :  { %s33_s22 = sshll.u32 %s8047_s21, 4  ;;  %s8048_s23 = smov 768   ;;  %s34_s22 = int_to_ptr.vmem [resolvable:$true] %s33_s22 }
   0x5   :  { %s8049_s24 = smov 48   ;;  %s57_s27 = sshll.u32 %s8441_s3, 4  ;;  %s58_s27 = int_to_ptr.hbm [resolvable:$true] %s57_s27 }
   0x6   :  { %39 = dma.hbm_to_vmem [thread:$0]  %s32_s20, 1536, %s34_s22, [#allocation6], %s8048_s23, %s8048_s23, %s8049_s24  }
   0x7   :  { %s8050_s28 = smov [#allocation8]   ;;  %s18_s1 = sshll.u32 %s8438_s0, 4  ;;  %s19_s1 = int_to_ptr.hbm [resolvable:$true] %s18_s1 }
   0x8   :  { %s59_s29 = sshll.u32 %s8050_s28, 4  ;;  %s8051_s7 = smov 384   ;;  %s60_s29 = int_to_ptr.vmem [resolvable:$true] %s59_s29 }
   0x9   :  { %s8052_s8 = smov 24   ;;  %s44_s11 = sshll.u32 %s8440_s2, 4  ;;  %s45_s11 = int_to_ptr.hbm [resolvable:$true] %s44_s11 }
   0xa   :  { %65 = dma.hbm_to_vmem [thread:$0]  %s58_s27, 36864, %s60_s29, [#allocation9], %s8051_s7, %s8051_s7, %s8052_s8  }
   0xb   :  { %s8053_s12 = smov [#allocation2]   ;;  %s8054_s3 = smov [#allocation7]  }
   0xc   :  { %s20_s13 = sshll.u32 %s8053_s12, 4  ;;  %s46_s14 = sshll.u32 %s8054_s3, 4  ;;  %s21_s13 = int_to_ptr.vmem [resolvable:$true] %s20_s13  ;;  %s47_s14 = int_to_ptr.vmem [resolvable:$true] %s46_s14 }
   0xd   :  { %26 = dma.hbm_to_vmem [thread:$0]  %s19_s1, 1536, %s21_s13, [#allocation3], %s8048_s23, %s8048_s23, %s8049_s24  }
   0xe   :  { %s71_s16 = sshll.u32 %s8442_s4, 4  ;;  %s8055_s17 = smov [#allocation10]   ;;  %s72_s16 = int_to_ptr.hbm [resolvable:$true] %s71_s16 }
   0xf   :  { %52 = dma.hbm_to_vmem [thread:$0]  %s45_s11, 36864, %s47_s14, [#allocation6], %s8051_s7, %s8051_s7, %s8052_s8  }
  0x10   :  { %s73_s18 = sshll.u32 %s8055_s17, 4  ;;  %s74_s18 = int_to_ptr.vmem [resolvable:$true] %s73_s18 }
  0x11   :  { %76 = dma.hbm_to_vmem [thread:$0]  %s72_s16, 96, %s74_s18, [#allocation9]  }
  0x12   :  { %8039 = dma.done.wait [#allocation3], 1536  }
  0x13   :  { %8040 = vsyncadd [#allocation3], 4294965760 }
  0x14   :  { %8041 = dma.done.wait [#allocation6], 38400  }
  0x15   :  { %8042 = vsyncadd [#allocation6], 4294928896 }
  0x16   :  { %8043 = dma.done.wait [#allocation9], 36960  }
  0x17   :  { %8044 = vsyncadd [#allocation9], 4294930336  ;;  %v5090_v0 = vld [vmem:[#allocation8 + $0x150] sm:$0xf]  ;;  %v7569_v1 = vld [vmem:[#allocation8 + $0x164] sm:$0xf0] }
  0x18   :  { %v5282_v2 = vld [vmem:[#allocation8 + $0x2d0] sm:$0xf]  ;;  %v5091_v3 = vor.u32 %v7569_v1, %v5090_v0  ;;  %v7617_v4 = vld [vmem:[#allocation8 + $0x2e4] sm:$0xf0]  ;;  %v5066_v11 = vld [vmem:[#allocation8 + $0x120] sm:$0xf] }
  0x19   :  { %v5474_v5 = vld [vmem:[#allocation8 + $0x450] sm:$0xf]  ;;  %v7665_v6 = vld [vmem:[#allocation8 + $0x464] sm:$0xf0]  ;;  %v5283_v7 = vor.u32 %v7617_v4, %v5282_v2  ;;  %v7563_v13 = vld [vmem:[#allocation8 + $0x134] sm:$0xf0] }
  0x1a   :  { %v5475_v8 = vor.u32 %v7665_v6, %v5474_v5  ;;  %v5666_v9 = vld [vmem:[#allocation8 + $0x5d0] sm:$0xf]  ;;  %v7713_v10 = vld [vmem:[#allocation8 + $0x5e4] sm:$0xf0]  ;;  %2149 = vmatpush.bf16.msra.mxu0 %v5091_v3  ;;  %v5258_v14 = vld [vmem:[#allocation8 + $0x2a0] sm:$0xf]  ;;  %v5067_v16 = vor.u32 %v7563_v13, %v5066_v11 }
  0x1b   :  { %v5667_v12 = vor.u32 %v7713_v10, %v5666_v9  ;;  %v7611_v15 = vld [vmem:[#allocation8 + $0x2b4] sm:$0xf0]  ;;  %2163 = vmatpush.bf16.msra.mxu1 %v5283_v7  ;;  %v5450_v18 = vld [vmem:[#allocation8 + $0x420] sm:$0xf]  ;;  %v5042_v23 = vld [vmem:[#allocation8 + $0xf0] sm:$0xf] }
  0x1c   :  { %2177 = vmatpush.bf16.msra.mxu2 %v5475_v8  ;;  %v5259_v17 = vor.u32 %v7611_v15, %v5258_v14  ;;  %v7659_v19 = vld [vmem:[#allocation8 + $0x434] sm:$0xf0]  ;;  %v5642_v20 = vld [vmem:[#allocation8 + $0x5a0] sm:$0xf]  ;;  %v7557_v24 = vld [vmem:[#allocation8 + $0x104] sm:$0xf0] }
  0x1d   :  { %2191 = vmatpush.bf16.msra.mxu3 %v5667_v12  ;;  %v5451_v21 = vor.u32 %v7659_v19, %v5450_v18  ;;  %v7707_v22 = vld [vmem:[#allocation8 + $0x5b4] sm:$0xf0]  ;;  %v5234_v26 = vld [vmem:[#allocation8 + $0x270] sm:$0xf]  ;;  %v7605_v27 = vld [vmem:[#allocation8 + $0x284] sm:$0xf0]  ;;  %v5043_v29 = vor.u32 %v7557_v24, %v5042_v23 }
  0x1e   :  { %v5643_v25 = vor.u32 %v7707_v22, %v5642_v20  ;;  %v5426_v28 = vld [vmem:[#allocation8 + $0x3f0] sm:$0xf]  ;;  %2150 = vmatpush.bf16.msra.mxu0 %v5067_v16  ;;  %v7653_v30 = vld [vmem:[#allocation8 + $0x404] sm:$0xf0]  ;;  %v5235_v33 = vor.u32 %v7605_v27, %v5234_v26  ;;  %v5018_v35 = vld [vmem:[#allocation8 + $0xc0] sm:$0xf] }
  0x1f   :  { %v5618_v31 = vld [vmem:[#allocation8 + $0x570] sm:$0xf]  ;;  %v7701_v32 = vld [vmem:[#allocation8 + $0x584] sm:$0xf0]  ;;  %2164 = vmatpush.bf16.msra.mxu1 %v5259_v17  ;;  %v5427_v34 = vor.u32 %v7653_v30, %v5426_v28  ;;  %v7551_v36 = vld [vmem:[#allocation8 + $0xd4] sm:$0xf0] }
  0x20   :  { %2178 = vmatpush.bf16.msra.mxu2 %v5451_v21  ;;  %v5210_v37 = vld [vmem:[#allocation8 + $0x240] sm:$0xf]  ;;  %v5619_v38 = vor.u32 %v7701_v32, %v5618_v31  ;;  %v7599_v39 = vld [vmem:[#allocation8 + $0x254] sm:$0xf0]  ;;  %v5019_v44 = vor.u32 %v7551_v36, %v5018_v35  ;;  %v4994_v47 = vld [vmem:[#allocation8 + $0x90] sm:$0xf] }
  0x21   :  { %2192 = vmatpush.bf16.msra.mxu3 %v5643_v25  ;;  %v5402_v40 = vld [vmem:[#allocation8 + $0x3c0] sm:$0xf]  ;;  %v7647_v41 = vld [vmem:[#allocation8 + $0x3d4] sm:$0xf0]  ;;  %v5211_v45 = vor.u32 %v7599_v39, %v5210_v37  ;;  %v7545_v48 = vld [vmem:[#allocation8 + $0xa4] sm:$0xf0] }
  0x22   :  { %v5594_v42 = vld [vmem:[#allocation8 + $0x540] sm:$0xf]  ;;  %v7695_v43 = vld [vmem:[#allocation8 + $0x554] sm:$0xf0]  ;;  %2151 = vmatpush.bf16.msra.mxu0 %v5043_v29  ;;  %v5403_v46 = vor.u32 %v7647_v41, %v5402_v40  ;;  %v5186_v49 = vld [vmem:[#allocation8 + $0x210] sm:$0xf]  ;;  %v4995_v56 = vor.u32 %v7545_v48, %v4994_v47 }
  0x23   :  { %2165 = vmatpush.bf16.msra.mxu1 %v5235_v33  ;;  %v5595_v50 = vor.u32 %v7695_v43, %v5594_v42  ;;  %v7593_v51 = vld [vmem:[#allocation8 + $0x224] sm:$0xf0]  ;;  %v5378_v52 = vld [vmem:[#allocation8 + $0x390] sm:$0xf]  ;;  %v4970_v59 = vld [vmem:[#allocation8 + $0x60] sm:$0xf] }
  0x24   :  { %2179 = vmatpush.bf16.msra.mxu2 %v5427_v34  ;;  %v7641_v53 = vld [vmem:[#allocation8 + $0x3a4] sm:$0xf0]  ;;  %v5570_v54 = vld [vmem:[#allocation8 + $0x510] sm:$0xf]  ;;  %v5187_v57 = vor.u32 %v7593_v51, %v5186_v49  ;;  %v7539_v60 = vld [vmem:[#allocation8 + $0x74] sm:$0xf0] }
  0x25   :  { %2193 = vmatpush.bf16.msra.mxu3 %v5619_v38  ;;  %v7689_v55 = vld [vmem:[#allocation8 + $0x524] sm:$0xf0]  ;;  %v5379_v58 = vor.u32 %v7641_v53, %v5378_v52  ;;  %v5162_v61 = vld [vmem:[#allocation8 + $0x1e0] sm:$0xf]  ;;  %v7587_v63 = vld [vmem:[#allocation8 + $0x1f4] sm:$0xf0]  ;;  %v4971_v4 = vor.u32 %v7539_v60, %v4970_v59 }
  0x26   :  { %2152 = vmatpush.bf16.msra.mxu0 %v5019_v44  ;;  %v5571_v62 = vor.u32 %v7689_v55, %v5570_v54  ;;  %v5354_v0 = vld [vmem:[#allocation8 + $0x360] sm:$0xf]  ;;  %v7635_v1 = vld [vmem:[#allocation8 + $0x374] sm:$0xf0]  ;;  %v5163_v5 = vor.u32 %v7587_v63, %v5162_v61  ;;  %v4946_v7 = vld [vmem:[#allocation8 + $0x30] sm:$0xf] }
  0x27   :  { %2166 = vmatpush.bf16.msra.mxu1 %v5211_v45  ;;  %v5546_v2 = vld [vmem:[#allocation8 + $0x4e0] sm:$0xf]  ;;  %v7683_v3 = vld [vmem:[#allocation8 + $0x4f4] sm:$0xf0]  ;;  %v5355_v6 = vor.u32 %v7635_v1, %v5354_v0  ;;  %v7533_v8 = vld [vmem:[#allocation8 + $0x44] sm:$0xf0] }
  0x28   :  { %2180 = vmatpush.bf16.msra.mxu2 %v5403_v46  ;;  %v5138_v9 = vld [vmem:[#allocation8 + $0x1b0] sm:$0xf]  ;;  %v5547_v10 = vor.u32 %v7683_v3, %v5546_v2  ;;  %v7581_v11 = vld [vmem:[#allocation8 + $0x1c4] sm:$0xf0]  ;;  %v4947_v16 = vor.u32 %v7533_v8, %v4946_v7  ;;  %v4922_v17 = vld [vmem:[#allocation8] sm:$0xf] }
  0x29   :  { %2194 = vmatpush.bf16.msra.mxu3 %v5595_v50  ;;  %v5330_v12 = vld [vmem:[#allocation8 + $0x330] sm:$0xf]  ;;  %v7629_v13 = vld [vmem:[#allocation8 + $0x344] sm:$0xf0]  ;;  %v7527_v18 = vld [vmem:[#allocation8 + $0x14] sm:$0xf0]  ;;  %v5139_v19 = vor.u32 %v7581_v11, %v5138_v9 }
  0x2a   :  { %2153 = vmatpush.bf16.msra.mxu0 %v4995_v56  ;;  %v5522_v14 = vld [vmem:[#allocation8 + $0x4b0] sm:$0xf]  ;;  %v7677_v15 = vld [vmem:[#allocation8 + $0x4c4] sm:$0xf0]  ;;  %v5331_v20 = vor.u32 %v7629_v13, %v5330_v12  ;;  %v5114_v21 = vld [vmem:[#allocation8 + $0x180] sm:$0xf]  ;;  %v4923_v31 = vor.u32 %v7527_v18, %v4922_v17 }
  0x2b   :  { %2167 = vmatpush.bf16.msra.mxu1 %v5187_v57  ;;  %v7575_v22 = vld [vmem:[#allocation8 + $0x194] sm:$0xf0]  ;;  %v5306_v23 = vld [vmem:[#allocation8 + $0x300] sm:$0xf]  ;;  %v5523_v24 = vor.u32 %v7677_v15, %v5522_v14  ;;  %v5858_v28 = vld [vmem:[#allocation8 + $0x750] sm:$0xf] }
  0x2c   :  { %2181 = vmatpush.bf16.msra.mxu2 %v5379_v58  ;;  %v7623_v25 = vld [vmem:[#allocation8 + $0x314] sm:$0xf0]  ;;  %v5498_v26 = vld [vmem:[#allocation8 + $0x480] sm:$0xf]  ;;  %v7761_v29 = vld [vmem:[#allocation8 + $0x764] sm:$0xf0]  ;;  %v5115_v35 = vor.u32 %v7575_v22, %v5114_v21 }
  0x2d   :  { %2195 = vmatpush.bf16.msra.mxu3 %v5571_v62  ;;  %v7671_v27 = vld [vmem:[#allocation8 + $0x494] sm:$0xf0]  ;;  %v6050_v30 = vld [vmem:[#allocation8 + $0x8d0] sm:$0xf]  ;;  %v7809_v32 = vld [vmem:[#allocation8 + $0x8e4] sm:$0xf0]  ;;  %v5307_v36 = vor.u32 %v7623_v25, %v5306_v23  ;;  %v5859_v40 = vor.u32 %v7761_v29, %v5858_v28 }
  0x2e   :  { %2154 = vmatpush.bf16.msra.mxu0 %v4971_v4  ;;  %v7566_v33 = vld [vmem:[#allocation8 + $0x154] sm:$0xf]  ;;  %v5092_v34 = vld [vmem:[#allocation8 + $0x168] sm:$0xf0]  ;;  %v5499_v39 = vor.u32 %v7671_v27, %v5498_v26  ;;  %v5834_v41 = vld [vmem:[#allocation8 + $0x720] sm:$0xf]  ;;  %v6051_v42 = vor.u32 %v7809_v32, %v6050_v30 }
  0x2f   :  { %2168 = vmatpush.bf16.msra.mxu1 %v5163_v5  ;;  %v7614_v37 = vld [vmem:[#allocation8 + $0x2d4] sm:$0xf]  ;;  %v5284_v38 = vld [vmem:[#allocation8 + $0x2e8] sm:$0xf0]  ;;  %v5095_v43 = vor.u32 %v7566_v33, %v5092_v34  ;;  %v7755_v44 = vld [vmem:[#allocation8 + $0x734] sm:$0xf0] }
  0x30   :  { %2182 = vmatpush.bf16.msra.mxu2 %v5355_v6  ;;  %v6026_v45 = vld [vmem:[#allocation8 + $0x8a0] sm:$0xf]  ;;  %v7803_v46 = vld [vmem:[#allocation8 + $0x8b4] sm:$0xf0]  ;;  %v5287_v47 = vor.u32 %v7614_v37, %v5284_v38  ;;  %v7560_v48 = vld [vmem:[#allocation8 + $0x124] sm:$0xf]  ;;  %v5835_v54 = vor.u32 %v7755_v44, %v5834_v41 }
  0x31   :  { %2196 = vmatpush.bf16.msra.mxu3 %v5547_v10  ;;  %v5068_v49 = vld [vmem:[#allocation8 + $0x138] sm:$0xf0]  ;;  %v7608_v50 = vld [vmem:[#allocation8 + $0x2a4] sm:$0xf]  ;;  %v115_v53 = vld [vmem:[#allocation5 + $0x30] sm:$0xff]  ;;  %v6027_v59 = vor.u32 %v7803_v46, %v6026_v45  ;;  %s8056_s2 = smov [#allocation11]  }
  0x32   :  { %2155 = vmatpush.bf16.msra.mxu0 %v4947_v16  ;;  %v5260_v51 = vld [vmem:[#allocation8 + $0x2b8] sm:$0xf0]  ;;  %v109_v52 = vld [vmem:[#allocation5] sm:$0xff]  ;;  %v5810_v55 = vld [vmem:[#allocation8 + $0x6f0] sm:$0xf]  ;;  %v5071_v60 = vor.u32 %v7560_v48, %v5068_v49  ;;  %s4903_s4 = sshll.u32 %s8056_s2, 4  ;;  %s4904_s4 = int_to_ptr.vmem [resolvable:$true] %s4903_s4 }
  0x33   :  { %2169 = vmatpush.bf16.msra.mxu1 %v5139_v19  ;;  %v7749_v56 = vld [vmem:[#allocation8 + $0x704] sm:$0xf0]  ;;  %v6002_v57 = vld [vmem:[#allocation8 + $0x870] sm:$0xf]  ;;  %v8108_v58 = vpack.c.bf16 %v115_v53, %v109_v52  ;;  %v7554_v62 = vld [vmem:[#allocation8 + $0xf4] sm:$0xf]  ;;  %v5263_v0 = vor.u32 %v7608_v50, %v5260_v51 }
  0x34   :  { %2183 = vmatpush.bf16.msra.mxu2 %v5331_v20  ;;  %v7797_v61 = vld [vmem:[#allocation8 + $0x884] sm:$0xf0]  ;;  %v5044_v63 = vld [vmem:[#allocation8 + $0x108] sm:$0xf0]  ;;  %v7602_v1 = vld [vmem:[#allocation8 + $0x274] sm:$0xf]  ;;  %v5811_v8 = vor.u32 %v7749_v56, %v5810_v55 }
  0x35   :  { %2197 = vmatpush.bf16.msra.mxu3 %v5523_v24  ;;  %v110_v2 = vld [vmem:[#allocation5 + $0x8] sm:$0xff]  ;;  %v116_v3 = vld [vmem:[#allocation5 + $0x38] sm:$0xff]  ;;  %v111_v6 = vld [vmem:[#allocation5 + $0x10] sm:$0xff]  ;;  %v6003_v12 = vor.u32 %v7797_v61, %v6002_v57  ;;  %v5047_v13 = vor.u32 %v7554_v62, %v5044_v63  ;;  %s4905_s21 = sshll.u32 %s8443_s5, 4  ;;  %s4906_s21 = int_to_ptr.hbm [resolvable:$true] %s4905_s21 }
  0x36   :  { %2156 = vmatpush.bf16.msra.mxu0 %v4923_v31  ;;  %v5236_v4 = vld [vmem:[#allocation8 + $0x288] sm:$0xf0]  ;;  %v8111_v5 = vpack.c.bf16 %v116_v3, %v110_v2  ;;  %v117_v7 = vld [vmem:[#allocation5 + $0x40] sm:$0xff]  ;;  %v7743_v10 = vld [vmem:[#allocation8 + $0x6d4] sm:$0xf0] }
  0x37   :  { %2170 = vmatpush.bf16.msra.mxu1 %v5115_v35  ;;  %v5786_v9 = vld [vmem:[#allocation8 + $0x6c0] sm:$0xf]  ;;  %v8113_v11 = vpack.c.bf16 %v117_v7, %v111_v6  ;;  %v7791_v15 = vld [vmem:[#allocation8 + $0x854] sm:$0xf0]  ;;  %v7548_v16 = vld [vmem:[#allocation8 + $0xc4] sm:$0xf]  ;;  %v5239_v17 = vor.u32 %v7602_v1, %v5236_v4 }
  0x38   :  { %2184 = vmatpush.bf16.msra.mxu2 %v5307_v36  ;;  %v5978_v14 = vld [vmem:[#allocation8 + $0x840] sm:$0xf]  ;;  %v5020_v18 = vld [vmem:[#allocation8 + $0xd8] sm:$0xf0]  ;;  %v118_v20 = vld [vmem:[#allocation5 + $0x48] sm:$0xff]  ;;  %v5787_v24 = vor.u32 %v7743_v10, %v5786_v9 }
  0x39   :  { %2198 = vmatpush.bf16.msra.mxu3 %v5499_v39  ;;  %2157 = vmatmul.bf16.vlgmr.msra.gmra.mxu0 %v8108_v58  ;;  %v112_v19 = vld [vmem:[#allocation5 + $0x18] sm:$0xff]  ;;  %v7596_v21 = vld [vmem:[#allocation8 + $0x244] sm:$0xf]  ;;  %v5979_v25 = vor.u32 %v7791_v15, %v5978_v14  ;;  %v5023_v26 = vor.u32 %v7548_v16, %v5020_v18  ;;  %v5762_v27 = vld [vmem:[#allocation8 + $0x690] sm:$0xf] }
  0x3a   :  { %2205 = vmatpush.bf16.msrb.mxu0 %v5859_v40  ;;  %2171 = vmatmul.bf16.vlgmr.msra.gmra.mxu1 %v8111_v5  ;;  %v5212_v22 = vld [vmem:[#allocation8 + $0x258] sm:$0xf0]  ;;  %v8117_v23 = vpack.c.bf16 %v118_v20, %v112_v19  ;;  %v7737_v28 = vld [vmem:[#allocation8 + $0x6a4] sm:$0xf0]  ;;  %v5954_v29 = vld [vmem:[#allocation8 + $0x810] sm:$0xf] }
  0x3b   :  { %2219 = vmatpush.bf16.msrb.mxu1 %v6051_v42  ;;  %2185 = vmatmul.bf16.vlgmr.msra.gmra.mxu2 %v8113_v11  ;;  %v5215_v30 = vor.u32 %v7596_v21, %v5212_v22  ;;  %v7785_v31 = vld [vmem:[#allocation8 + $0x824] sm:$0xf0]  ;;  %v7542_v32 = vld [vmem:[#allocation8 + $0x94] sm:$0xf]  ;;  %v4996_v33 = vld [vmem:[#allocation8 + $0xa8] sm:$0xf0]  ;;  %v5763_v36 = vor.u32 %v7737_v28, %v5762_v27 }
  0x3c   :  { %2233 = vmatpush.bf16.msrb.mxu2 %v5095_v43  ;;  %v7590_v34 = vld [vmem:[#allocation8 + $0x214] sm:$0xf]  ;;  %v5188_v35 = vld [vmem:[#allocation8 + $0x228] sm:$0xf0]  ;;  %2199 = vmatmul.bf16.vlgmr.msra.gmra.mxu3 %v8117_v23  ;;  %v5955_v37 = vor.u32 %v7785_v31, %v5954_v29  ;;  %v4999_v38 = vor.u32 %v7542_v32, %v4996_v33  ;;  %v5738_v39 = vld [vmem:[#allocation8 + $0x660] sm:$0xf] }
  0x3d   :  { %2247 = vmatpush.bf16.msrb.mxu3 %v5287_v47  ;;  %v7731_v40 = vld [vmem:[#allocation8 + $0x674] sm:$0xf0]  ;;  %v5930_v41 = vld [vmem:[#allocation8 + $0x7e0] sm:$0xf]  ;;  %v5191_v42 = vor.u32 %v7590_v34, %v5188_v35  ;;  %v7536_v44 = vld [vmem:[#allocation8 + $0x64] sm:$0xf] }
  0x3e   :  { %2206 = vmatpush.bf16.msrb.mxu0 %v5835_v54  ;;  %v7779_v43 = vld [vmem:[#allocation8 + $0x7f4] sm:$0xf0]  ;;  %v4972_v45 = vld [vmem:[#allocation8 + $0x78] sm:$0xf0]  ;;  %v7584_v46 = vld [vmem:[#allocation8 + $0x1e4] sm:$0xf]  ;;  %v5739_v48 = vor.u32 %v7731_v40, %v5738_v39 }
  0x3f   :  { %2220 = vmatpush.bf16.msrb.mxu1 %v6027_v59  ;;  %v5164_v47 = vld [vmem:[#allocation8 + $0x1f8] sm:$0xf0]  ;;  %v5931_v49 = vor.u32 %v7779_v43, %v5930_v41  ;;  %v4975_v50 = vor.u32 %v7536_v44, %v4972_v45  ;;  %v5714_v51 = vld [vmem:[#allocation8 + $0x630] sm:$0xf]  ;;  %v7725_v52 = vld [vmem:[#allocation8 + $0x644] sm:$0xf0] }
  0x40   :  { %2234 = vmatpush.bf16.msrb.mxu2 %v5071_v60  ;;  %v5906_v53 = vld [vmem:[#allocation8 + $0x7b0] sm:$0xf]  ;;  %v5167_v54 = vor.u32 %v7584_v46, %v5164_v47  ;;  %v7773_v55 = vld [vmem:[#allocation8 + $0x7c4] sm:$0xf0]  ;;  %v7530_v56 = vld [vmem:[#allocation8 + $0x34] sm:$0xf]  ;;  %v5715_v61 = vor.u32 %v7725_v52, %v5714_v51 }
  0x41   :  { %2248 = vmatpush.bf16.msrb.mxu3 %v5263_v0  ;;  %v4948_v57 = vld [vmem:[#allocation8 + $0x48] sm:$0xf0]  ;;  %v7578_v59 = vld [vmem:[#allocation8 + $0x1b4] sm:$0xf]  ;;  %v5690_v62 = vld [vmem:[#allocation8 + $0x600] sm:$0xf]  ;;  %v5907_v1 = vor.u32 %v7773_v55, %v5906_v53 }
  0x42   :  { %2207 = vmatpush.bf16.msrb.mxu0 %v5811_v8  ;;  %v5140_v60 = vld [vmem:[#allocation8 + $0x1c8] sm:$0xf0]  ;;  %v7719_v63 = vld [vmem:[#allocation8 + $0x614] sm:$0xf0]  ;;  %v5882_v0 = vld [vmem:[#allocation8 + $0x780] sm:$0xf]  ;;  %v4951_v2 = vor.u32 %v7530_v56, %v4948_v57 }
  0x43   :  { %2221 = vmatpush.bf16.msrb.mxu1 %v6003_v12  ;;  %v7767_v3 = vld [vmem:[#allocation8 + $0x794] sm:$0xf0]  ;;  %v7524_v4 = vld [vmem:[#allocation8 + $0x4] sm:$0xf]  ;;  %v4924_v6 = vld [vmem:[#allocation8 + $0x18] sm:$0xf0]  ;;  %v5143_v7 = vor.u32 %v7578_v59, %v5140_v60  ;;  %v5691_v15 = vor.u32 %v7719_v63, %v5690_v62 }
  0x44   :  { %2235 = vmatpush.bf16.msrb.mxu2 %v5047_v13  ;;  %v7572_v8 = vld [vmem:[#allocation8 + $0x184] sm:$0xf]  ;;  %v5116_v9 = vld [vmem:[#allocation8 + $0x198] sm:$0xf0]  ;;  %v7662_v10 = vld [vmem:[#allocation8 + $0x454] sm:$0xf]  ;;  %v5883_v19 = vor.u32 %v7767_v3, %v5882_v0  ;;  %v4927_v20 = vor.u32 %v7524_v4, %v4924_v6 }
  0x45   :  { %2249 = vmatpush.bf16.msrb.mxu3 %v5239_v17  ;;  %v5476_v12 = vld [vmem:[#allocation8 + $0x468] sm:$0xf0]  ;;  %v7710_v13 = vld [vmem:[#allocation8 + $0x5d4] sm:$0xf]  ;;  %v113_v22 = vld [vmem:[#allocation5 + $0x20] sm:$0xff] }
  0x46   :  { %2208 = vmatpush.bf16.msrb.mxu0 %v5787_v24  ;;  %v5668_v14 = vld [vmem:[#allocation8 + $0x5e8] sm:$0xf0]  ;;  %v7758_v16 = vld [vmem:[#allocation8 + $0x754] sm:$0xf]  ;;  %v120_v28 = vld [vmem:[#allocation5 + $0x58] sm:$0xff] }
  0x47   :  { %2222 = vmatpush.bf16.msrb.mxu1 %v5979_v25  ;;  %v5860_v17 = vld [vmem:[#allocation8 + $0x768] sm:$0xf0]  ;;  %v7806_v18 = vld [vmem:[#allocation8 + $0x8d4] sm:$0xf]  ;;  %v5119_v25 = vor.u32 %v7572_v8, %v5116_v9  ;;  %v5671_v29 = vor.u32 %v7710_v13, %v5668_v14  ;;  %v7656_v31 = vld [vmem:[#allocation8 + $0x424] sm:$0xf] }
  0x48   :  { %2236 = vmatpush.bf16.msrb.mxu2 %v5023_v26  ;;  %v6052_v21 = vld [vmem:[#allocation8 + $0x8e8] sm:$0xf0]  ;;  %v119_v24 = vld [vmem:[#allocation5 + $0x50] sm:$0xff]  ;;  %v5479_v26 = vor.u32 %v7662_v10, %v5476_v12  ;;  %v5452_v32 = vld [vmem:[#allocation8 + $0x438] sm:$0xf0] }
  0x49   :  { %2250 = vmatpush.bf16.msrb.mxu3 %v5215_v30  ;;  %v114_v27 = vld [vmem:[#allocation5 + $0x28] sm:$0xff]  ;;  %v5863_v30 = vor.u32 %v7758_v16, %v5860_v17  ;;  %v7704_v33 = vld [vmem:[#allocation8 + $0x5a4] sm:$0xf]  ;;  %v6055_v34 = vor.u32 %v7806_v18, %v6052_v21  ;;  %v8120_v35 = vpack.c.bf16 %v119_v24, %v113_v22  ;;  %v6028_v41 = vld [vmem:[#allocation8 + $0x8b8] sm:$0xf0] }
  0x4a   :  { %2209 = vmatpush.bf16.msrb.mxu0 %v5763_v36  ;;  %v5644_v36 = vld [vmem:[#allocation8 + $0x5b8] sm:$0xf0]  ;;  %v8122_v39 = vpack.c.bf16 %v120_v28, %v114_v27  ;;  %v7800_v40 = vld [vmem:[#allocation8 + $0x8a4] sm:$0xf]  ;;  %v7650_v45 = vld [vmem:[#allocation8 + $0x3f4] sm:$0xf] }
  0x4b   :  { %2223 = vmatpush.bf16.msrb.mxu1 %v5955_v37  ;;  %v7752_v37 = vld [vmem:[#allocation8 + $0x724] sm:$0xf]  ;;  %v5647_v43 = vor.u32 %v7704_v33, %v5644_v36  ;;  %v5428_v46 = vld [vmem:[#allocation8 + $0x408] sm:$0xf0]  ;;  %v7698_v47 = vld [vmem:[#allocation8 + $0x574] sm:$0xf] }
  0x4c   :  { %2237 = vmatpush.bf16.msrb.mxu2 %v4999_v38  ;;  %v5836_v38 = vld [vmem:[#allocation8 + $0x738] sm:$0xf0]  ;;  %v5812_v51 = vld [vmem:[#allocation8 + $0x708] sm:$0xf0]  ;;  %v7794_v52 = vld [vmem:[#allocation8 + $0x874] sm:$0xf] }
  0x4d   :  { %2251 = vmatpush.bf16.msrb.mxu3 %v5191_v42  ;;  %v5455_v42 = vor.u32 %v7656_v31, %v5452_v32  ;;  %v5839_v44 = vor.u32 %v7752_v37, %v5836_v38  ;;  %v6004_v53 = vld [vmem:[#allocation8 + $0x888] sm:$0xf0]  ;;  %v7644_v57 = vld [vmem:[#allocation8 + $0x3c4] sm:$0xf]  ;;  %v5404_v59 = vld [vmem:[#allocation8 + $0x3d8] sm:$0xf0] }
  0x4e   :  { %2210 = vmatpush.bf16.msrb.mxu0 %v5739_v48  ;;  %v6031_v48 = vor.u32 %v7800_v40, %v6028_v41  ;;  %v7692_v60 = vld [vmem:[#allocation8 + $0x544] sm:$0xf]  ;;  %v5596_v62 = vld [vmem:[#allocation8 + $0x558] sm:$0xf0]  ;;  %v5407_v3 = vor.u32 %v7644_v57, %v5404_v59  ;;  %v5380_v8 = vld [vmem:[#allocation8 + $0x3a8] sm:$0xf0] }
  0x4f   :  { %2224 = vmatpush.bf16.msrb.mxu1 %v5931_v49  ;;  %v5620_v49 = vld [vmem:[#allocation8 + $0x588] sm:$0xf0]  ;;  %v7740_v63 = vld [vmem:[#allocation8 + $0x6c4] sm:$0xf]  ;;  %v5788_v0 = vld [vmem:[#allocation8 + $0x6d8] sm:$0xf0]  ;;  %v5599_v4 = vor.u32 %v7692_v60, %v5596_v62 }
  0x50   :  { %2238 = vmatpush.bf16.msrb.mxu2 %v4975_v50  ;;  %v7746_v50 = vld [vmem:[#allocation8 + $0x6f4] sm:$0xf]  ;;  %v5623_v55 = vor.u32 %v7698_v47, %v5620_v49  ;;  %v5791_v6 = vor.u32 %v7740_v63, %v5788_v0  ;;  %v5572_v12 = vld [vmem:[#allocation8 + $0x528] sm:$0xf0]  ;;  %v5356_v21 = vld [vmem:[#allocation8 + $0x378] sm:$0xf0] }
  0x51   :  { %2252 = vmatpush.bf16.msrb.mxu3 %v5167_v54  ;;  %v5431_v54 = vor.u32 %v7650_v45, %v5428_v46  ;;  %v5815_v56 = vor.u32 %v7746_v50, %v5812_v51  ;;  %v7686_v9 = vld [vmem:[#allocation8 + $0x514] sm:$0xf]  ;;  %v5764_v14 = vld [vmem:[#allocation8 + $0x6a8] sm:$0xf0]  ;;  %v7680_v22 = vld [vmem:[#allocation8 + $0x4e4] sm:$0xf] }
  0x52   :  { %2211 = vmatpush.bf16.msrb.mxu0 %v5715_v61  ;;  %v6007_v61 = vor.u32 %v7794_v52, %v6004_v53  ;;  %v7734_v13 = vld [vmem:[#allocation8 + $0x694] sm:$0xf]  ;;  %v5956_v16 = vld [vmem:[#allocation8 + $0x828] sm:$0xf0]  ;;  %v5575_v18 = vor.u32 %v7686_v9, %v5572_v12  ;;  %v5740_v27 = vld [vmem:[#allocation8 + $0x678] sm:$0xf0] }
  0x53   :  { %2225 = vmatpush.bf16.msrb.mxu1 %v5907_v1  ;;  %v7788_v1 = vld [vmem:[#allocation8 + $0x844] sm:$0xf]  ;;  %v7626_v33 = vld [vmem:[#allocation8 + $0x334] sm:$0xf]  ;;  %v5524_v38 = vld [vmem:[#allocation8 + $0x4c8] sm:$0xf0] }
  0x54   :  { %2239 = vmatpush.bf16.msrb.mxu2 %v4951_v2  ;;  %v5980_v2 = vld [vmem:[#allocation8 + $0x858] sm:$0xf0]  ;;  %v7776_v28 = vld [vmem:[#allocation8 + $0x7e4] sm:$0xf]  ;;  %v7674_v36 = vld [vmem:[#allocation8 + $0x4b4] sm:$0xf] }
  0x55   :  { %2253 = vmatpush.bf16.msrb.mxu3 %v5143_v7  ;;  %v7638_v7 = vld [vmem:[#allocation8 + $0x394] sm:$0xf]  ;;  %v5983_v10 = vor.u32 %v7788_v1, %v5980_v2  ;;  %v5716_v41 = vld [vmem:[#allocation8 + $0x648] sm:$0xf0]  ;;  %v7620_v45 = vld [vmem:[#allocation8 + $0x304] sm:$0xf]  ;;  %v5527_v47 = vor.u32 %v7674_v36, %v5524_v38 }
  0x56   :  { %2212 = vmatpush.bf16.msrb.mxu0 %v5691_v15  ;;  %v7782_v15 = vld [vmem:[#allocation8 + $0x814] sm:$0xf]  ;;  %v5383_v17 = vor.u32 %v7638_v7, %v5380_v8  ;;  %v5308_v46 = vld [vmem:[#allocation8 + $0x318] sm:$0xf0]  ;;  %v7668_v49 = vld [vmem:[#allocation8 + $0x484] sm:$0xf] }
  0x57   :  { %2226 = vmatpush.bf16.msrb.mxu1 %v5883_v19  ;;  %v5767_v19 = vor.u32 %v7734_v13, %v5764_v14  ;;  %v5959_v24 = vor.u32 %v7782_v15, %v5956_v16  ;;  %v7722_v40 = vld [vmem:[#allocation8 + $0x634] sm:$0xf]  ;;  %v5500_v50 = vld [vmem:[#allocation8 + $0x498] sm:$0xf0]  ;;  %v7716_v51 = vld [vmem:[#allocation8 + $0x604] sm:$0xf]  ;;  %v5311_v60 = vor.u32 %v7620_v45, %v5308_v46 }
  0x58   :  { %2240 = vmatpush.bf16.msrb.mxu2 %v4927_v20  ;;  %v7632_v20 = vld [vmem:[#allocation8 + $0x364] sm:$0xf]  ;;  %v5692_v53 = vld [vmem:[#allocation8 + $0x618] sm:$0xf0]  ;;  %v7570_v57 = vld [vmem:[#allocation8 + $0x16c] sm:$0xf0]  ;;  %v5503_v0 = vor.u32 %v7668_v49, %v5500_v50 }
  0x59   :  { %2254 = vmatpush.bf16.msrb.mxu3 %v5119_v25  ;;  %2213 = vmatmul.bf16.vlgmr.msrb.gmra.mxu0 %v8120_v35  ;;  %v5548_v25 = vld [vmem:[#allocation8 + $0x4f8] sm:$0xf0]  ;;  %v5290_v59 = vld [vmem:[#allocation8 + $0x2d8] sm:$0xf]  ;;  %v7666_v63 = vld [vmem:[#allocation8 + $0x46c] sm:$0xf0]  ;;  %v5695_v1 = vor.u32 %v7716_v51, %v5692_v53 }
  0x5a   :  { %2261 = vmatpush.bf16.msra.mxu0 %v5479_v26  ;;  %2227 = vmatmul.bf16.vlgmr.msrb.gmra.mxu1 %v8122_v39  ;;  %v7728_v26 = vld [vmem:[#allocation8 + $0x664] sm:$0xf]  ;;  %v5551_v31 = vor.u32 %v7680_v22, %v5548_v25  ;;  %v5482_v62 = vld [vmem:[#allocation8 + $0x458] sm:$0xf]  ;;  %v5074_v9 = vld [vmem:[#allocation8 + $0x128] sm:$0xf] }
  0x5b   :  { %2275 = vmatpush.bf16.msra.mxu1 %v5671_v29  ;;  %2241 = vmatmul.bf16.vlgmr.msrb.gmra.mxu2 %v8108_v58  ;;  %v5932_v29 = vld [vmem:[#allocation8 + $0x7f8] sm:$0xf0]  ;;  %v5743_v32 = vor.u32 %v7728_v26, %v5740_v27  ;;  %v5674_v2 = vld [vmem:[#allocation8 + $0x5d8] sm:$0xf]  ;;  %v5483_v8 = vor.u32 %v7666_v63, %v5482_v62  ;;  %v5266_v12 = vld [vmem:[#allocation8 + $0x2a8] sm:$0xf] }
  0x5c   :  { %2289 = vmatpush.bf16.msra.mxu2 %v5863_v30  ;;  %2255 = vmatmul.bf16.vlgmr.msrb.gmra.mxu3 %v8111_v5  ;;  %v5359_v30 = vor.u32 %v7632_v20, %v5356_v21  ;;  %v5935_v37 = vor.u32 %v7776_v28, %v5932_v29  ;;  %v7612_v14 = vld [vmem:[#allocation8 + $0x2bc] sm:$0xf0]  ;;  %v5458_v15 = vld [vmem:[#allocation8 + $0x428] sm:$0xf]  ;;  %v5050_v22 = vld [vmem:[#allocation8 + $0xf8] sm:$0xf] }
  0x5d   :  { %2303 = vmatpush.bf16.msra.mxu3 %v6055_v34  ;;  %v5332_v34 = vld [vmem:[#allocation8 + $0x348] sm:$0xf0]  ;;  %v7660_v16 = vld [vmem:[#allocation8 + $0x43c] sm:$0xf0]  ;;  %v5267_v20 = vor.u32 %v7612_v14, %v5266_v12  ;;  %v5242_v25 = vld [vmem:[#allocation8 + $0x278] sm:$0xf] }
  0x5e   :  { %2262 = vmatpush.bf16.msra.mxu0 %v5455_v42  ;;  %v7770_v42 = vld [vmem:[#allocation8 + $0x7b4] sm:$0xf]  ;;  %v5459_v21 = vor.u32 %v7660_v16, %v5458_v15  ;;  %v7606_v27 = vld [vmem:[#allocation8 + $0x28c] sm:$0xf0]  ;;  %v5434_v28 = vld [vmem:[#allocation8 + $0x3f8] sm:$0xf] }
  0x5f   :  { %2276 = vmatpush.bf16.msra.mxu1 %v5647_v43  ;;  %v5908_v43 = vld [vmem:[#allocation8 + $0x7c8] sm:$0xf0]  ;;  %v7654_v29 = vld [vmem:[#allocation8 + $0x40c] sm:$0xf0]  ;;  %v5026_v36 = vld [vmem:[#allocation8 + $0xc8] sm:$0xf] }
  0x60   :  { %2290 = vmatpush.bf16.msra.mxu2 %v5839_v44  ;;  %v5335_v44 = vor.u32 %v7626_v33, %v5332_v34  ;;  %v5911_v52 = vor.u32 %v7770_v42, %v5908_v43  ;;  %v5243_v33 = vor.u32 %v7606_v27, %v5242_v25  ;;  %v5435_v34 = vor.u32 %v7654_v29, %v5434_v28  ;;  %v5218_v38 = vld [vmem:[#allocation8 + $0x248] sm:$0xf]  ;;  %v7648_v43 = vld [vmem:[#allocation8 + $0x3dc] sm:$0xf0]  ;;  %v5002_v49 = vld [vmem:[#allocation8 + $0x98] sm:$0xf] }
  0x61   :  { %2304 = vmatpush.bf16.msra.mxu3 %v6031_v48  ;;  %v5719_v48 = vor.u32 %v7722_v40, %v5716_v41  ;;  %v7600_v41 = vld [vmem:[#allocation8 + $0x25c] sm:$0xf0]  ;;  %v5410_v42 = vld [vmem:[#allocation8 + $0x3c8] sm:$0xf]  ;;  %v7546_v50 = vld [vmem:[#allocation8 + $0xac] sm:$0xf0] }
  0x62   :  { %2263 = vmatpush.bf16.msra.mxu0 %v5431_v54  ;;  %v7764_v54 = vld [vmem:[#allocation8 + $0x784] sm:$0xf]  ;;  %v7696_v45 = vld [vmem:[#allocation8 + $0x55c] sm:$0xf0]  ;;  %v5194_v51 = vld [vmem:[#allocation8 + $0x218] sm:$0xf] }
  0x63   :  { %2277 = vmatpush.bf16.msra.mxu1 %v5623_v55  ;;  %v5884_v55 = vld [vmem:[#allocation8 + $0x798] sm:$0xf0]  ;;  %v7594_v53 = vld [vmem:[#allocation8 + $0x22c] sm:$0xf0]  ;;  %v4978_v62 = vld [vmem:[#allocation8 + $0x68] sm:$0xf] }
  0x64   :  { %2291 = vmatpush.bf16.msra.mxu2 %v5815_v56  ;;  %v5098_v56 = vld [vmem:[#allocation8 + $0x158] sm:$0xf]  ;;  %v7540_v63 = vld [vmem:[#allocation8 + $0x7c] sm:$0xf0]  ;;  %v7582_v16 = vld [vmem:[#allocation8 + $0x1cc] sm:$0xf0] }
  0x65   :  { %2305 = vmatpush.bf16.msra.mxu3 %v6007_v61  ;;  %v7618_v61 = vld [vmem:[#allocation8 + $0x2ec] sm:$0xf0]  ;;  %v4954_v12 = vld [vmem:[#allocation8 + $0x38] sm:$0xf]  ;;  %v5122_v27 = vld [vmem:[#allocation8 + $0x188] sm:$0xf] }
  0x66   :  { %2264 = vmatpush.bf16.msra.mxu0 %v5407_v3  ;;  %v7714_v3 = vld [vmem:[#allocation8 + $0x5ec] sm:$0xf0]  ;;  %v5291_v7 = vor.u32 %v7618_v61, %v5290_v59  ;;  %v5003_v59 = vor.u32 %v7546_v50, %v5002_v49  ;;  %v5146_v14 = vld [vmem:[#allocation8 + $0x1b8] sm:$0xf]  ;;  %v7576_v28 = vld [vmem:[#allocation8 + $0x19c] sm:$0xf0] }
  0x67   :  { %2278 = vmatpush.bf16.msra.mxu1 %v5599_v4  ;;  %v5887_v4 = vor.u32 %v7764_v54, %v5884_v55  ;;  %v5675_v13 = vor.u32 %v7714_v3, %v5674_v2  ;;  %v5386_v54 = vld [vmem:[#allocation8 + $0x398] sm:$0xf]  ;;  %v7642_v55 = vld [vmem:[#allocation8 + $0x3ac] sm:$0xf0]  ;;  %v7588_v2 = vld [vmem:[#allocation8 + $0x1fc] sm:$0xf0]  ;;  %v5147_v25 = vor.u32 %v7582_v16, %v5146_v14 }
  0x68   :  { %2292 = vmatpush.bf16.msra.mxu2 %v5791_v6  ;;  %v5099_v6 = vor.u32 %v7570_v57, %v5098_v56  ;;  %v5578_v56 = vld [vmem:[#allocation8 + $0x518] sm:$0xf]  ;;  %v7690_v57 = vld [vmem:[#allocation8 + $0x52c] sm:$0xf0]  ;;  %v5387_v61 = vor.u32 %v7642_v55, %v5386_v54  ;;  %v5362_v3 = vld [vmem:[#allocation8 + $0x368] sm:$0xf] }
  0x69   :  { %2306 = vmatpush.bf16.msra.mxu3 %v5983_v10  ;;  %v7564_v10 = vld [vmem:[#allocation8 + $0x13c] sm:$0xf0]  ;;  %v5314_v29 = vld [vmem:[#allocation8 + $0x308] sm:$0xf] }
  0x6a   :  { %2265 = vmatpush.bf16.msra.mxu0 %v5383_v17  ;;  %v5650_v17 = vld [vmem:[#allocation8 + $0x5a8] sm:$0xf]  ;;  %v7804_v55 = vld [vmem:[#allocation8 + $0x8bc] sm:$0xf0] }
  0x6b   :  { %2279 = vmatpush.bf16.msra.mxu1 %v5575_v18  ;;  %v7708_v18 = vld [vmem:[#allocation8 + $0x5bc] sm:$0xf0]  ;;  %v5794_v14 = vld [vmem:[#allocation8 + $0x6c8] sm:$0xf] }
  0x6c   :  { %2293 = vmatpush.bf16.msra.mxu2 %v5767_v19  ;;  %v5075_v19 = vor.u32 %v7564_v10, %v5074_v9  ;;  %v5651_v26 = vor.u32 %v7708_v18, %v5650_v17  ;;  %v5338_v17 = vld [vmem:[#allocation8 + $0x338] sm:$0xf]  ;;  %v7630_v18 = vld [vmem:[#allocation8 + $0x34c] sm:$0xf0]  ;;  %v5986_v16 = vld [vmem:[#allocation8 + $0x848] sm:$0xf] }
  0x6d   :  { %2307 = vmatpush.bf16.msra.mxu3 %v5959_v24  ;;  %v7558_v24 = vld [vmem:[#allocation8 + $0x10c] sm:$0xf0] }
  0x6e   :  { %2266 = vmatpush.bf16.msra.mxu0 %v5359_v30  ;;  %v5626_v30 = vld [vmem:[#allocation8 + $0x578] sm:$0xf] }
  0x6f   :  { %2280 = vmatpush.bf16.msra.mxu1 %v5551_v31  ;;  %v7702_v31 = vld [vmem:[#allocation8 + $0x58c] sm:$0xf0] }
  0x70   :  { %2294 = vmatpush.bf16.msra.mxu2 %v5743_v32  ;;  %v5051_v32 = vor.u32 %v7558_v24, %v5050_v22  ;;  %v5627_v40 = vor.u32 %v7702_v31, %v5626_v30  ;;  %v4930_v22 = vld [vmem:[#allocation8 + $0x8] sm:$0xf]  ;;  %v7528_v24 = vld [vmem:[#allocation8 + $0x1c] sm:$0xf0] }
  0x71   :  { %2308 = vmatpush.bf16.msra.mxu3 %v5935_v37  ;;  %v7552_v37 = vld [vmem:[#allocation8 + $0xdc] sm:$0xf0] }
  0x72   :  { %2267 = vmatpush.bf16.msra.mxu0 %v5335_v44  ;;  %v5602_v44 = vld [vmem:[#allocation8 + $0x548] sm:$0xf]  ;;  %v5027_v46 = vor.u32 %v7552_v37, %v5026_v36  ;;  %v7624_v31 = vld [vmem:[#allocation8 + $0x31c] sm:$0xf0]  ;;  %v7762_v36 = vld [vmem:[#allocation8 + $0x76c] sm:$0xf0] }
  0x73   :  { %2281 = vmatpush.bf16.msra.mxu1 %v5527_v47  ;;  %v5219_v47 = vor.u32 %v7600_v41, %v5218_v38  ;;  %v6058_v37 = vld [vmem:[#allocation8 + $0x8d8] sm:$0xf]  ;;  %v4931_v38 = vor.u32 %v7528_v24, %v4930_v22  ;;  %v7567_v41 = vld [vmem:[#allocation8 + $0x15c] sm:$0xf]  ;;  %v5220_v22 = vld [vmem:[#allocation8 + $0x260] sm:$0xf0] }
  0x74   :  { %2295 = vmatpush.bf16.msra.mxu2 %v5719_v48  ;;  %v5411_v48 = vor.u32 %v7648_v43, %v5410_v42  ;;  %v5100_v42 = vld [vmem:[#allocation8 + $0x170] sm:$0xf0]  ;;  %v5123_v43 = vor.u32 %v7576_v28, %v5122_v27  ;;  %v5770_v27 = vld [vmem:[#allocation8 + $0x698] sm:$0xf]  ;;  %v7738_v28 = vld [vmem:[#allocation8 + $0x6ac] sm:$0xf0] }
  0x75   :  { %2309 = vmatpush.bf16.msra.mxu3 %v5911_v52  ;;  %v5603_v52 = vor.u32 %v7696_v45, %v5602_v44  ;;  %v5315_v44 = vor.u32 %v7624_v31, %v5314_v29  ;;  %v7615_v45 = vld [vmem:[#allocation8 + $0x2dc] sm:$0xf]  ;;  %v5103_v50 = vor.u32 %v7567_v41, %v5100_v42  ;;  %v5962_v29 = vld [vmem:[#allocation8 + $0x818] sm:$0xf]  ;;  %v7786_v31 = vld [vmem:[#allocation8 + $0x82c] sm:$0xf0] }
  0x76   :  { %2268 = vmatpush.bf16.msra.mxu0 %v5311_v60  ;;  %v5195_v60 = vor.u32 %v7594_v53, %v5194_v51  ;;  %v5842_v51 = vld [vmem:[#allocation8 + $0x728] sm:$0xf]  ;;  %v7732_v42 = vld [vmem:[#allocation8 + $0x67c] sm:$0xf0] }
  0x77   :  { %2282 = vmatpush.bf16.msra.mxu1 %v5503_v0  ;;  %v5170_v0 = vld [vmem:[#allocation8 + $0x1e8] sm:$0xf] }
  0x78   :  { %2296 = vmatpush.bf16.msra.mxu2 %v5695_v1  ;;  %v5579_v1 = vor.u32 %v7690_v57, %v5578_v56  ;;  %v5171_v9 = vor.u32 %v7588_v2, %v5170_v0  ;;  %v6034_v53 = vld [vmem:[#allocation8 + $0x8a8] sm:$0xf]  ;;  %v7561_v56 = vld [vmem:[#allocation8 + $0x12c] sm:$0xf]  ;;  %v5076_v57 = vld [vmem:[#allocation8 + $0x140] sm:$0xf0] }
  0x79   :  { %2310 = vmatpush.bf16.msra.mxu3 %v5887_v4  ;;  %2269 = vmatmul.bf16.vlgmr.msra.gmra.mxu0 %v8113_v11  ;;  %v7636_v4 = vld [vmem:[#allocation8 + $0x37c] sm:$0xf0]  ;;  %v5818_v0 = vld [vmem:[#allocation8 + $0x6f8] sm:$0xf]  ;;  %v5746_v41 = vld [vmem:[#allocation8 + $0x668] sm:$0xf] }
  0x7a   :  { %2317 = vmatpush.bf16.msrb.mxu0 %v5099_v6  ;;  %2283 = vmatmul.bf16.vlgmr.msra.gmra.mxu1 %v8117_v23  ;;  %v5554_v6 = vld [vmem:[#allocation8 + $0x4e8] sm:$0xf]  ;;  %v5363_v10 = vor.u32 %v7636_v4, %v5362_v3  ;;  %v6010_v2 = vld [vmem:[#allocation8 + $0x878] sm:$0xf]  ;;  %v7798_v4 = vld [vmem:[#allocation8 + $0x88c] sm:$0xf0] }
  0x7b   :  { %2331 = vmatpush.bf16.msrb.mxu1 %v5291_v7  ;;  %2297 = vmatmul.bf16.vlgmr.msra.gmra.mxu2 %v8120_v35  ;;  %v7684_v7 = vld [vmem:[#allocation8 + $0x4fc] sm:$0xf0] }
  0x7c   :  { %2345 = vmatpush.bf16.msrb.mxu2 %v5483_v8  ;;  %2311 = vmatmul.bf16.vlgmr.msra.gmra.mxu3 %v8122_v39  ;;  %v4979_v8 = vor.u32 %v7540_v63, %v4978_v62  ;;  %v5555_v15 = vor.u32 %v7684_v7, %v5554_v6  ;;  %v6035_v62 = vor.u32 %v7804_v55, %v6034_v53  ;;  %v7555_v6 = vld [vmem:[#allocation8 + $0xfc] sm:$0xf]  ;;  %v5052_v7 = vld [vmem:[#allocation8 + $0x110] sm:$0xf0]  ;;  %v5722_v53 = vld [vmem:[#allocation8 + $0x638] sm:$0xf] }
  0x7d   :  { %2359 = vmatpush.bf16.msrb.mxu3 %v5675_v13  ;;  %v7534_v13 = vld [vmem:[#allocation8 + $0x4c] sm:$0xf0]  ;;  %v5079_v63 = vor.u32 %v7561_v56, %v5076_v57  ;;  %v5914_v55 = vld [vmem:[#allocation8 + $0x7b8] sm:$0xf] }
  0x7e   :  { %2318 = vmatpush.bf16.msrb.mxu0 %v5075_v19  ;;  %v5530_v19 = vld [vmem:[#allocation8 + $0x4b8] sm:$0xf]  ;;  %v7774_v57 = vld [vmem:[#allocation8 + $0x7cc] sm:$0xf0] }
  0x7f   :  { %2332 = vmatpush.bf16.msrb.mxu1 %v5267_v20  ;;  %v7678_v20 = vld [vmem:[#allocation8 + $0x4cc] sm:$0xf0] }
  0x80   :  { %2346 = vmatpush.bf16.msrb.mxu2 %v5459_v21  ;;  %v4955_v21 = vor.u32 %v7534_v13, %v4954_v12  ;;  %v5531_v30 = vor.u32 %v7678_v20, %v5530_v19  ;;  %v6011_v12 = vor.u32 %v7798_v4, %v6010_v2  ;;  %v5055_v13 = vor.u32 %v7555_v6, %v5052_v7  ;;  %v7549_v19 = vld [vmem:[#allocation8 + $0xcc] sm:$0xf]  ;;  %v5028_v20 = vld [vmem:[#allocation8 + $0xe0] sm:$0xf0]  ;;  %v5890_v4 = vld [vmem:[#allocation8 + $0x788] sm:$0xf] }
  0x81   :  { %2360 = vmatpush.bf16.msrb.mxu3 %v5651_v26  ;;  %v5339_v26 = vor.u32 %v7630_v18, %v5338_v17  ;;  %v7792_v18 = vld [vmem:[#allocation8 + $0x85c] sm:$0xf0]  ;;  %v5915_v2 = vor.u32 %v7774_v57, %v5914_v55  ;;  %v7525_v7 = vld [vmem:[#allocation8 + $0xc] sm:$0xf] }
  0x82   :  { %2319 = vmatpush.bf16.msrb.mxu0 %v5051_v32  ;;  %v5506_v32 = vld [vmem:[#allocation8 + $0x488] sm:$0xf]  ;;  %v7768_v6 = vld [vmem:[#allocation8 + $0x79c] sm:$0xf0]  ;;  %v7645_v55 = vld [vmem:[#allocation8 + $0x3cc] sm:$0xf] }
  0x83   :  { %2333 = vmatpush.bf16.msrb.mxu1 %v5243_v33  ;;  %v7672_v33 = vld [vmem:[#allocation8 + $0x49c] sm:$0xf0]  ;;  %v7693_v57 = vld [vmem:[#allocation8 + $0x54c] sm:$0xf] }
  0x84   :  { %2347 = vmatpush.bf16.msrb.mxu2 %v5435_v34  ;;  %v5866_v34 = vld [vmem:[#allocation8 + $0x758] sm:$0xf] }
  0x85   :  { %2361 = vmatpush.bf16.msrb.mxu3 %v5627_v40  ;;  %v7810_v40 = vld [vmem:[#allocation8 + $0x8ec] sm:$0xf0] }
  0x86   :  { %2320 = vmatpush.bf16.msrb.mxu0 %v5027_v46  ;;  %v5292_v46 = vld [vmem:[#allocation8 + $0x2f0] sm:$0xf0]  ;;  %v6059_v49 = vor.u32 %v7810_v40, %v6058_v37  ;;  %v5771_v37 = vor.u32 %v7738_v28, %v5770_v27 }
  0x87   :  { %2334 = vmatpush.bf16.msrb.mxu1 %v5219_v47  ;;  %v5507_v47 = vor.u32 %v7672_v33, %v5506_v32  ;;  %v5295_v54 = vor.u32 %v7615_v45, %v5292_v46  ;;  %v7543_v32 = vld [vmem:[#allocation8 + $0x9c] sm:$0xf]  ;;  %v5004_v33 = vld [vmem:[#allocation8 + $0xb0] sm:$0xf0]  ;;  %v7780_v45 = vld [vmem:[#allocation8 + $0x7fc] sm:$0xf0] }
  0x88   :  { %2348 = vmatpush.bf16.msrb.mxu2 %v5411_v48  ;;  %v5867_v48 = vor.u32 %v7762_v36, %v5866_v34  ;;  %v7591_v34 = vld [vmem:[#allocation8 + $0x21c] sm:$0xf]  ;;  %v5196_v36 = vld [vmem:[#allocation8 + $0x230] sm:$0xf0]  ;;  %v5007_v40 = vor.u32 %v7543_v32, %v5004_v33  ;;  %v7537_v46 = vld [vmem:[#allocation8 + $0x6c] sm:$0xf] }
  0x89   :  { %2362 = vmatpush.bf16.msrb.mxu3 %v5603_v52  ;;  %v7756_v52 = vld [vmem:[#allocation8 + $0x73c] sm:$0xf0]  ;;  %v5652_v33 = vld [vmem:[#allocation8 + $0x5c0] sm:$0xf0] }
  0x8a   :  { %2321 = vmatpush.bf16.msrb.mxu0 %v5003_v59  ;;  %v7609_v59 = vld [vmem:[#allocation8 + $0x2ac] sm:$0xf] }
  0x8b   :  { %2335 = vmatpush.bf16.msrb.mxu1 %v5195_v60  ;;  %v5268_v60 = vld [vmem:[#allocation8 + $0x2c0] sm:$0xf0] }
  0x8c   :  { %2349 = vmatpush.bf16.msrb.mxu2 %v5387_v61  ;;  %v5843_v61 = vor.u32 %v7756_v52, %v5842_v51  ;;  %v5271_v3 = vor.u32 %v7609_v59, %v5268_v60  ;;  %v7531_v59 = vld [vmem:[#allocation8 + $0x3c] sm:$0xf]  ;;  %v4956_v60 = vld [vmem:[#allocation8 + $0x50] sm:$0xf0] }
  0x8d   :  { %2363 = vmatpush.bf16.msrb.mxu3 %v5579_v1  ;;  %v7750_v1 = vld [vmem:[#allocation8 + $0x70c] sm:$0xf0] }
  0x8e   :  { %2322 = vmatpush.bf16.msrb.mxu0 %v4979_v8  ;;  %v7603_v8 = vld [vmem:[#allocation8 + $0x27c] sm:$0xf] }
  0x8f   :  { %2336 = vmatpush.bf16.msrb.mxu1 %v5171_v9  ;;  %v5244_v9 = vld [vmem:[#allocation8 + $0x290] sm:$0xf0] }
  0x90   :  { %2350 = vmatpush.bf16.msrb.mxu2 %v5363_v10  ;;  %v5819_v10 = vor.u32 %v7750_v1, %v5818_v0  ;;  %v5247_v17 = vor.u32 %v7603_v8, %v5244_v9  ;;  %v5698_v0 = vld [vmem:[#allocation8 + $0x608] sm:$0xf]  ;;  %v7720_v1 = vld [vmem:[#allocation8 + $0x61c] sm:$0xf0]  ;;  %v4932_v9 = vld [vmem:[#allocation8 + $0x20] sm:$0xf0] }
  0x91   :  { %2364 = vmatpush.bf16.msrb.mxu3 %v5555_v15  ;;  %v7744_v15 = vld [vmem:[#allocation8 + $0x6dc] sm:$0xf0] }
  0x92   :  { %2323 = vmatpush.bf16.msrb.mxu0 %v4955_v21  ;;  %v7597_v21 = vld [vmem:[#allocation8 + $0x24c] sm:$0xf]  ;;  %v5795_v24 = vor.u32 %v7744_v15, %v5794_v14  ;;  %v5484_v14 = vld [vmem:[#allocation8 + $0x470] sm:$0xf0]  ;;  %v7711_v15 = vld [vmem:[#allocation8 + $0x5dc] sm:$0xf] }
  0x93   :  { %2337 = vmatpush.bf16.msrb.mxu1 %v5147_v25  ;;  %v5987_v25 = vor.u32 %v7792_v18, %v5986_v16  ;;  %v5699_v16 = vor.u32 %v7720_v1, %v5698_v0  ;;  %v7759_v18 = vld [vmem:[#allocation8 + $0x75c] sm:$0xf]  ;;  %v5988_v0 = vld [vmem:[#allocation8 + $0x860] sm:$0xf0] }
  0x94   :  { %2351 = vmatpush.bf16.msrb.mxu2 %v5339_v26  ;;  %v5031_v26 = vor.u32 %v7549_v19, %v5028_v20  ;;  %v5868_v19 = vld [vmem:[#allocation8 + $0x770] sm:$0xf0]  ;;  %v5891_v20 = vor.u32 %v7768_v6, %v5890_v4  ;;  %v7639_v4 = vld [vmem:[#allocation8 + $0x39c] sm:$0xf] }
  0x95   :  { %2365 = vmatpush.bf16.msrb.mxu3 %v5531_v30  ;;  %v5223_v30 = vor.u32 %v7597_v21, %v5220_v22  ;;  %v4935_v21 = vor.u32 %v7525_v7, %v4932_v9  ;;  %v7807_v22 = vld [vmem:[#allocation8 + $0x8dc] sm:$0xf]  ;;  %v5871_v28 = vor.u32 %v7759_v18, %v5868_v19  ;;  %v5388_v6 = vld [vmem:[#allocation8 + $0x3b0] sm:$0xf0] }
  0x96   :  { %2324 = vmatpush.bf16.msrb.mxu0 %v4931_v38  ;;  %v5963_v38 = vor.u32 %v7786_v31, %v5962_v29  ;;  %v7657_v29 = vld [vmem:[#allocation8 + $0x42c] sm:$0xf]  ;;  %v7687_v7 = vld [vmem:[#allocation8 + $0x51c] sm:$0xf]  ;;  %v5580_v9 = vld [vmem:[#allocation8 + $0x530] sm:$0xf0] }
  0x97   :  { %2338 = vmatpush.bf16.msrb.mxu1 %v5123_v43  ;;  %v5938_v43 = vld [vmem:[#allocation8 + $0x7e8] sm:$0xf]  ;;  %v7705_v31 = vld [vmem:[#allocation8 + $0x5ac] sm:$0xf]  ;;  %v5583_v19 = vor.u32 %v7687_v7, %v5580_v9  ;;  %v7715_v9 = vld [vmem:[#allocation8 + $0x5f4] sm:$0xf0] }
  0x98   :  { %2352 = vmatpush.bf16.msrb.mxu2 %v5315_v44  ;;  %v5199_v44 = vor.u32 %v7591_v34, %v5196_v36  ;;  %v5939_v51 = vor.u32 %v7780_v45, %v5938_v43  ;;  %v7753_v34 = vld [vmem:[#allocation8 + $0x72c] sm:$0xf]  ;;  %v5844_v36 = vld [vmem:[#allocation8 + $0x740] sm:$0xf0]  ;;  %v7651_v43 = vld [vmem:[#allocation8 + $0x3fc] sm:$0xf] }
  0x99   :  { %2366 = vmatpush.bf16.msrb.mxu3 %v5507_v47  ;;  %2325 = vmatmul.bf16.vlgmr.msrb.gmra.mxu0 %v8108_v58  ;;  %v4980_v47 = vld [vmem:[#allocation8 + $0x80] sm:$0xf0]  ;;  %v7699_v45 = vld [vmem:[#allocation8 + $0x57c] sm:$0xf] }
  0x9a   :  { %2373 = vmatpush.bf16.msra.mxu0 %v5867_v48  ;;  %2339 = vmatmul.bf16.vlgmr.msrb.gmra.mxu1 %v8111_v5  ;;  %v7585_v48 = vld [vmem:[#allocation8 + $0x1ec] sm:$0xf]  ;;  %v4983_v52 = vor.u32 %v7537_v46, %v4980_v47  ;;  %v5628_v47 = vld [vmem:[#allocation8 + $0x590] sm:$0xf0] }
  0x9b   :  { %2387 = vmatpush.bf16.msra.mxu1 %v6059_v49  ;;  %2353 = vmatmul.bf16.vlgmr.msrb.gmra.mxu2 %v8113_v11  ;;  %v5172_v49 = vld [vmem:[#allocation8 + $0x200] sm:$0xf0] }
  0x9c   :  { %2401 = vmatpush.bf16.msra.mxu2 %v5103_v50  ;;  %2367 = vmatmul.bf16.vlgmr.msrb.gmra.mxu3 %v8117_v23  ;;  %v5747_v50 = vor.u32 %v7732_v42, %v5746_v41  ;;  %v5175_v56 = vor.u32 %v7585_v48, %v5172_v49  ;;  %v5655_v41 = vor.u32 %v7705_v31, %v5652_v33  ;;  %v7747_v48 = vld [vmem:[#allocation8 + $0x6fc] sm:$0xf]  ;;  %v5820_v49 = vld [vmem:[#allocation8 + $0x710] sm:$0xf0] }
  0x9d   :  { %2415 = vmatpush.bf16.msra.mxu3 %v5295_v54  ;;  %v7726_v54 = vld [vmem:[#allocation8 + $0x64c] sm:$0xf0]  ;;  %v5847_v42 = vor.u32 %v7753_v34, %v5844_v36  ;;  %v7627_v34 = vld [vmem:[#allocation8 + $0x33c] sm:$0xf]  ;;  %v5340_v36 = vld [vmem:[#allocation8 + $0x350] sm:$0xf0] }
  0x9e   :  { %2374 = vmatpush.bf16.msra.mxu0 %v5843_v61  ;;  %v7579_v61 = vld [vmem:[#allocation8 + $0x1bc] sm:$0xf] }
  0x9f   :  { %2388 = vmatpush.bf16.msra.mxu1 %v6035_v62  ;;  %v5148_v62 = vld [vmem:[#allocation8 + $0x1d0] sm:$0xf0] }
  0xa0   :  { %2402 = vmatpush.bf16.msra.mxu2 %v5079_v63  ;;  %v5723_v63 = vor.u32 %v7726_v54, %v5722_v53  ;;  %v5151_v8 = vor.u32 %v7579_v61, %v5148_v62  ;;  %v5631_v53 = vor.u32 %v7699_v45, %v5628_v47  ;;  %v5823_v54 = vor.u32 %v7747_v48, %v5820_v49  ;;  %v7741_v61 = vld [vmem:[#allocation8 + $0x6cc] sm:$0xf]  ;;  %v5796_v62 = vld [vmem:[#allocation8 + $0x6e0] sm:$0xf0]  ;;  %v5916_v45 = vld [vmem:[#allocation8 + $0x7d0] sm:$0xf0] }
  0xa1   :  { %2416 = vmatpush.bf16.msra.mxu3 %v5271_v3  ;;  %v4959_v3 = vor.u32 %v7531_v59, %v4956_v60  ;;  %v5604_v60 = vld [vmem:[#allocation8 + $0x560] sm:$0xf0]  ;;  %v5343_v47 = vor.u32 %v7627_v34, %v5340_v36  ;;  %v7621_v48 = vld [vmem:[#allocation8 + $0x30c] sm:$0xf]  ;;  %v7607_v34 = vld [vmem:[#allocation8 + $0x294] sm:$0xf0] }
  0xa2   :  { %2375 = vmatpush.bf16.msra.mxu0 %v5819_v10  ;;  %v7573_v10 = vld [vmem:[#allocation8 + $0x18c] sm:$0xf]  ;;  %v5316_v49 = vld [vmem:[#allocation8 + $0x320] sm:$0xf0]  ;;  %v5442_v36 = vld [vmem:[#allocation8 + $0x400] sm:$0xf] }
  0xa3   :  { %2389 = vmatpush.bf16.msra.mxu1 %v6011_v12  ;;  %v5124_v12 = vld [vmem:[#allocation8 + $0x1a0] sm:$0xf0] }
  0xa4   :  { %2403 = vmatpush.bf16.msra.mxu2 %v5055_v13  ;;  %v7663_v13 = vld [vmem:[#allocation8 + $0x45c] sm:$0xf] }
  0xa5   :  { %2417 = vmatpush.bf16.msra.mxu3 %v5247_v17  ;;  %v5676_v17 = vld [vmem:[#allocation8 + $0x5f0] sm:$0xf0] }
  0xa6   :  { %2376 = vmatpush.bf16.msra.mxu0 %v5795_v24  ;;  %v6060_v24 = vld [vmem:[#allocation8 + $0x8f0] sm:$0xf0]  ;;  %v5679_v27 = vor.u32 %v7711_v15, %v5676_v17  ;;  %v5391_v17 = vor.u32 %v7639_v4, %v5388_v6  ;;  %v7667_v4 = vld [vmem:[#allocation8 + $0x474] sm:$0xf0] }
  0xa7   :  { %2390 = vmatpush.bf16.msra.mxu1 %v5987_v25  ;;  %v5127_v25 = vor.u32 %v7573_v10, %v5124_v12  ;;  %v6063_v32 = vor.u32 %v7807_v22, %v6060_v24  ;;  %v7735_v10 = vld [vmem:[#allocation8 + $0x69c] sm:$0xf]  ;;  %v5772_v12 = vld [vmem:[#allocation8 + $0x6b0] sm:$0xf0]  ;;  %v5364_v22 = vld [vmem:[#allocation8 + $0x380] sm:$0xf0] }
  0xa8   :  { %2404 = vmatpush.bf16.msra.mxu2 %v5031_v26  ;;  %v5487_v26 = vor.u32 %v7663_v13, %v5484_v14  ;;  %v7783_v13 = vld [vmem:[#allocation8 + $0x81c] sm:$0xf]  ;;  %v5964_v14 = vld [vmem:[#allocation8 + $0x830] sm:$0xf0]  ;;  %v7681_v24 = vld [vmem:[#allocation8 + $0x4ec] sm:$0xf] }
  0xa9   :  { %2418 = vmatpush.bf16.msra.mxu3 %v5223_v30  ;;  %v5460_v30 = vld [vmem:[#allocation8 + $0x440] sm:$0xf0] }
  0xaa   :  { %2377 = vmatpush.bf16.msra.mxu0 %v5771_v37  ;;  %v7801_v37 = vld [vmem:[#allocation8 + $0x8ac] sm:$0xf] }
  0xab   :  { %2391 = vmatpush.bf16.msra.mxu1 %v5963_v38  ;;  %v6036_v38 = vld [vmem:[#allocation8 + $0x8c0] sm:$0xf0] }
  0xac   :  { %2405 = vmatpush.bf16.msra.mxu2 %v5007_v40  ;;  %v5463_v40 = vor.u32 %v7657_v29, %v5460_v30  ;;  %v6039_v46 = vor.u32 %v7801_v37, %v6036_v38  ;;  %v7777_v29 = vld [vmem:[#allocation8 + $0x7ec] sm:$0xf]  ;;  %v5940_v30 = vld [vmem:[#allocation8 + $0x800] sm:$0xf0]  ;;  %v7675_v37 = vld [vmem:[#allocation8 + $0x4bc] sm:$0xf] }
  0xad   :  { %2419 = vmatpush.bf16.msra.mxu3 %v5199_v44  ;;  %v5436_v44 = vld [vmem:[#allocation8 + $0x410] sm:$0xf0]  ;;  %v5943_v38 = vor.u32 %v7777_v29, %v5940_v30  ;;  %v5058_v30 = vld [vmem:[#allocation8 + $0x100] sm:$0xf] }
  0xae   :  { %2378 = vmatpush.bf16.msra.mxu0 %v5747_v50  ;;  %v7795_v50 = vld [vmem:[#allocation8 + $0x87c] sm:$0xf] }
  0xaf   :  { %2392 = vmatpush.bf16.msra.mxu1 %v5939_v51  ;;  %v6012_v51 = vld [vmem:[#allocation8 + $0x890] sm:$0xf0] }
  0xb0   :  { %2406 = vmatpush.bf16.msra.mxu2 %v4983_v52  ;;  %v5439_v52 = vor.u32 %v7651_v43, %v5436_v44  ;;  %v6015_v59 = vor.u32 %v7795_v50, %v6012_v51  ;;  %v7771_v44 = vld [vmem:[#allocation8 + $0x7bc] sm:$0xf] }
  0xb1   :  { %2420 = vmatpush.bf16.msra.mxu3 %v5175_v56  ;;  %v5412_v56 = vld [vmem:[#allocation8 + $0x3e0] sm:$0xf0] }
  0xb2   :  { %2379 = vmatpush.bf16.msra.mxu0 %v5723_v63  ;;  %v7789_v63 = vld [vmem:[#allocation8 + $0x84c] sm:$0xf]  ;;  %v5415_v1 = vor.u32 %v7645_v55, %v5412_v56  ;;  %v5919_v55 = vor.u32 %v7771_v44, %v5916_v45  ;;  %v5700_v56 = vld [vmem:[#allocation8 + $0x620] sm:$0xf0]  ;;  %v5034_v44 = vld [vmem:[#allocation8 + $0xd0] sm:$0xf] }
  0xb3   :  { %2393 = vmatpush.bf16.msra.mxu1 %v5915_v2  ;;  %v5607_v2 = vor.u32 %v7693_v57, %v5604_v60  ;;  %v7765_v57 = vld [vmem:[#allocation8 + $0x78c] sm:$0xf]  ;;  %v7553_v45 = vld [vmem:[#allocation8 + $0xe4] sm:$0xf0] }
  0xb4   :  { %2407 = vmatpush.bf16.msra.mxu2 %v4959_v3  ;;  %v5799_v3 = vor.u32 %v7741_v61, %v5796_v62  ;;  %v5106_v61 = vld [vmem:[#allocation8 + $0x160] sm:$0xf]  ;;  %v7571_v62 = vld [vmem:[#allocation8 + $0x174] sm:$0xf0] }
  0xb5   :  { %2421 = vmatpush.bf16.msra.mxu3 %v5151_v8  ;;  %v5991_v8 = vor.u32 %v7789_v63, %v5988_v0  ;;  %v5298_v63 = vld [vmem:[#allocation8 + $0x2e0] sm:$0xf] }
  0xb6   :  { %2380 = vmatpush.bf16.msra.mxu0 %v5699_v16  ;;  %v2158_v15 = vpop.f32.mrf.mxu0 }
  0xb7   :  { %2394 = vmatpush.bf16.msra.mxu1 %v5891_v20  ;;  %v2172_v16 = vpop.f32.mrf.mxu1  ;;  %v5775_v20 = vor.u32 %v7735_v10, %v5772_v12  ;;  %v5107_v12 = vor.u32 %v7571_v62, %v5106_v61  ;;  %v5010_v62 = vld [vmem:[#allocation8 + $0xa0] sm:$0xf] }
  0xb8   :  { %2408 = vmatpush.bf16.msra.mxu2 %v4935_v21  ;;  %v2173_v18 = vadd.f32 %v2172_v16, %v2158_v15  ;;  %v7633_v21 = vld [vmem:[#allocation8 + $0x36c] sm:$0xf]  ;;  %v5082_v16 = vld [vmem:[#allocation8 + $0x130] sm:$0xf] }
  0xb9   :  { %2422 = vmatpush.bf16.msra.mxu3 %v5127_v25  ;;  %2381 = vmatmul.bf16.vlgmr.msra.gmra.mxu0 %v8120_v35  ;;  %v5967_v25 = vor.u32 %v7783_v13, %v5964_v14  ;;  %v5367_v31 = vor.u32 %v7633_v21, %v5364_v22  ;;  %v5466_v21 = vld [vmem:[#allocation8 + $0x430] sm:$0xf]  ;;  %v7661_v22 = vld [vmem:[#allocation8 + $0x444] sm:$0xf0] }
  0xba   :  { %2429 = vmatpush.bf16.msrb.mxu0 %v5487_v26  ;;  %2395 = vmatmul.bf16.vlgmr.msra.gmra.mxu1 %v8122_v39  ;;  %v5556_v26 = vld [vmem:[#allocation8 + $0x500] sm:$0xf0]  ;;  %v5467_v29 = vor.u32 %v7661_v22, %v5466_v21  ;;  %v5562_v21 = vld [vmem:[#allocation8 + $0x4f0] sm:$0xf]  ;;  %v7685_v22 = vld [vmem:[#allocation8 + $0x504] sm:$0xf0] }
  0xbb   :  { %2443 = vmatpush.bf16.msrb.mxu1 %v5679_v27  ;;  %2409 = vmatmul.bf16.vlgmr.msra.gmra.mxu2 %v8108_v58  ;;  %v7729_v27 = vld [vmem:[#allocation8 + $0x66c] sm:$0xf] }
  0xbc   :  { %2457 = vmatpush.bf16.msrb.mxu2 %v5871_v28  ;;  %2423 = vmatmul.bf16.vlgmr.msra.gmra.mxu3 %v8111_v5  ;;  %v5748_v28 = vld [vmem:[#allocation8 + $0x680] sm:$0xf0] }
  0xbd   :  { %2471 = vmatpush.bf16.msrb.mxu3 %v6063_v32  ;;  %v5559_v32 = vor.u32 %v7681_v24, %v5556_v26  ;;  %v5751_v33 = vor.u32 %v7729_v27, %v5748_v28  ;;  %v5658_v24 = vld [vmem:[#allocation8 + $0x5b0] sm:$0xf] }
  0xbe   :  { %2430 = vmatpush.bf16.msrb.mxu0 %v5463_v40  ;;  %v5532_v40 = vld [vmem:[#allocation8 + $0x4d0] sm:$0xf0]  ;;  %v2186_v43 = vpop.f32.mrf.mxu2  ;;  %v8142_v15 = vpop.f32.mrf.mxu0 }
  0xbf   :  { %2444 = vmatpush.bf16.msrb.mxu1 %v5655_v41  ;;  %v7723_v41 = vld [vmem:[#allocation8 + $0x63c] sm:$0xf]  ;;  %v5535_v50 = vor.u32 %v7675_v37, %v5532_v40  ;;  %v2200_v60 = vpop.f32.mrf.mxu3  ;;  %v8144_v26 = vpop.f32.mrf.mxu1  ;;  %v7655_v37 = vld [vmem:[#allocation8 + $0x414] sm:$0xf0] }
  0xc0   :  { %2458 = vmatpush.bf16.msrb.mxu2 %v5847_v42  ;;  %v5724_v42 = vld [vmem:[#allocation8 + $0x650] sm:$0xf0]  ;;  %v7703_v40 = vld [vmem:[#allocation8 + $0x594] sm:$0xf0] }
  0xc1   :  { %2472 = vmatpush.bf16.msrb.mxu3 %v6039_v46  ;;  %v2187_v46 = vadd.f32 %v2186_v43, %v2173_v18  ;;  %v5727_v51 = vor.u32 %v7723_v41, %v5724_v42  ;;  %v5274_v18 = vld [vmem:[#allocation8 + $0x2b0] sm:$0xf]  ;;  %v5443_v43 = vor.u32 %v7655_v37, %v5442_v36  ;;  %v7583_v36 = vld [vmem:[#allocation8 + $0x1d4] sm:$0xf0]  ;;  %v5346_v37 = vld [vmem:[#allocation8 + $0x340] sm:$0xf] }
  0xc2   :  { %2431 = vmatpush.bf16.msrb.mxu0 %v5439_v52  ;;  %v7669_v52 = vld [vmem:[#allocation8 + $0x48c] sm:$0xf] }
  0xc3   :  { %2445 = vmatpush.bf16.msrb.mxu1 %v5631_v53  ;;  %v5508_v53 = vld [vmem:[#allocation8 + $0x4a0] sm:$0xf0]  ;;  %v8140_v0 = vadd.f32 %v2200_v60, %v2187_v46  ;;  %v5226_v46 = vld [vmem:[#allocation8 + $0x250] sm:$0xf] }
  0xc4   :  { %2459 = vmatpush.bf16.msrb.mxu2 %v5823_v54  ;;  %v7717_v54 = vld [vmem:[#allocation8 + $0x60c] sm:$0xf]  ;;  %v5511_v6 = vor.u32 %v7669_v52, %v5508_v53  ;;  %v5610_v53 = vld [vmem:[#allocation8 + $0x550] sm:$0xf] }
  0xc5   :  { %2473 = vmatpush.bf16.msrb.mxu3 %v6015_v59  ;;  %v5892_v59 = vld [vmem:[#allocation8 + $0x7a0] sm:$0xf0]  ;;  %v5703_v7 = vor.u32 %v7717_v54, %v5700_v56  ;;  %v7697_v54 = vld [vmem:[#allocation8 + $0x564] sm:$0xf0] }
  0xc6   :  { %2432 = vmatpush.bf16.msrb.mxu0 %v5415_v1  ;;  %v5319_v1 = vor.u32 %v7621_v48, %v5316_v49  ;;  %v5895_v10 = vor.u32 %v7765_v57, %v5892_v59  ;;  %v7601_v48 = vld [vmem:[#allocation8 + $0x264] sm:$0xf0]  ;;  %v5418_v49 = vld [vmem:[#allocation8 + $0x3d0] sm:$0xf]  ;;  %v5035_v57 = vor.u32 %v7553_v45, %v5034_v44 }
  0xc7   :  { %2446 = vmatpush.bf16.msrb.mxu1 %v5607_v2  ;;  %v7619_v2 = vld [vmem:[#allocation8 + $0x2f4] sm:$0xf0]  ;;  %v5227_v59 = vor.u32 %v7601_v48, %v5226_v46  ;;  %v7529_v44 = vld [vmem:[#allocation8 + $0x24] sm:$0xf0] }
  0xc8   :  { %2460 = vmatpush.bf16.msrb.mxu2 %v5799_v3  ;;  %v5490_v3 = vld [vmem:[#allocation8 + $0x460] sm:$0xf]  ;;  %v5299_v13 = vor.u32 %v7619_v2, %v5298_v63  ;;  %v7547_v63 = vld [vmem:[#allocation8 + $0xb4] sm:$0xf0]  ;;  %v5611_v2 = vor.u32 %v7697_v54, %v5610_v53  ;;  %v7577_v48 = vld [vmem:[#allocation8 + $0x1a4] sm:$0xf0] }
  0xc9   :  { %2474 = vmatpush.bf16.msrb.mxu3 %v5991_v8  ;;  %v5682_v8 = vld [vmem:[#allocation8 + $0x5e0] sm:$0xf]  ;;  %v5491_v14 = vor.u32 %v7667_v4, %v5490_v3  ;;  %v7595_v4 = vld [vmem:[#allocation8 + $0x234] sm:$0xf0]  ;;  %v5514_v53 = vld [vmem:[#allocation8 + $0x490] sm:$0xf] }
  0xca   :  { %2433 = vmatpush.bf16.msrb.mxu0 %v5391_v17  ;;  %v7565_v17 = vld [vmem:[#allocation8 + $0x144] sm:$0xf0] }
  0xcb   :  { %2447 = vmatpush.bf16.msrb.mxu1 %v5583_v19  ;;  %v5683_v19 = vor.u32 %v7715_v9, %v5682_v8  ;;  %v5083_v27 = vor.u32 %v7565_v17, %v5082_v16  ;;  %v5586_v8 = vld [vmem:[#allocation8 + $0x520] sm:$0xf]  ;;  %v7691_v9 = vld [vmem:[#allocation8 + $0x534] sm:$0xf0]  ;;  %v5178_v16 = vld [vmem:[#allocation8 + $0x1f0] sm:$0xf] }
  0xcc   :  { %2461 = vmatpush.bf16.msrb.mxu2 %v5775_v20  ;;  %v7613_v20 = vld [vmem:[#allocation8 + $0x2c4] sm:$0xf0]  ;;  %v5587_v17 = vor.u32 %v7691_v9, %v5586_v8 }
  0xcd   :  { %2475 = vmatpush.bf16.msrb.mxu3 %v5967_v25  ;;  %v7709_v25 = vld [vmem:[#allocation8 + $0x5c4] sm:$0xf0]  ;;  %v5275_v28 = vor.u32 %v7613_v20, %v5274_v18 }
  0xce   :  { %2434 = vmatpush.bf16.msrb.mxu0 %v5367_v31  ;;  %v7559_v31 = vld [vmem:[#allocation8 + $0x114] sm:$0xf0]  ;;  %v7589_v18 = vld [vmem:[#allocation8 + $0x204] sm:$0xf0] }
  0xcf   :  { %2448 = vmatpush.bf16.msrb.mxu1 %v5559_v32  ;;  %v5250_v32 = vld [vmem:[#allocation8 + $0x280] sm:$0xf]  ;;  %v5059_v41 = vor.u32 %v7559_v31, %v5058_v30  ;;  %v7637_v20 = vld [vmem:[#allocation8 + $0x384] sm:$0xf0] }
  0xd0   :  { %2462 = vmatpush.bf16.msrb.mxu2 %v5751_v33  ;;  %v5659_v33 = vor.u32 %v7709_v25, %v5658_v24  ;;  %v5251_v42 = vor.u32 %v7607_v34, %v5250_v32  ;;  %v4962_v31 = vld [vmem:[#allocation8 + $0x40] sm:$0xf]  ;;  %v7535_v32 = vld [vmem:[#allocation8 + $0x54] sm:$0xf0]  ;;  %v5563_v34 = vor.u32 %v7685_v22, %v5562_v21  ;;  %v7673_v54 = vld [vmem:[#allocation8 + $0x4a4] sm:$0xf0] }
  0xd1   :  { %2476 = vmatpush.bf16.msrb.mxu3 %v5943_v38  ;;  %v5634_v38 = vld [vmem:[#allocation8 + $0x580] sm:$0xf]  ;;  %v5276_v21 = vld [vmem:[#allocation8 + $0x2c8] sm:$0xf0] }
  0xd2   :  { %2435 = vmatpush.bf16.msrb.mxu0 %v5343_v47  ;;  %v5635_v47 = vor.u32 %v7703_v40, %v5634_v38  ;;  %v7631_v38 = vld [vmem:[#allocation8 + $0x354] sm:$0xf0]  ;;  %v5538_v40 = vld [vmem:[#allocation8 + $0x4c0] sm:$0xf] }
  0xd3   :  { %2449 = vmatpush.bf16.msrb.mxu1 %v5535_v50  ;;  %v7649_v50 = vld [vmem:[#allocation8 + $0x3e4] sm:$0xf0]  ;;  %v5347_v46 = vor.u32 %v7631_v38, %v5346_v37  ;;  %v7604_v37 = vld [vmem:[#allocation8 + $0x284] sm:$0xf]  ;;  %v5252_v38 = vld [vmem:[#allocation8 + $0x298] sm:$0xf0] }
  0xd4   :  { %2463 = vmatpush.bf16.msrb.mxu2 %v5727_v51  ;;  %v8150_v51 = vpop.f32.mrf.mxu2  ;;  %v5419_v60 = vor.u32 %v7649_v50, %v5418_v49  ;;  %v5322_v49 = vld [vmem:[#allocation8 + $0x310] sm:$0xf] }
  0xd5   :  { %2477 = vmatpush.bf16.msrb.mxu3 %v5919_v55  ;;  %v8152_v55 = vpop.f32.mrf.mxu3 }
  0xd6   :  { %2436 = vmatpush.bf16.msrb.mxu0 %v5319_v1  ;;  %v2214_v52 = vpop.f32.mrf.mxu0  ;;  %v5202_v1 = vld [vmem:[#allocation8 + $0x220] sm:$0xf] }
  0xd7   :  { %2450 = vmatpush.bf16.msrb.mxu1 %v5511_v6  ;;  %v2215_v56 = vadd.f32 %v2214_v52, %v8140_v0  ;;  %v2228_v61 = vpop.f32.mrf.mxu1  ;;  %v5394_v6 = vld [vmem:[#allocation8 + $0x3a0] sm:$0xf]  ;;  %v5011_v0 = vor.u32 %v7547_v63, %v5010_v62  ;;  %v7625_v52 = vld [vmem:[#allocation8 + $0x324] sm:$0xf0]  ;;  %v7568_v62 = vld [vmem:[#allocation8 + $0x164] sm:$0xf] }
  0xd8   :  { %2464 = vmatpush.bf16.msrb.mxu2 %v5703_v7  ;;  %v7643_v7 = vld [vmem:[#allocation8 + $0x3b4] sm:$0xf0]  ;;  %v5108_v63 = vld [vmem:[#allocation8 + $0x178] sm:$0xf0] }
  0xd9   :  { %2478 = vmatpush.bf16.msrb.mxu3 %v5895_v10  ;;  %2437 = vmatmul.bf16.vlgmr.msrb.gmra.mxu0 %v8113_v11  ;;  %v8155_v3 = vadd.f32 %v2228_v61, %v2215_v56  ;;  %v5203_v10 = vor.u32 %v7595_v4, %v5202_v1  ;;  %v5874_v56 = vld [vmem:[#allocation8 + $0x760] sm:$0xf]  ;;  %v7811_v61 = vld [vmem:[#allocation8 + $0x8f4] sm:$0xf0]  ;;  %v7616_v4 = vld [vmem:[#allocation8 + $0x2e4] sm:$0xf] }
  0xda   :  { %2485 = vmatpush.bf16.msra.mxu0 %v5107_v12  ;;  %2451 = vmatmul.bf16.vlgmr.msrb.gmra.mxu1 %v8117_v23  ;;  %v5395_v12 = vor.u32 %v7643_v7, %v5394_v6  ;;  %v5300_v6 = vld [vmem:[#allocation8 + $0x2f8] sm:$0xf0]  ;;  %v5515_v7 = vor.u32 %v7673_v54, %v5514_v53  ;;  %v7598_v54 = vld [vmem:[#allocation8 + $0x254] sm:$0xf] }
  0xdb   :  { %2499 = vmatpush.bf16.msra.mxu1 %v5299_v13  ;;  %2465 = vmatmul.bf16.vlgmr.msrb.gmra.mxu2 %v8120_v35  ;;  %v4986_v13 = vld [vmem:[#allocation8 + $0x70] sm:$0xf] }
  0xdc   :  { %2513 = vmatpush.bf16.msra.mxu2 %v5491_v14  ;;  %2479 = vmatmul.bf16.vlgmr.msrb.gmra.mxu3 %v8122_v39  ;;  %v7541_v14 = vld [vmem:[#allocation8 + $0x84] sm:$0xf0] }
  0xdd   :  { %2527 = vmatpush.bf16.msra.mxu3 %v5683_v19  ;;  %v5370_v19 = vld [vmem:[#allocation8 + $0x370] sm:$0xf] }
  0xde   :  { %2486 = vmatpush.bf16.msra.mxu0 %v5083_v27  ;;  %v2242_v24 = vpop.f32.mrf.mxu2  ;;  %v4987_v27 = vor.u32 %v7541_v14, %v4986_v13  ;;  %v5371_v30 = vor.u32 %v7637_v20, %v5370_v19  ;;  %v6042_v13 = vld [vmem:[#allocation8 + $0x8b0] sm:$0xf]  ;;  %v5303_v14 = vor.u32 %v7616_v4, %v5300_v6  ;;  %v8159_v19 = vpop.f32.mrf.mxu0  ;;  %v7610_v20 = vld [vmem:[#allocation8 + $0x2b4] sm:$0xf] }
  0xdf   :  { %2500 = vmatpush.bf16.msra.mxu1 %v5275_v28  ;;  %v2256_v25 = vpop.f32.mrf.mxu3 }
  0xe0   :  { %2514 = vmatpush.bf16.msra.mxu2 %v5467_v29  ;;  %v8157_v28 = vadd.f32 %v2256_v25, %v2242_v24  ;;  %v5179_v29 = vor.u32 %v7589_v18, %v5178_v16  ;;  %v7805_v16 = vld [vmem:[#allocation8 + $0x8c4] sm:$0xf0]  ;;  %v5084_v18 = vld [vmem:[#allocation8 + $0x148] sm:$0xf0]  ;;  %v8161_v24 = vpop.f32.mrf.mxu1 }
  0xe1   :  { %2528 = vmatpush.bf16.msra.mxu3 %v5659_v33  ;;  %v5154_v33 = vld [vmem:[#allocation8 + $0x1c0] sm:$0xf]  ;;  %v6043_v25 = vor.u32 %v7805_v16, %v6042_v13  ;;  %v7733_v16 = vld [vmem:[#allocation8 + $0x684] sm:$0xf0] }
  0xe2   :  { %2487 = vmatpush.bf16.msra.mxu0 %v5059_v41  ;;  %v7679_v41 = vld [vmem:[#allocation8 + $0x4d4] sm:$0xf0]  ;;  %v5155_v45 = vor.u32 %v7583_v36, %v5154_v33  ;;  %v5060_v36 = vld [vmem:[#allocation8 + $0x118] sm:$0xf0] }
  0xe3   :  { %2501 = vmatpush.bf16.msra.mxu1 %v5251_v42  ;;  %v4963_v42 = vor.u32 %v7535_v32, %v4962_v31  ;;  %v5539_v50 = vor.u32 %v7679_v41, %v5538_v40  ;;  %v6018_v31 = vld [vmem:[#allocation8 + $0x880] sm:$0xf]  ;;  %v5279_v32 = vor.u32 %v7610_v20, %v5276_v21  ;;  %v7799_v33 = vld [vmem:[#allocation8 + $0x894] sm:$0xf0]  ;;  %v7781_v21 = vld [vmem:[#allocation8 + $0x804] sm:$0xf0] }
  0xe4   :  { %2515 = vmatpush.bf16.msra.mxu2 %v5443_v43  ;;  %v4938_v43 = vld [vmem:[#allocation8 + $0x10] sm:$0xf] }
  0xe5   :  { %2529 = vmatpush.bf16.msra.mxu3 %v5635_v47  ;;  %v5130_v47 = vld [vmem:[#allocation8 + $0x190] sm:$0xf] }
  0xe6   :  { %2488 = vmatpush.bf16.msra.mxu0 %v5035_v57  ;;  %v7763_v57 = vld [vmem:[#allocation8 + $0x774] sm:$0xf0]  ;;  %v5131_v1 = vor.u32 %v7577_v48, %v5130_v47  ;;  %v8166_v41 = vpop.f32.mrf.mxu2  ;;  %v5255_v47 = vor.u32 %v7604_v37, %v5252_v38  ;;  %v5730_v37 = vld [vmem:[#allocation8 + $0x640] sm:$0xf] }
  0xe7   :  { %2502 = vmatpush.bf16.msra.mxu1 %v5227_v59  ;;  %v6066_v59 = vld [vmem:[#allocation8 + $0x8e0] sm:$0xf]  ;;  %v5875_v8 = vor.u32 %v7763_v57, %v5874_v56  ;;  %v8169_v48 = vpop.f32.mrf.mxu3  ;;  %v5228_v56 = vld [vmem:[#allocation8 + $0x268] sm:$0xf0]  ;;  %v7727_v38 = vld [vmem:[#allocation8 + $0x654] sm:$0xf0] }
  0xe8   :  { %2516 = vmatpush.bf16.msra.mxu2 %v5419_v60  ;;  %v4939_v60 = vor.u32 %v7529_v44, %v4938_v43  ;;  %v6067_v9 = vor.u32 %v7811_v61, %v6066_v59  ;;  %v5802_v44 = vld [vmem:[#allocation8 + $0x6d0] sm:$0xf]  ;;  %v5231_v4 = vor.u32 %v7598_v54, %v5228_v56 }
  0xe9   :  { %2530 = vmatpush.bf16.msra.mxu3 %v5611_v2  ;;  %v5323_v2 = vor.u32 %v7625_v52, %v5322_v49  ;;  %v7793_v49 = vld [vmem:[#allocation8 + $0x864] sm:$0xf0]  ;;  %v5036_v52 = vld [vmem:[#allocation8 + $0xe8] sm:$0xf0]  ;;  %v5898_v56 = vld [vmem:[#allocation8 + $0x790] sm:$0xf] }
  0xea   :  { %2489 = vmatpush.bf16.msra.mxu0 %v5011_v0  ;;  %v5111_v0 = vor.u32 %v7568_v62, %v5108_v63  ;;  %v5778_v63 = vld [vmem:[#allocation8 + $0x6a0] sm:$0xf] }
  0xeb   :  { %2503 = vmatpush.bf16.msra.mxu1 %v5203_v10  ;;  %v5850_v10 = vld [vmem:[#allocation8 + $0x730] sm:$0xf] }
  0xec   :  { %2517 = vmatpush.bf16.msra.mxu2 %v5395_v12  ;;  %v7757_v12 = vld [vmem:[#allocation8 + $0x744] sm:$0xf0] }
  0xed   :  { %2531 = vmatpush.bf16.msra.mxu3 %v5587_v17  ;;  %v7562_v17 = vld [vmem:[#allocation8 + $0x134] sm:$0xf]  ;;  %v5851_v22 = vor.u32 %v7757_v12, %v5850_v10  ;;  %v5204_v10 = vld [vmem:[#allocation8 + $0x238] sm:$0xf0] }
  0xee   :  { %2490 = vmatpush.bf16.msra.mxu0 %v4987_v27  ;;  %v5087_v27 = vor.u32 %v7562_v17, %v5084_v18  ;;  %v5946_v17 = vld [vmem:[#allocation8 + $0x7f0] sm:$0xf] }
  0xef   :  { %2504 = vmatpush.bf16.msra.mxu1 %v5179_v29  ;;  %v5826_v29 = vld [vmem:[#allocation8 + $0x700] sm:$0xf] }
  0xf0   :  { %2518 = vmatpush.bf16.msra.mxu2 %v5371_v30  ;;  %v7751_v30 = vld [vmem:[#allocation8 + $0x714] sm:$0xf0] }
  0xf1   :  { %2532 = vmatpush.bf16.msra.mxu3 %v5563_v34  ;;  %v7556_v34 = vld [vmem:[#allocation8 + $0x104] sm:$0xf]  ;;  %v5827_v40 = vor.u32 %v7751_v30, %v5826_v29  ;;  %v7586_v29 = vld [vmem:[#allocation8 + $0x1f4] sm:$0xf]  ;;  %v5180_v30 = vld [vmem:[#allocation8 + $0x208] sm:$0xf0] }
  0xf2   :  { %2491 = vmatpush.bf16.msra.mxu0 %v4963_v42  ;;  %v6019_v42 = vor.u32 %v7799_v33, %v6018_v31  ;;  %v5063_v43 = vor.u32 %v7556_v34, %v5060_v36  ;;  %v5947_v34 = vor.u32 %v7781_v21, %v5946_v17  ;;  %v7706_v21 = vld [vmem:[#allocation8 + $0x5b4] sm:$0xf] }
  0xf3   :  { %2505 = vmatpush.bf16.msra.mxu1 %v5155_v45  ;;  %v7745_v45 = vld [vmem:[#allocation8 + $0x6e4] sm:$0xf0] }
  0xf4   :  { %2519 = vmatpush.bf16.msra.mxu2 %v5347_v46  ;;  %v5994_v46 = vld [vmem:[#allocation8 + $0x850] sm:$0xf]  ;;  %v5803_v59 = vor.u32 %v7745_v45, %v5802_v44  ;;  %v7532_v44 = vld [vmem:[#allocation8 + $0x44] sm:$0xf]  ;;  %v4964_v45 = vld [vmem:[#allocation8 + $0x58] sm:$0xf0] }
  0xf5   :  { %2533 = vmatpush.bf16.msra.mxu3 %v5539_v50  ;;  %v7550_v50 = vld [vmem:[#allocation8 + $0xd4] sm:$0xf]  ;;  %v4967_v54 = vor.u32 %v7532_v44, %v4964_v45  ;;  %v5636_v45 = vld [vmem:[#allocation8 + $0x598] sm:$0xf0] }
  0xf6   :  { %2492 = vmatpush.bf16.msra.mxu0 %v4939_v60  ;;  %v2270_v53 = vpop.f32.mrf.mxu0  ;;  %v5995_v60 = vor.u32 %v7793_v49, %v5994_v46  ;;  %v5039_v61 = vor.u32 %v7550_v50, %v5036_v52  ;;  %v7580_v46 = vld [vmem:[#allocation8 + $0x1c4] sm:$0xf]  ;;  %v5731_v49 = vor.u32 %v7727_v38, %v5730_v37  ;;  %v5706_v50 = vld [vmem:[#allocation8 + $0x610] sm:$0xf]  ;;  %v7721_v52 = vld [vmem:[#allocation8 + $0x624] sm:$0xf0] }
  0xf7   :  { %2506 = vmatpush.bf16.msra.mxu1 %v5131_v1  ;;  %v2271_v57 = vadd.f32 %v2270_v53, %v8157_v28  ;;  %v2284_v62 = vpop.f32.mrf.mxu1  ;;  %v7739_v1 = vld [vmem:[#allocation8 + $0x6b4] sm:$0xf0] }
  0xf8   :  { %2520 = vmatpush.bf16.msra.mxu2 %v5323_v2  ;;  %v5970_v2 = vld [vmem:[#allocation8 + $0x820] sm:$0xf]  ;;  %v5779_v12 = vor.u32 %v7739_v1, %v5778_v63  ;;  %v5132_v63 = vld [vmem:[#allocation8 + $0x1a8] sm:$0xf0]  ;;  %v7664_v1 = vld [vmem:[#allocation8 + $0x464] sm:$0xf] }
  0xf9   :  { %2534 = vmatpush.bf16.msra.mxu3 %v5515_v7  ;;  %2493 = vmatmul.bf16.vlgmr.msra.gmra.mxu0 %v8108_v58  ;;  %v2285_v6 = vadd.f32 %v2284_v62, %v2271_v57  ;;  %v7787_v7 = vld [vmem:[#allocation8 + $0x834] sm:$0xf0]  ;;  %v7769_v57 = vld [vmem:[#allocation8 + $0x7a4] sm:$0xf0]  ;;  %v7574_v62 = vld [vmem:[#allocation8 + $0x194] sm:$0xf] }
  0xfa   :  { %2541 = vmatpush.bf16.msrb.mxu0 %v5875_v8  ;;  %2507 = vmatmul.bf16.vlgmr.msra.gmra.mxu1 %v8111_v5  ;;  %v7544_v8 = vld [vmem:[#allocation8 + $0xa4] sm:$0xf]  ;;  %v5971_v28 = vor.u32 %v7787_v7, %v5970_v2  ;;  %v5492_v2 = vld [vmem:[#allocation8 + $0x478] sm:$0xf0] }
  0xfb   :  { %2555 = vmatpush.bf16.msrb.mxu1 %v6067_v9  ;;  %2521 = vmatmul.bf16.vlgmr.msra.gmra.mxu2 %v8113_v11  ;;  %v5012_v9 = vld [vmem:[#allocation8 + $0xb8] sm:$0xf0] }
  0xfc   :  { %2569 = vmatpush.bf16.msrb.mxu2 %v5111_v0  ;;  %2535 = vmatmul.bf16.vlgmr.msra.gmra.mxu3 %v8117_v23  ;;  %v7592_v0 = vld [vmem:[#allocation8 + $0x224] sm:$0xf]  ;;  %v5015_v13 = vor.u32 %v7544_v8, %v5012_v9  ;;  %v5684_v7 = vld [vmem:[#allocation8 + $0x5f8] sm:$0xf0] }
  0xfd   :  { %2583 = vmatpush.bf16.msrb.mxu3 %v5303_v14  ;;  %v5754_v14 = vld [vmem:[#allocation8 + $0x670] sm:$0xf]  ;;  %v5207_v18 = vor.u32 %v7592_v0, %v5204_v10  ;;  %v7760_v8 = vld [vmem:[#allocation8 + $0x764] sm:$0xf]  ;;  %v5876_v9 = vld [vmem:[#allocation8 + $0x778] sm:$0xf0]  ;;  %v5899_v0 = vor.u32 %v7769_v57, %v5898_v56 }
  0xfe   :  { %2542 = vmatpush.bf16.msrb.mxu0 %v5851_v22  ;;  %v2298_v20 = vpop.f32.mrf.mxu2  ;;  %v7538_v22 = vld [vmem:[#allocation8 + $0x74] sm:$0xf]  ;;  %v5879_v17 = vor.u32 %v7760_v8, %v5876_v9  ;;  %v5420_v57 = vld [vmem:[#allocation8 + $0x3e8] sm:$0xf0] }
  0xff   :  { %2556 = vmatpush.bf16.msrb.mxu1 %v6043_v25  ;;  %v4988_v25 = vld [vmem:[#allocation8 + $0x88] sm:$0xf0]  ;;  %v2312_v31 = vpop.f32.mrf.mxu3  ;;  %v7646_v56 = vld [vmem:[#allocation8 + $0x3d4] sm:$0xf] }
 0x100   :  { %2570 = vmatpush.bf16.msrb.mxu2 %v5087_v27  ;;  %v2299_v27 = vadd.f32 %v2298_v20, %v2285_v6  ;;  %v4991_v36 = vor.u32 %v7538_v22, %v4988_v25  ;;  %v5707_v6 = vor.u32 %v7721_v52, %v5706_v50  ;;  %v5468_v20 = vld [vmem:[#allocation8 + $0x448] sm:$0xf0]  ;;  %v6020_v50 = vld [vmem:[#allocation8 + $0x898] sm:$0xf0] }
 0x101   :  { %2584 = vmatpush.bf16.msrb.mxu3 %v5279_v32  ;;  %v5755_v32 = vor.u32 %v7733_v16, %v5754_v14  ;;  %v5495_v14 = vor.u32 %v7664_v1, %v5492_v2  ;;  %v5660_v25 = vld [vmem:[#allocation8 + $0x5c8] sm:$0xf0] }
 0x102   :  { %2543 = vmatpush.bf16.msrb.mxu0 %v5827_v40  ;;  %v8172_v33 = vadd.f32 %v2312_v31, %v2299_v27  ;;  %v5922_v40 = vld [vmem:[#allocation8 + $0x7c0] sm:$0xf]  ;;  %v7754_v27 = vld [vmem:[#allocation8 + $0x734] sm:$0xf]  ;;  %v6044_v31 = vld [vmem:[#allocation8 + $0x8c8] sm:$0xf0]  ;;  %v5663_v37 = vor.u32 %v7706_v21, %v5660_v25 }
 0x103   :  { %2557 = vmatpush.bf16.msrb.mxu1 %v6019_v42  ;;  %v5183_v42 = vor.u32 %v7586_v29, %v5180_v30  ;;  %v5852_v29 = vld [vmem:[#allocation8 + $0x748] sm:$0xf0]  ;;  %v7802_v30 = vld [vmem:[#allocation8 + $0x8b4] sm:$0xf] }
 0x104   :  { %2571 = vmatpush.bf16.msrb.mxu2 %v5063_v43  ;;  %v7775_v43 = vld [vmem:[#allocation8 + $0x7d4] sm:$0xf0]  ;;  %v5855_v38 = vor.u32 %v7754_v27, %v5852_v29  ;;  %v6047_v44 = vor.u32 %v7802_v30, %v6044_v31  ;;  %v5804_v1 = vld [vmem:[#allocation8 + $0x6e8] sm:$0xf0]  ;;  %v7634_v27 = vld [vmem:[#allocation8 + $0x374] sm:$0xf] }
 0x105   :  { %2585 = vmatpush.bf16.msrb.mxu3 %v5255_v47  ;;  %v5156_v47 = vld [vmem:[#allocation8 + $0x1d8] sm:$0xf0]  ;;  %v5923_v53 = vor.u32 %v7775_v43, %v5922_v40  ;;  %v7652_v40 = vld [vmem:[#allocation8 + $0x404] sm:$0xf]  ;;  %v5372_v29 = vld [vmem:[#allocation8 + $0x388] sm:$0xf0] }
 0x106   :  { %2544 = vmatpush.bf16.msrb.mxu0 %v5803_v59  ;;  %v7526_v59 = vld [vmem:[#allocation8 + $0x14] sm:$0xf]  ;;  %v7700_v43 = vld [vmem:[#allocation8 + $0x584] sm:$0xf] }
 0x107   :  { %2558 = vmatpush.bf16.msrb.mxu1 %v5995_v60  ;;  %v5159_v60 = vor.u32 %v7580_v46, %v5156_v47  ;;  %v7748_v46 = vld [vmem:[#allocation8 + $0x704] sm:$0xf]  ;;  %v5828_v47 = vld [vmem:[#allocation8 + $0x718] sm:$0xf0]  ;;  %v8184_v2 = vpop.f32.mrf.mxu3  ;;  %v7682_v30 = vld [vmem:[#allocation8 + $0x4f4] sm:$0xf] }
 0x108   :  { %2572 = vmatpush.bf16.msrb.mxu2 %v5039_v61  ;;  %v4940_v61 = vld [vmem:[#allocation8 + $0x28] sm:$0xf0] }
 0x109   :  { %2586 = vmatpush.bf16.msrb.mxu3 %v5231_v4  ;;  %v7712_v4 = vld [vmem:[#allocation8 + $0x5e4] sm:$0xf]  ;;  %v4943_v10 = vor.u32 %v7526_v59, %v4940_v61  ;;  %v7694_v59 = vld [vmem:[#allocation8 + $0x554] sm:$0xf] }
 0x10a   :  { %2545 = vmatpush.bf16.msrb.mxu0 %v5779_v12  ;;  %v7808_v12 = vld [vmem:[#allocation8 + $0x8e4] sm:$0xf]  ;;  %v5687_v16 = vor.u32 %v7712_v4, %v5684_v7  ;;  %v5996_v4 = vld [vmem:[#allocation8 + $0x868] sm:$0xf0] }
 0x10b   :  { %2559 = vmatpush.bf16.msrb.mxu1 %v5971_v28  ;;  %v6068_v28 = vld [vmem:[#allocation8 + $0x8f8] sm:$0xf0] }
 0x10c   :  { %2573 = vmatpush.bf16.msrb.mxu2 %v5015_v13  ;;  %v5135_v13 = vor.u32 %v7574_v62, %v5132_v63  ;;  %v6071_v22 = vor.u32 %v7808_v12, %v6068_v28  ;;  %v5612_v62 = vld [vmem:[#allocation8 + $0x568] sm:$0xf0]  ;;  %v7742_v63 = vld [vmem:[#allocation8 + $0x6d4] sm:$0xf]  ;;  %v7688_v12 = vld [vmem:[#allocation8 + $0x524] sm:$0xf] }
 0x10d   :  { %2587 = vmatpush.bf16.msrb.mxu3 %v5207_v18  ;;  %v7658_v18 = vld [vmem:[#allocation8 + $0x434] sm:$0xf]  ;;  %v5615_v8 = vor.u32 %v7694_v59, %v5612_v62  ;;  %v5807_v9 = vor.u32 %v7742_v63, %v5804_v1  ;;  %v7724_v59 = vld [vmem:[#allocation8 + $0x644] sm:$0xf]  ;;  %v5924_v63 = vld [vmem:[#allocation8 + $0x7d8] sm:$0xf0] }
 0x10e   :  { %2546 = vmatpush.bf16.msrb.mxu0 %v5755_v32  ;;  %v8174_v32 = vpop.f32.mrf.mxu0  ;;  %v7772_v62 = vld [vmem:[#allocation8 + $0x7c4] sm:$0xf] }
 0x10f   :  { %2560 = vmatpush.bf16.msrb.mxu1 %v5947_v34  ;;  %v8176_v34 = vpop.f32.mrf.mxu1 }
 0x110   :  { %2574 = vmatpush.bf16.msrb.mxu2 %v4991_v36  ;;  %v5471_v36 = vor.u32 %v7658_v18, %v5468_v20  ;;  %v7784_v18 = vld [vmem:[#allocation8 + $0x824] sm:$0xf]  ;;  %v5972_v20 = vld [vmem:[#allocation8 + $0x838] sm:$0xf0] }
 0x111   :  { %2588 = vmatpush.bf16.msrb.mxu3 %v5183_v42  ;;  %v5444_v42 = vld [vmem:[#allocation8 + $0x418] sm:$0xf0]  ;;  %v5975_v31 = vor.u32 %v7784_v18, %v5972_v20  ;;  %v7329_v18 = vld [vmem:[#allocation7 + $0x2e4] sm:$0xf0]  ;;  %v6626_v20 = vld [vmem:[#allocation7 + $0x450] sm:$0xf] }
 0x112   :  { %2547 = vmatpush.bf16.msrb.mxu0 %v5731_v49  ;;  %v7796_v49 = vld [vmem:[#allocation8 + $0x884] sm:$0xf]  ;;  %v5447_v52 = vor.u32 %v7652_v40, %v5444_v42  ;;  %v7778_v42 = vld [vmem:[#allocation8 + $0x7f4] sm:$0xf] }
 0x113   :  { %2561 = vmatpush.bf16.msrb.mxu1 %v5923_v53  ;;  %v5639_v53 = vor.u32 %v7700_v43, %v5636_v45  ;;  %v6023_v61 = vor.u32 %v7796_v49, %v6020_v50  ;;  %v5948_v43 = vld [vmem:[#allocation8 + $0x808] sm:$0xf0]  ;;  %v5375_v45 = vor.u32 %v7634_v27, %v5372_v29  ;;  %v7628_v50 = vld [vmem:[#allocation8 + $0x344] sm:$0xf]  ;;  %v6818_v27 = vld [vmem:[#allocation7 + $0x5d0] sm:$0xf] }
 0x114   :  { %2575 = vmatpush.bf16.msrb.mxu2 %v4967_v54  ;;  %v5831_v54 = vor.u32 %v7748_v46, %v5828_v47  ;;  %v7425_v29 = vld [vmem:[#allocation7 + $0x5e4] sm:$0xf0] }
 0x115   :  { %2589 = vmatpush.bf16.msrb.mxu3 %v5159_v60  ;;  %v8182_v60 = vpop.f32.mrf.mxu2 }
 0x116   :  { %2548 = vmatpush.bf16.msrb.mxu0 %v5707_v6  ;;  %v2326_v6 = vpop.f32.mrf.mxu0 }
 0x117   :  { %2562 = vmatpush.bf16.msrb.mxu1 %v5899_v0  ;;  %v2340_v7 = vpop.f32.mrf.mxu1  ;;  %v7640_v0 = vld [vmem:[#allocation8 + $0x3a4] sm:$0xf] }
 0x118   :  { %2576 = vmatpush.bf16.msrb.mxu2 %v4943_v10  ;;  %v5396_v10 = vld [vmem:[#allocation8 + $0x3b8] sm:$0xf0]  ;;  %v2341_v28 = vadd.f32 %v2340_v7, %v2326_v6  ;;  %v7670_v7 = vld [vmem:[#allocation8 + $0x494] sm:$0xf] }
 0x119   :  { %2590 = vmatpush.bf16.msrb.mxu3 %v5135_v13  ;;  %2549 = vmatmul.bf16.vlgmr.msrb.gmra.mxu0 %v8120_v35  ;;  %v5399_v21 = vor.u32 %v7640_v0, %v5396_v10  ;;  %v5927_v0 = vor.u32 %v7772_v62, %v5924_v63  ;;  %v5708_v10 = vld [vmem:[#allocation8 + $0x628] sm:$0xf0]  ;;  %v6386_v62 = vld [vmem:[#allocation7 + $0x270] sm:$0xf] }
 0x11a   :  { %2597 = vmatpush.bf16.msra.mxu0 %v5495_v14  ;;  %2563 = vmatmul.bf16.vlgmr.msrb.gmra.mxu1 %v8122_v39  ;;  %v5588_v14 = vld [vmem:[#allocation8 + $0x538] sm:$0xf0] }
 0x11b   :  { %2611 = vmatpush.bf16.msra.mxu1 %v5687_v16  ;;  %2577 = vmatmul.bf16.vlgmr.msrb.gmra.mxu2 %v8108_v58  ;;  %v7790_v58 = vld [vmem:[#allocation8 + $0x854] sm:$0xf]  ;;  %v7736_v16 = vld [vmem:[#allocation8 + $0x6a4] sm:$0xf] }
 0x11c   :  { %2625 = vmatpush.bf16.msra.mxu2 %v5879_v17  ;;  %2591 = vmatmul.bf16.vlgmr.msrb.gmra.mxu3 %v8111_v5  ;;  %v5423_v5 = vor.u32 %v7646_v56, %v5420_v57  ;;  %v5999_v13 = vor.u32 %v7790_v58, %v5996_v4  ;;  %v5780_v17 = vld [vmem:[#allocation8 + $0x6b8] sm:$0xf0]  ;;  %v5951_v56 = vor.u32 %v7778_v42, %v5948_v43  ;;  %v7622_v58 = vld [vmem:[#allocation8 + $0x314] sm:$0xf]  ;;  %v5324_v4 = vld [vmem:[#allocation8 + $0x328] sm:$0xf0] }
 0x11d   :  { %2639 = vmatpush.bf16.msra.mxu3 %v6071_v22  ;;  %v5591_v22 = vor.u32 %v7688_v12, %v5588_v14  ;;  %v5783_v25 = vor.u32 %v7736_v16, %v5780_v17  ;;  %v5540_v57 = vld [vmem:[#allocation8 + $0x4d8] sm:$0xf0]  ;;  %v7766_v12 = vld [vmem:[#allocation8 + $0x794] sm:$0xf]  ;;  %v7281_v14 = vld [vmem:[#allocation7 + $0x164] sm:$0xf0]  ;;  %v5327_v17 = vor.u32 %v7622_v58, %v5324_v4 }
 0x11e   :  { %2598 = vmatpush.bf16.msra.mxu0 %v5471_v36  ;;  %v5564_v36 = vld [vmem:[#allocation8 + $0x508] sm:$0xf0]  ;;  %v2354_v40 = vpop.f32.mrf.mxu2  ;;  %v6434_v16 = vld [vmem:[#allocation7 + $0x2d0] sm:$0xf]  ;;  %v7275_v42 = vld [vmem:[#allocation7 + $0x134] sm:$0xf0] }
 0x11f   :  { %2612 = vmatpush.bf16.msra.mxu1 %v5663_v37  ;;  %v7730_v37 = vld [vmem:[#allocation8 + $0x674] sm:$0xf]  ;;  %v2368_v46 = vpop.f32.mrf.mxu3  ;;  %v5567_v47 = vor.u32 %v7682_v30, %v5564_v36  ;;  %v6435_v36 = vor.u32 %v7329_v18, %v6434_v16  ;;  %v6410_v43 = vld [vmem:[#allocation7 + $0x2a0] sm:$0xf]  ;;  %v6578_v58 = vld [vmem:[#allocation7 + $0x3f0] sm:$0xf] }
 0x120   :  { %2626 = vmatpush.bf16.msra.mxu2 %v5855_v38  ;;  %v5756_v38 = vld [vmem:[#allocation8 + $0x688] sm:$0xf0]  ;;  %v7365_v4 = vld [vmem:[#allocation7 + $0x404] sm:$0xf0]  ;;  %v6746_v16 = vld [vmem:[#allocation7 + $0x540] sm:$0xf] }
 0x121   :  { %2640 = vmatpush.bf16.msra.mxu3 %v6047_v44  ;;  %v2355_v44 = vadd.f32 %v2354_v40, %v2341_v28  ;;  %v5759_v49 = vor.u32 %v7730_v37, %v5756_v38  ;;  %v5900_v28 = vld [vmem:[#allocation8 + $0x7a8] sm:$0xf0]  ;;  %v8188_v38 = vpop.f32.mrf.mxu0  ;;  %v6218_v40 = vld [vmem:[#allocation7 + $0x120] sm:$0xf] }
 0x122   :  { %2599 = vmatpush.bf16.msra.mxu0 %v5447_v52  ;;  %v5348_v52 = vld [vmem:[#allocation8 + $0x358] sm:$0xf0]  ;;  %v5903_v30 = vor.u32 %v7766_v12, %v5900_v28  ;;  %v7311_v28 = vld [vmem:[#allocation7 + $0x254] sm:$0xf0] }
 0x123   :  { %2613 = vmatpush.bf16.msra.mxu1 %v5639_v53  ;;  %v7676_v53 = vld [vmem:[#allocation8 + $0x4c4] sm:$0xf]  ;;  %v5351_v1 = vor.u32 %v7628_v50, %v5348_v52  ;;  %v7419_v50 = vld [vmem:[#allocation7 + $0x5b4] sm:$0xf0]  ;;  %v8190_v52 = vpop.f32.mrf.mxu1 }
 0x124   :  { %2627 = vmatpush.bf16.msra.mxu2 %v5831_v54  ;;  %v8186_v54 = vadd.f32 %v2368_v46, %v2355_v44  ;;  %v6819_v44 = vor.u32 %v7425_v29, %v6818_v27  ;;  %v6602_v46 = vld [vmem:[#allocation7 + $0x420] sm:$0xf]  ;;  %v6146_v27 = vld [vmem:[#allocation7 + $0x90] sm:$0xf]  ;;  %v7257_v29 = vld [vmem:[#allocation7 + $0xa4] sm:$0xf0] }
 0x125   :  { %2641 = vmatpush.bf16.msra.mxu3 %v6023_v61  ;;  %v5732_v61 = vld [vmem:[#allocation8 + $0x658] sm:$0xf0] }
 0x126   :  { %2600 = vmatpush.bf16.msra.mxu0 %v5423_v5  ;;  %v5543_v5 = vor.u32 %v7676_v53, %v5540_v57  ;;  %v5735_v6 = vor.u32 %v7724_v59, %v5732_v61  ;;  %v6219_v53 = vor.u32 %v7275_v42, %v6218_v40  ;;  %v6194_v59 = vld [vmem:[#allocation7 + $0xf0] sm:$0xf]  ;;  %v7269_v61 = vld [vmem:[#allocation7 + $0x104] sm:$0xf0] }
 0x127   :  { %2614 = vmatpush.bf16.msra.mxu1 %v5615_v8  ;;  %v5516_v8 = vld [vmem:[#allocation8 + $0x4a8] sm:$0xf0]  ;;  %v6530_v40 = vld [vmem:[#allocation7 + $0x390] sm:$0xf]  ;;  %v7353_v42 = vld [vmem:[#allocation7 + $0x3a4] sm:$0xf0] }
 0x128   :  { %2628 = vmatpush.bf16.msra.mxu2 %v5807_v9  ;;  %v7718_v9 = vld [vmem:[#allocation8 + $0x614] sm:$0xf] }
 0x129   :  { %2642 = vmatpush.bf16.msra.mxu3 %v5999_v13  ;;  %v6242_v13 = vld [vmem:[#allocation7 + $0x150] sm:$0xf] }
 0x12a   :  { %2601 = vmatpush.bf16.msra.mxu0 %v5399_v21  ;;  %v7377_v21 = vld [vmem:[#allocation7 + $0x464] sm:$0xf0] }
 0x12b   :  { %2615 = vmatpush.bf16.msra.mxu1 %v5591_v22  ;;  %v5519_v22 = vor.u32 %v7670_v7, %v5516_v8  ;;  %v6627_v37 = vor.u32 %v7377_v21, %v6626_v20  ;;  %v6195_v7 = vor.u32 %v7269_v61, %v6194_v59  ;;  %v7347_v59 = vld [vmem:[#allocation7 + $0x374] sm:$0xf0]  ;;  %v6698_v61 = vld [vmem:[#allocation7 + $0x4e0] sm:$0xf] }
 0x12c   :  { %2629 = vmatpush.bf16.msra.mxu2 %v5783_v25  ;;  %v5711_v25 = vor.u32 %v7718_v9, %v5708_v10  ;;  %v6579_v9 = vor.u32 %v7365_v4, %v6578_v58  ;;  %v6362_v10 = vld [vmem:[#allocation7 + $0x240] sm:$0xf]  ;;  %v6098_v4 = vld [vmem:[#allocation7 + $0x30] sm:$0xf] }
 0x12d   :  { %2643 = vmatpush.bf16.msra.mxu3 %v5975_v31  ;;  %v6243_v31 = vor.u32 %v7281_v14, %v6242_v13  ;;  %v6554_v13 = vld [vmem:[#allocation7 + $0x3c0] sm:$0xf]  ;;  %v8196_v14 = vpop.f32.mrf.mxu2  ;;  %v6363_v21 = vor.u32 %v7311_v28, %v6362_v10  ;;  %v6482_v10 = vld [vmem:[#allocation7 + $0x330] sm:$0xf] }
 0x12e   :  { %2602 = vmatpush.bf16.msra.mxu0 %v5375_v45  ;;  %v7323_v45 = vld [vmem:[#allocation7 + $0x2b4] sm:$0xf0]  ;;  %v6674_v28 = vld [vmem:[#allocation7 + $0x4b0] sm:$0xf] }
 0x12f   :  { %2616 = vmatpush.bf16.msra.mxu1 %v5567_v47  ;;  %v7371_v47 = vld [vmem:[#allocation7 + $0x434] sm:$0xf0] }
 0x130   :  { %2630 = vmatpush.bf16.msra.mxu2 %v5759_v49  ;;  %v6794_v49 = vld [vmem:[#allocation7 + $0x5a0] sm:$0xf]  ;;  %v6603_v57 = vor.u32 %v7371_v47, %v6602_v46  ;;  %v6531_v46 = vor.u32 %v7353_v42, %v6530_v40  ;;  %v7202_v40 = vld [vmem:[#allocation7 + $0x8d0] sm:$0xf]  ;;  %v7521_v42 = vld [vmem:[#allocation7 + $0x8e4] sm:$0xf0] }
 0x131   :  { %2644 = vmatpush.bf16.msra.mxu3 %v5951_v56  ;;  %v6411_v56 = vor.u32 %v7323_v45, %v6410_v43  ;;  %v6795_v63 = vor.u32 %v7419_v50, %v6794_v49  ;;  %v6722_v43 = vld [vmem:[#allocation7 + $0x510] sm:$0xf]  ;;  %v6122_v47 = vld [vmem:[#allocation7 + $0x60] sm:$0xf]  ;;  %v7251_v49 = vld [vmem:[#allocation7 + $0x74] sm:$0xf0] }
 0x132   :  { %2603 = vmatpush.bf16.msra.mxu0 %v5351_v1  ;;  %v7317_v1 = vld [vmem:[#allocation7 + $0x284] sm:$0xf0]  ;;  %v6314_v50 = vld [vmem:[#allocation7 + $0x1e0] sm:$0xf]  ;;  %v6123_v58 = vor.u32 %v7251_v49, %v6122_v47  ;;  %v103_v49 = vld [vmem:[#allocation2 + $0x30] sm:$0xff] }
 0x133   :  { %2617 = vmatpush.bf16.msra.mxu1 %v5543_v5  ;;  %v6770_v5 = vld [vmem:[#allocation7 + $0x570] sm:$0xf]  ;;  %v6387_v8 = vor.u32 %v7317_v1, %v6386_v62  ;;  %v7395_v62 = vld [vmem:[#allocation7 + $0x4f4] sm:$0xf0]  ;;  %v97_v47 = vld [vmem:[#allocation2] sm:$0xff] }
 0x134   :  { %2631 = vmatpush.bf16.msra.mxu2 %v5735_v6  ;;  %v7413_v6 = vld [vmem:[#allocation7 + $0x584] sm:$0xf0] }
 0x135   :  { %2645 = vmatpush.bf16.msra.mxu3 %v5927_v0  ;;  %v6170_v0 = vld [vmem:[#allocation7 + $0xc0] sm:$0xf]  ;;  %v6771_v12 = vor.u32 %v7413_v6, %v6770_v5 }
 0x136   :  { %2604 = vmatpush.bf16.msra.mxu0 %v5327_v17  ;;  %v7407_v17 = vld [vmem:[#allocation7 + $0x554] sm:$0xf0] }
 0x137   :  { %2618 = vmatpush.bf16.msra.mxu1 %v5519_v22 }
 0x138   :  { %2632 = vmatpush.bf16.msra.mxu2 %v5711_v25  ;;  %v2396_v25 = vpop.f32.mrf.mxu1 }
 0x139   :  { %2646 = vmatpush.bf16.msra.mxu3 %v5903_v30  ;;  %2605 = vmatmul.bf16.vlgmr.msra.gmra.mxu0 %v8113_v11  ;;  %v7263_v11 = vld [vmem:[#allocation7 + $0xd4] sm:$0xf0]  ;;  %v6338_v30 = vld [vmem:[#allocation7 + $0x210] sm:$0xf] }
 0x13a   :  { %4093 = vmatpush.bf16.msrb.mxu0 %v6243_v31  ;;  %2619 = vmatmul.bf16.vlgmr.msra.gmra.mxu1 %v8117_v23  ;;  %v2382_v23 = vpop.f32.mrf.mxu0  ;;  %v6171_v20 = vor.u32 %v7263_v11, %v6170_v0  ;;  %v6747_v31 = vor.u32 %v7407_v17, %v6746_v16  ;;  %v7293_v0 = vld [vmem:[#allocation7 + $0x1c4] sm:$0xf0]  ;;  %v6699_v11 = vor.u32 %v7395_v62, %v6698_v61  ;;  %v6266_v17 = vld [vmem:[#allocation7 + $0x180] sm:$0xf] }
 0x13b   :  { %4107 = vmatpush.bf16.msrb.mxu1 %v6435_v36  ;;  %2633 = vmatmul.bf16.vlgmr.msra.gmra.mxu2 %v8120_v35  ;;  %v7359_v35 = vld [vmem:[#allocation7 + $0x3d4] sm:$0xf0]  ;;  %v2383_v18 = vadd.f32 %v2382_v23, %v8186_v54  ;;  %v6147_v54 = vor.u32 %v7257_v29, %v6146_v27  ;;  %v6650_v27 = vld [vmem:[#allocation7 + $0x480] sm:$0xf] }
 0x13c   :  { %4121 = vmatpush.bf16.msrb.mxu2 %v6627_v37  ;;  %2647 = vmatmul.bf16.vlgmr.msra.gmra.mxu3 %v8122_v39  ;;  %v8198_v39 = vpop.f32.mrf.mxu3  ;;  %v6555_v22 = vor.u32 %v7359_v35, %v6554_v13  ;;  %v7305_v37 = vld [vmem:[#allocation7 + $0x224] sm:$0xf0]  ;;  %v6074_v35 = vld [vmem:[#allocation7] sm:$0xf]  ;;  %v7239_v23 = vld [vmem:[#allocation7 + $0x14] sm:$0xf0] }
 0x13d   :  { %4135 = vmatpush.bf16.msrb.mxu3 %v6819_v44  ;;  %v8201_v36 = vadd.f32 %v2396_v25, %v2383_v18  ;;  %v7401_v44 = vld [vmem:[#allocation7 + $0x524] sm:$0xf0]  ;;  %v6339_v45 = vor.u32 %v7305_v37, %v6338_v30  ;;  %v7287_v18 = vld [vmem:[#allocation7 + $0x194] sm:$0xf0]  ;;  %v7010_v30 = vld [vmem:[#allocation7 + $0x750] sm:$0xf] }
 0x13e   :  { %4094 = vmatpush.bf16.msrb.mxu0 %v6219_v53  ;;  %v6723_v53 = vor.u32 %v7401_v44, %v6722_v43  ;;  %v7389_v13 = vld [vmem:[#allocation7 + $0x4c4] sm:$0xf0]  ;;  %v7383_v29 = vld [vmem:[#allocation7 + $0x494] sm:$0xf0]  ;;  %v7278_v43 = vld [vmem:[#allocation7 + $0x154] sm:$0xf] }
 0x13f   :  { %4108 = vmatpush.bf16.msrb.mxu1 %v6411_v56  ;;  %v7299_v56 = vld [vmem:[#allocation7 + $0x1f4] sm:$0xf0]  ;;  %v7473_v37 = vld [vmem:[#allocation7 + $0x764] sm:$0xf0]  ;;  %v6244_v44 = vld [vmem:[#allocation7 + $0x168] sm:$0xf0]  ;;  %v6651_v61 = vor.u32 %v7383_v29, %v6650_v27 }
 0x140   :  { %4122 = vmatpush.bf16.msrb.mxu2 %v6603_v57  ;;  %v6506_v57 = vld [vmem:[#allocation7 + $0x360] sm:$0xf]  ;;  %v6315_v6 = vor.u32 %v7299_v56, %v6314_v50  ;;  %v6267_v50 = vor.u32 %v7287_v18, %v6266_v17  ;;  %v99_v56 = vld [vmem:[#allocation2 + $0x10] sm:$0xff]  ;;  %v7011_v62 = vor.u32 %v7473_v37, %v7010_v30  ;;  %v6412_v17 = vld [vmem:[#allocation7 + $0x2b8] sm:$0xf0] }
 0x141   :  { %4136 = vmatpush.bf16.msrb.mxu3 %v6795_v63  ;;  %v2410_v63 = vpop.f32.mrf.mxu2  ;;  %v6962_v27 = vld [vmem:[#allocation7 + $0x6f0] sm:$0xf]  ;;  %v7461_v29 = vld [vmem:[#allocation7 + $0x704] sm:$0xf0] }
 0x142   :  { %4095 = vmatpush.bf16.msrb.mxu0 %v6195_v7  ;;  %v6507_v7 = vor.u32 %v7347_v59, %v6506_v57  ;;  %v105_v57 = vld [vmem:[#allocation2 + $0x40] sm:$0xff]  ;;  %v98_v59 = vld [vmem:[#allocation2 + $0x8] sm:$0xff]  ;;  %v7154_v30 = vld [vmem:[#allocation7 + $0x870] sm:$0xf] }
 0x143   :  { %4109 = vmatpush.bf16.msrb.mxu1 %v6387_v8  ;;  %v7245_v8 = vld [vmem:[#allocation7 + $0x44] sm:$0xf0] }
 0x144   :  { %4123 = vmatpush.bf16.msrb.mxu2 %v6579_v9  ;;  %v2424_v1 = vpop.f32.mrf.mxu3  ;;  %v6290_v9 = vld [vmem:[#allocation7 + $0x1b0] sm:$0xf]  ;;  %v6099_v16 = vor.u32 %v7245_v8, %v6098_v4  ;;  %v7203_v4 = vor.u32 %v7521_v42, %v7202_v40  ;;  %v7467_v8 = vld [vmem:[#allocation7 + $0x734] sm:$0xf0]  ;;  %v7509_v37 = vld [vmem:[#allocation7 + $0x884] sm:$0xf0] }
 0x145   :  { %4137 = vmatpush.bf16.msrb.mxu3 %v6771_v12  ;;  %v8203_v5 = vadd.f32 %v2424_v1, %v2410_v63  ;;  %v7341_v12 = vld [vmem:[#allocation7 + $0x344] sm:$0xf0]  ;;  %v104_v63 = vld [vmem:[#allocation2 + $0x38] sm:$0xff]  ;;  %v7266_v40 = vld [vmem:[#allocation7 + $0xf4] sm:$0xf] }
 0x146   :  { %4096 = vmatpush.bf16.msrb.mxu0 %v6171_v20  ;;  %v6458_v20 = vld [vmem:[#allocation7 + $0x300] sm:$0xf]  ;;  %v6483_v25 = vor.u32 %v7341_v12, %v6482_v10  ;;  %v100_v1 = vld [vmem:[#allocation2 + $0x18] sm:$0xff]  ;;  %v7272_v12 = vld [vmem:[#allocation7 + $0x124] sm:$0xf] }
 0x147   :  { %4110 = vmatpush.bf16.msrb.mxu1 %v6363_v21  ;;  %v7335_v21 = vld [vmem:[#allocation7 + $0x314] sm:$0xf0]  ;;  %v6196_v42 = vld [vmem:[#allocation7 + $0x108] sm:$0xf0] }
 0x148   :  { %4124 = vmatpush.bf16.msrb.mxu2 %v6555_v22  ;;  %v6291_v22 = vor.u32 %v7293_v0, %v6290_v9  ;;  %v7178_v9 = vld [vmem:[#allocation7 + $0x8a0] sm:$0xf]  ;;  %v7515_v10 = vld [vmem:[#allocation7 + $0x8b4] sm:$0xf0] }
 0x149   :  { %4138 = vmatpush.bf16.msrb.mxu3 %v6747_v31  ;;  %v6675_v31 = vor.u32 %v7389_v13, %v6674_v28  ;;  %v6220_v28 = vld [vmem:[#allocation7 + $0x138] sm:$0xf0]  ;;  %v8207_v13 = vpop.f32.mrf.mxu0 }
 0x14a   :  { %4097 = vmatpush.bf16.msrb.mxu0 %v6147_v54  ;;  %v7326_v54 = vld [vmem:[#allocation7 + $0x2d4] sm:$0xf] }
 0x14b   :  { %4111 = vmatpush.bf16.msrb.mxu1 %v6339_v45  ;;  %v6075_v45 = vor.u32 %v7239_v23, %v6074_v35  ;;  %v8209_v35 = vpack.c.bf16 %v105_v57, %v99_v56  ;;  %v8211_v23 = vpack.c.bf16 %v104_v63, %v98_v59  ;;  %v7503_v59 = vld [vmem:[#allocation7 + $0x854] sm:$0xf0] }
 0x14c   :  { %4125 = vmatpush.bf16.msrb.mxu2 %v6531_v46  ;;  %v6436_v46 = vld [vmem:[#allocation7 + $0x2e8] sm:$0xf0]  ;;  %v8223_v57 = vpop.f32.mrf.mxu3 }
 0x14d   :  { %4139 = vmatpush.bf16.msrb.mxu3 %v6723_v53  ;;  %v6459_v53 = vor.u32 %v7335_v21, %v6458_v20  ;;  %v6439_v0 = vor.u32 %v7326_v54, %v6436_v46  ;;  %v8215_v21 = vpop.f32.mrf.mxu1  ;;  %v6963_v54 = vor.u32 %v7461_v29, %v6962_v27  ;;  %v7155_v46 = vor.u32 %v7509_v37, %v7154_v30  ;;  %v6340_v27 = vld [vmem:[#allocation7 + $0x228] sm:$0xf0]  ;;  %v7443_v37 = vld [vmem:[#allocation7 + $0x674] sm:$0xf0] }
 0x14e   :  { %4098 = vmatpush.bf16.msrb.mxu0 %v6123_v58  ;;  %v106_v58 = vld [vmem:[#allocation2 + $0x48] sm:$0xff] }
 0x14f   :  { %4112 = vmatpush.bf16.msrb.mxu1 %v6315_v6  ;;  %v6247_v6 = vor.u32 %v7278_v43, %v6244_v44  ;;  %v8213_v18 = vpack.c.bf16 %v106_v58, %v100_v1  ;;  %v7314_v43 = vld [vmem:[#allocation7 + $0x274] sm:$0xf]  ;;  %v6388_v44 = vld [vmem:[#allocation7 + $0x288] sm:$0xf0]  ;;  %v7308_v1 = vld [vmem:[#allocation7 + $0x244] sm:$0xf] }
 0x150   :  { %4126 = vmatpush.bf16.msrb.mxu2 %v6507_v7  ;;  %v6986_v7 = vld [vmem:[#allocation7 + $0x720] sm:$0xf]  ;;  %v6391_v56 = vor.u32 %v7314_v43, %v6388_v44  ;;  %v6364_v58 = vld [vmem:[#allocation7 + $0x258] sm:$0xf0]  ;;  %v7491_v44 = vld [vmem:[#allocation7 + $0x7f4] sm:$0xf0] }
 0x151   :  { %4140 = vmatpush.bf16.msrb.mxu3 %v6699_v11  ;;  %v8205_v11 = vpack.c.bf16 %v103_v49, %v97_v47  ;;  %v6987_v20 = vor.u32 %v7467_v8, %v6986_v7  ;;  %v6199_v47 = vor.u32 %v7266_v40, %v6196_v42  ;;  %v6938_v49 = vld [vmem:[#allocation7 + $0x6c0] sm:$0xf] }
 0x152   :  { %4099 = vmatpush.bf16.msrb.mxu0 %v6099_v16  ;;  %v7320_v16 = vld [vmem:[#allocation7 + $0x2a4] sm:$0xf]  ;;  %v7082_v40 = vld [vmem:[#allocation7 + $0x7e0] sm:$0xf] }
 0x153   :  { %4113 = vmatpush.bf16.msrb.mxu1 %v6291_v22  ;;  %v7179_v22 = vor.u32 %v7515_v10, %v7178_v9  ;;  %v7449_v10 = vld [vmem:[#allocation7 + $0x6a4] sm:$0xf0] }
 0x154   :  { %4127 = vmatpush.bf16.msrb.mxu2 %v6483_v25  ;;  %v6223_v25 = vor.u32 %v7272_v12, %v6220_v28  ;;  %v7106_v12 = vld [vmem:[#allocation7 + $0x810] sm:$0xf]  ;;  %v6367_v28 = vor.u32 %v7308_v1, %v6364_v58  ;;  %v7437_v1 = vld [vmem:[#allocation7 + $0x644] sm:$0xf0] }
 0x155   :  { %4141 = vmatpush.bf16.msrb.mxu3 %v6675_v31  ;;  %v6415_v31 = vor.u32 %v7320_v16, %v6412_v17  ;;  %v7497_v17 = vld [vmem:[#allocation7 + $0x824] sm:$0xf0]  ;;  %v7058_v58 = vld [vmem:[#allocation7 + $0x7b0] sm:$0xf] }
 0x156   :  { %4100 = vmatpush.bf16.msrb.mxu0 %v6075_v45  ;;  %v8221_v45 = vpop.f32.mrf.mxu2  ;;  %v2438_v63 = vpop.f32.mrf.mxu0 }
 0x157   :  { %4114 = vmatpush.bf16.msrb.mxu1 %v6267_v50  ;;  %v7455_v50 = vld [vmem:[#allocation7 + $0x6d4] sm:$0xf0]  ;;  %v2452_v9 = vpop.f32.mrf.mxu1 }
 0x158   :  { %4128 = vmatpush.bf16.msrb.mxu2 %v6459_v53  ;;  %v7130_v53 = vld [vmem:[#allocation7 + $0x840] sm:$0xf] }
 0x159   :  { %4142 = vmatpush.bf16.msrb.mxu3 %v6651_v61  ;;  %4101 = vmatmul.bf16.vlgmr.msrb.gmra.mxu0 %v8205_v11  ;;  %v7260_v61 = vld [vmem:[#allocation7 + $0xc4] sm:$0xf]  ;;  %v7131_v7 = vor.u32 %v7503_v59, %v7130_v53 }
 0x15a   :  { %4149 = vmatpush.bf16.msra.mxu0 %v7011_v62  ;;  %4115 = vmatmul.bf16.vlgmr.msrb.gmra.mxu1 %v8211_v23  ;;  %v6172_v62 = vld [vmem:[#allocation7 + $0xd8] sm:$0xf0] }
 0x15b   :  { %4163 = vmatpush.bf16.msra.mxu1 %v7203_v4  ;;  %4129 = vmatmul.bf16.vlgmr.msrb.gmra.mxu2 %v8209_v35  ;;  %v2439_v4 = vadd.f32 %v2438_v63, %v8203_v5  ;;  %v6175_v8 = vor.u32 %v7260_v61, %v6172_v62  ;;  %v7107_v5 = vor.u32 %v7497_v17, %v7106_v12  ;;  %v6866_v63 = vld [vmem:[#allocation7 + $0x630] sm:$0xf]  ;;  %v6842_v12 = vld [vmem:[#allocation7 + $0x600] sm:$0xf] }
 0x15c   :  { %4177 = vmatpush.bf16.msra.mxu2 %v6247_v6  ;;  %4143 = vmatmul.bf16.vlgmr.msrb.gmra.mxu3 %v8213_v18  ;;  %v6939_v6 = vor.u32 %v7455_v50, %v6938_v49  ;;  %v7296_v49 = vld [vmem:[#allocation7 + $0x1e4] sm:$0xf]  ;;  %v6316_v50 = vld [vmem:[#allocation7 + $0x1f8] sm:$0xf0]  ;;  %v7083_v61 = vor.u32 %v7491_v44, %v7082_v40  ;;  %v7422_v40 = vld [vmem:[#allocation7 + $0x5d4] sm:$0xf] }
 0x15d   :  { %4191 = vmatpush.bf16.msra.mxu3 %v6439_v0  ;;  %v6914_v0 = vld [vmem:[#allocation7 + $0x690] sm:$0xf]  ;;  %v2453_v16 = vadd.f32 %v2452_v9, %v2439_v4  ;;  %v6319_v4 = vor.u32 %v7296_v49, %v6316_v50  ;;  %v7290_v9 = vld [vmem:[#allocation7 + $0x1b4] sm:$0xf]  ;;  %v7204_v50 = vld [vmem:[#allocation7 + $0x8e8] sm:$0xf0] }
 0x15e   :  { %4150 = vmatpush.bf16.msra.mxu0 %v6987_v20  ;;  %v7254_v20 = vld [vmem:[#allocation7 + $0x94] sm:$0xf]  ;;  %v6915_v29 = vor.u32 %v7449_v10, %v6914_v0  ;;  %v2466_v43 = vpop.f32.mrf.mxu2  ;;  %v6292_v0 = vld [vmem:[#allocation7 + $0x1c8] sm:$0xf0]  ;;  %v6867_v10 = vor.u32 %v7437_v1, %v6866_v63  ;;  %v108_v1 = vld [vmem:[#allocation2 + $0x58] sm:$0xff] }
 0x15f   :  { %4164 = vmatpush.bf16.msra.mxu1 %v7179_v22  ;;  %v6148_v22 = vld [vmem:[#allocation7 + $0xa8] sm:$0xf0]  ;;  %v2480_v53 = vpop.f32.mrf.mxu3  ;;  %v7470_v44 = vld [vmem:[#allocation7 + $0x754] sm:$0xf] }
 0x160   :  { %4178 = vmatpush.bf16.msra.mxu2 %v6223_v25  ;;  %v7302_v25 = vld [vmem:[#allocation7 + $0x214] sm:$0xf]  ;;  %v6151_v30 = vor.u32 %v7254_v20, %v6148_v22  ;;  %v7479_v22 = vld [vmem:[#allocation7 + $0x794] sm:$0xf0]  ;;  %v102_v63 = vld [vmem:[#allocation2 + $0x28] sm:$0xff] }
 0x161   :  { %4192 = vmatpush.bf16.msra.mxu3 %v6415_v31  ;;  %v6890_v31 = vld [vmem:[#allocation7 + $0x660] sm:$0xf]  ;;  %v6343_v42 = vor.u32 %v7302_v25, %v6340_v27  ;;  %v7236_v25 = vld [vmem:[#allocation7 + $0x4] sm:$0xf]  ;;  %v6076_v27 = vld [vmem:[#allocation7 + $0x18] sm:$0xf0] }
 0x162   :  { %4151 = vmatpush.bf16.msra.mxu0 %v6963_v54  ;;  %v7248_v54 = vld [vmem:[#allocation7 + $0x64] sm:$0xf]  ;;  %v6079_v49 = vor.u32 %v7236_v25, %v6076_v27  ;;  %v8234_v25 = vpop.f32.mrf.mxu1 }
 0x163   :  { %4165 = vmatpush.bf16.msra.mxu1 %v7155_v46  ;;  %v6124_v46 = vld [vmem:[#allocation7 + $0x78] sm:$0xf0]  ;;  %8445 = vst [vmem:[#allocation17_spill] sm:$0xff] %v8234_v25  ;;  %v6610_v25 = vld [vmem:[#allocation7 + $0x428] sm:$0xf] }
 0x164   :  { %4179 = vmatpush.bf16.msra.mxu2 %v6199_v47  ;;  %v2467_v47 = vadd.f32 %v2466_v43, %v2453_v16  ;;  %v6127_v62 = vor.u32 %v7248_v54, %v6124_v46  ;;  %v7034_v16 = vld [vmem:[#allocation7 + $0x780] sm:$0xf]  ;;  %v7012_v54 = vld [vmem:[#allocation7 + $0x768] sm:$0xf0]  ;;  %v7518_v46 = vld [vmem:[#allocation7 + $0x8d4] sm:$0xf] }
 0x165   :  { %4193 = vmatpush.bf16.msra.mxu3 %v6391_v56  ;;  %v6891_v56 = vor.u32 %v7443_v37, %v6890_v31  ;;  %v7374_v31 = vld [vmem:[#allocation7 + $0x454] sm:$0xf]  ;;  %v6628_v37 = vld [vmem:[#allocation7 + $0x468] sm:$0xf0] }
 0x166   :  { %4152 = vmatpush.bf16.msra.mxu0 %v6939_v6  ;;  %v8226_v59 = vadd.f32 %v2480_v53, %v2467_v47  ;;  %v7485_v6 = vld [vmem:[#allocation7 + $0x7c4] sm:$0xf0]  ;;  %v7035_v47 = vor.u32 %v7479_v22, %v7034_v16  ;;  %v101_v53 = vld [vmem:[#allocation2 + $0x20] sm:$0xff]  ;;  %v8230_v16 = vpop.f32.mrf.mxu0  ;;  %v7180_v22 = vld [vmem:[#allocation7 + $0x8b8] sm:$0xf0] }
 0x167   :  { %4166 = vmatpush.bf16.msra.mxu1 %v7131_v7  ;;  %v7242_v7 = vld [vmem:[#allocation7 + $0x34] sm:$0xf]  ;;  %v7059_v17 = vor.u32 %v7485_v6, %v7058_v58  ;;  %v7368_v6 = vld [vmem:[#allocation7 + $0x424] sm:$0xf] }
 0x168   :  { %4180 = vmatpush.bf16.msra.mxu2 %v6175_v8  ;;  %8444 = vst [vmem:[#allocation16_spill] sm:$0xff] %v8226_v59  ;;  %v6100_v8 = vld [vmem:[#allocation7 + $0x48] sm:$0xf0] }
 0x169   :  { %4194 = vmatpush.bf16.msra.mxu3 %v6367_v28  ;;  %v7431_v28 = vld [vmem:[#allocation7 + $0x614] sm:$0xf0]  ;;  %v6103_v20 = vor.u32 %v7242_v7, %v6100_v8  ;;  %v6604_v7 = vld [vmem:[#allocation7 + $0x438] sm:$0xf0]  ;;  %v7416_v8 = vld [vmem:[#allocation7 + $0x5a4] sm:$0xf] }
 0x16a   :  { %4153 = vmatpush.bf16.msra.mxu0 %v6915_v29  ;;  %v6295_v29 = vor.u32 %v7290_v9, %v6292_v0  ;;  %v6843_v43 = vor.u32 %v7431_v28, %v6842_v12  ;;  %v7207_v9 = vor.u32 %v7518_v46, %v7204_v50  ;;  %v7464_v12 = vld [vmem:[#allocation7 + $0x724] sm:$0xf]  ;;  %v6988_v28 = vld [vmem:[#allocation7 + $0x738] sm:$0xf0]  ;;  %v6607_v27 = vor.u32 %v7368_v6, %v6604_v7  ;;  %v7156_v46 = vld [vmem:[#allocation7 + $0x888] sm:$0xf0]  ;;  %v8242_v6 = vpop.f32.mrf.mxu3 }
 0x16b   :  { %4167 = vmatpush.bf16.msra.mxu1 %v7107_v5  ;;  %v7284_v5 = vld [vmem:[#allocation7 + $0x184] sm:$0xf]  ;;  %8447 = vst [vmem:[#allocation19_spill] sm:$0xff] %v8242_v6 }
 0x16c   :  { %4181 = vmatpush.bf16.msra.mxu2 %v6151_v30  ;;  %v6268_v30 = vld [vmem:[#allocation7 + $0x198] sm:$0xf0]  ;;  %v7500_v7 = vld [vmem:[#allocation7 + $0x844] sm:$0xf] }
 0x16d   :  { %4195 = vmatpush.bf16.msra.mxu3 %v6343_v42  ;;  %v6820_v42 = vld [vmem:[#allocation7 + $0x5e8] sm:$0xf0] }
 0x16e   :  { %4154 = vmatpush.bf16.msra.mxu0 %v6891_v56  ;;  %v107_v56 = vld [vmem:[#allocation2 + $0x50] sm:$0xff]  ;;  %v6823_v58 = vor.u32 %v7422_v40, %v6820_v42  ;;  %v6772_v42 = vld [vmem:[#allocation7 + $0x588] sm:$0xf0] }
 0x16f   :  { %4168 = vmatpush.bf16.msra.mxu1 %v7083_v61  ;;  %v6271_v61 = vor.u32 %v7284_v5, %v6268_v30  ;;  %v8228_v0 = vpack.c.bf16 %v107_v56, %v101_v53  ;;  %v6991_v5 = vor.u32 %v7464_v12, %v6988_v28  ;;  %v7362_v30 = vld [vmem:[#allocation7 + $0x3f4] sm:$0xf]  ;;  %v7356_v53 = vld [vmem:[#allocation7 + $0x3c4] sm:$0xf]  ;;  %v6556_v56 = vld [vmem:[#allocation7 + $0x3d8] sm:$0xf0] }
 0x170   :  { %4182 = vmatpush.bf16.msra.mxu2 %v6127_v62  ;;  %v6631_v62 = vor.u32 %v7374_v31, %v6628_v37  ;;  %v6580_v31 = vld [vmem:[#allocation7 + $0x408] sm:$0xf0]  ;;  %v7410_v37 = vld [vmem:[#allocation7 + $0x574] sm:$0xf] }
 0x171   :  { %4196 = vmatpush.bf16.msra.mxu3 %v6319_v4  ;;  %v7015_v4 = vor.u32 %v7470_v44, %v7012_v54  ;;  %v6964_v44 = vld [vmem:[#allocation7 + $0x708] sm:$0xf0]  ;;  %v7506_v54 = vld [vmem:[#allocation7 + $0x874] sm:$0xf] }
 0x172   :  { %4155 = vmatpush.bf16.msra.mxu0 %v6867_v10  ;;  %v6796_v10 = vld [vmem:[#allocation7 + $0x5b8] sm:$0xf0] }
 0x173   :  { %4169 = vmatpush.bf16.msra.mxu1 %v7059_v17  ;;  %v8232_v17 = vpack.c.bf16 %v108_v1, %v102_v63  ;;  %v7159_v63 = vor.u32 %v7506_v54, %v7156_v46  ;;  %v6748_v1 = vld [vmem:[#allocation7 + $0x558] sm:$0xf0]  ;;  %v7344_v54 = vld [vmem:[#allocation7 + $0x364] sm:$0xf] }
 0x174   :  { %4183 = vmatpush.bf16.msra.mxu2 %v6103_v20  ;;  %v7512_v20 = vld [vmem:[#allocation7 + $0x8a4] sm:$0xf] }
 0x175   :  { %4197 = vmatpush.bf16.msra.mxu3 %v6295_v29  ;;  %v6799_v29 = vor.u32 %v7416_v8, %v6796_v10  ;;  %v7183_v40 = vor.u32 %v7512_v20, %v7180_v22  ;;  %v7132_v8 = vld [vmem:[#allocation7 + $0x858] sm:$0xf0]  ;;  %v6559_v10 = vor.u32 %v7356_v53, %v6556_v56  ;;  %v7350_v22 = vld [vmem:[#allocation7 + $0x394] sm:$0xf] }
 0x176   :  { %4156 = vmatpush.bf16.msra.mxu0 %v6843_v43  ;;  %v7458_v43 = vld [vmem:[#allocation7 + $0x6f4] sm:$0xf]  ;;  %v6700_v53 = vld [vmem:[#allocation7 + $0x4f8] sm:$0xf0] }
 0x177   :  { %4170 = vmatpush.bf16.msra.mxu1 %v7035_v47  ;;  %v6583_v47 = vor.u32 %v7362_v30, %v6580_v31  ;;  %v6967_v50 = vor.u32 %v7458_v43, %v6964_v44  ;;  %v2508_v12 = vpop.f32.mrf.mxu1  ;;  %v7135_v30 = vor.u32 %v7500_v7, %v7132_v8  ;;  %v6724_v31 = vld [vmem:[#allocation7 + $0x528] sm:$0xf0] }
 0x178   :  { %4184 = vmatpush.bf16.msra.mxu2 %v6079_v49  ;;  %v6775_v49 = vor.u32 %v7410_v37, %v6772_v42  ;;  %v7446_v37 = vld [vmem:[#allocation7 + $0x694] sm:$0xf]  ;;  %v7108_v43 = vld [vmem:[#allocation7 + $0x828] sm:$0xf0] }
 0x179   :  { %4198 = vmatpush.bf16.msra.mxu3 %v6271_v61  ;;  %4157 = vmatmul.bf16.vlgmr.msra.gmra.mxu0 %v8228_v0  ;;  %v7404_v61 = vld [vmem:[#allocation7 + $0x544] sm:$0xf]  ;;  %v7494_v42 = vld [vmem:[#allocation7 + $0x814] sm:$0xf] }
 0x17a   :  { %4205 = vmatpush.bf16.msrb.mxu0 %v6631_v62  ;;  %4171 = vmatmul.bf16.vlgmr.msra.gmra.mxu1 %v8232_v17  ;;  %v8240_v62 = vpop.f32.mrf.mxu2  ;;  %v6751_v28 = vor.u32 %v7404_v61, %v6748_v1  ;;  %v7111_v56 = vor.u32 %v7494_v42, %v7108_v43  ;;  %v7440_v61 = vld [vmem:[#allocation7 + $0x664] sm:$0xf]  ;;  %v7434_v42 = vld [vmem:[#allocation7 + $0x634] sm:$0xf] }
 0x17b   :  { %4219 = vmatpush.bf16.msrb.mxu1 %v6823_v58  ;;  %4185 = vmatmul.bf16.vlgmr.msra.gmra.mxu2 %v8205_v11  ;;  %8446 = vst [vmem:[#allocation18_spill] sm:$0xff] %v8240_v62  ;;  %v7452_v58 = vld [vmem:[#allocation7 + $0x6c4] sm:$0xf]  ;;  %v7482_v43 = vld [vmem:[#allocation7 + $0x7b4] sm:$0xf] }
 0x17c   :  { %4233 = vmatpush.bf16.msrb.mxu2 %v7015_v4  ;;  %4199 = vmatmul.bf16.vlgmr.msra.gmra.mxu3 %v8211_v23  ;;  %v6940_v4 = vld [vmem:[#allocation7 + $0x6d8] sm:$0xf0] }
 0x17d   :  { %4247 = vmatpush.bf16.msrb.mxu3 %v7207_v9  ;;  %v2494_v9 = vpop.f32.mrf.mxu0  ;;  %v6943_v20 = vor.u32 %v7452_v58, %v6940_v4  ;;  %v7488_v58 = vld [vmem:[#allocation7 + $0x7e4] sm:$0xf]  ;;  %v7084_v4 = vld [vmem:[#allocation7 + $0x7f8] sm:$0xf0] }
 0x17e   :  { %4206 = vmatpush.bf16.msrb.mxu0 %v6607_v27  ;;  %v6532_v27 = vld [vmem:[#allocation7 + $0x3a8] sm:$0xf0] }
 0x17f   :  { %4220 = vmatpush.bf16.msrb.mxu1 %v6799_v29  ;;  %v7398_v29 = vld [vmem:[#allocation7 + $0x514] sm:$0xf]  ;;  %v6535_v44 = vor.u32 %v7350_v22, %v6532_v27  ;;  %v2536_v8 = vpop.f32.mrf.mxu3  ;;  %v6484_v27 = vld [vmem:[#allocation7 + $0x348] sm:$0xf0] }
 0x180   :  { %4234 = vmatpush.bf16.msrb.mxu2 %v6991_v5  ;;  %v2509_v5 = vadd.f32 %v2508_v12, %v2494_v9  ;;  %v6727_v46 = vor.u32 %v7398_v29, %v6724_v31  ;;  %v7338_v22 = vld [vmem:[#allocation7 + $0x334] sm:$0xf] }
 0x181   :  { %4248 = vmatpush.bf16.msrb.mxu3 %v7183_v40  ;;  %v6916_v40 = vld [vmem:[#allocation7 + $0x6a8] sm:$0xf0]  ;;  %v7386_v29 = vld [vmem:[#allocation7 + $0x4b4] sm:$0xf] }
 0x182   :  { %4207 = vmatpush.bf16.msrb.mxu0 %v6583_v47  ;;  %v6919_v47 = vor.u32 %v7446_v37, %v6916_v40  ;;  %v2522_v1 = vpop.f32.mrf.mxu2  ;;  %v7087_v37 = vor.u32 %v7488_v58, %v7084_v4  ;;  %v6676_v40 = vld [vmem:[#allocation7 + $0x4c8] sm:$0xf0]  ;;  %v7476_v58 = vld [vmem:[#allocation7 + $0x784] sm:$0xf]  ;;  %v7036_v4 = vld [vmem:[#allocation7 + $0x798] sm:$0xf0] }
 0x183   :  { %4221 = vmatpush.bf16.msrb.mxu1 %v6775_v49  ;;  %v6508_v49 = vld [vmem:[#allocation7 + $0x378] sm:$0xf0]  ;;  %v2523_v7 = vadd.f32 %v2522_v1, %v2509_v5  ;;  %v6868_v5 = vld [vmem:[#allocation7 + $0x648] sm:$0xf0] }
 0x184   :  { %4235 = vmatpush.bf16.msrb.mxu2 %v6967_v50  ;;  %v7392_v50 = vld [vmem:[#allocation7 + $0x4e4] sm:$0xf]  ;;  %v6511_v9 = vor.u32 %v7344_v54, %v6508_v49  ;;  %v6487_v54 = vor.u32 %v7338_v22, %v6484_v27 }
 0x185   :  { %4249 = vmatpush.bf16.msrb.mxu3 %v7159_v63  ;;  %v6892_v63 = vld [vmem:[#allocation7 + $0x678] sm:$0xf0]  ;;  %v2496_v12 = vpop.f32.mrf.mxu0  ;;  %v8244_v31 = vadd.f32 %v2536_v8, %v2523_v7  ;;  %v7332_v49 = vld [vmem:[#allocation7 + $0x304] sm:$0xf]  ;;  %v6250_v8 = vld [vmem:[#allocation7 + $0x158] sm:$0xf] }
 0x186   :  { %4208 = vmatpush.bf16.msrb.mxu0 %v6559_v10  ;;  %v6703_v10 = vor.u32 %v7392_v50, %v6700_v53  ;;  %v6460_v50 = vld [vmem:[#allocation7 + $0x318] sm:$0xf0]  ;;  %v7380_v53 = vld [vmem:[#allocation7 + $0x484] sm:$0xf] }
 0x187   :  { %4222 = vmatpush.bf16.msrb.mxu1 %v6751_v28  ;;  %v2510_v28 = vpop.f32.mrf.mxu1  ;;  %v2538_v22 = vpop.f32.mrf.mxu3  ;;  %v6463_v27 = vor.u32 %v7332_v49, %v6460_v50  ;;  %v7324_v50 = vld [vmem:[#allocation7 + $0x2bc] sm:$0xf0] }
 0x188   :  { %4236 = vmatpush.bf16.msrb.mxu2 %v6943_v20  ;;  %v6895_v20 = vor.u32 %v7440_v61, %v6892_v63  ;;  %v6652_v61 = vld [vmem:[#allocation7 + $0x498] sm:$0xf0]  ;;  %v7428_v63 = vld [vmem:[#allocation7 + $0x604] sm:$0xf] }
 0x189   :  { %4250 = vmatpush.bf16.msrb.mxu3 %v7135_v30  ;;  %v2511_v30 = vadd.f32 %v2510_v28, %v2496_v12  ;;  %v7282_v12 = vld [vmem:[#allocation7 + $0x16c] sm:$0xf0]  ;;  %v6442_v28 = vld [vmem:[#allocation7 + $0x2d8] sm:$0xf] }
 0x18a   :  { %4209 = vmatpush.bf16.msrb.mxu0 %v6535_v44  ;;  %v7060_v44 = vld [vmem:[#allocation7 + $0x7c8] sm:$0xf0]  ;;  %v2524_v7 = vpop.f32.mrf.mxu2  ;;  %v6251_v6 = vor.u32 %v7282_v12, %v6250_v8  ;;  %v7318_v12 = vld [vmem:[#allocation7 + $0x28c] sm:$0xf0] }
 0x18b   :  { %4223 = vmatpush.bf16.msrb.mxu1 %v6727_v46  ;;  %v6679_v46 = vor.u32 %v7386_v29, %v6676_v40  ;;  %v7063_v1 = vor.u32 %v7482_v43, %v7060_v44  ;;  %v7378_v29 = vld [vmem:[#allocation7 + $0x46c] sm:$0xf0]  ;;  %v6655_v40 = vor.u32 %v7380_v53, %v6652_v61  ;;  %v7039_v44 = vor.u32 %v7476_v58, %v7036_v4  ;;  %v7420_v53 = vld [vmem:[#allocation7 + $0x5bc] sm:$0xf0]  ;;  %v6394_v4 = vld [vmem:[#allocation7 + $0x278] sm:$0xf] }
 0x18c   :  { %4237 = vmatpush.bf16.msrb.mxu2 %v6919_v47  ;;  %v6871_v47 = vor.u32 %v7434_v42, %v6868_v5  ;;  %v7426_v5 = vld [vmem:[#allocation7 + $0x5ec] sm:$0xf0] }
 0x18d   :  { %4251 = vmatpush.bf16.msrb.mxu3 %v7111_v56  ;;  %v6844_v56 = vld [vmem:[#allocation7 + $0x618] sm:$0xf0]  ;;  %v7270_v58 = vld [vmem:[#allocation7 + $0x10c] sm:$0xf0] }
 0x18e   :  { %4210 = vmatpush.bf16.msrb.mxu0 %v6511_v9  ;;  %v2525_v9 = vadd.f32 %v2524_v7, %v2511_v30  ;;  %v6847_v42 = vor.u32 %v7428_v63, %v6844_v56  ;;  %v6226_v30 = vld [vmem:[#allocation7 + $0x128] sm:$0xf]  ;;  %v7276_v7 = vld [vmem:[#allocation7 + $0x13c] sm:$0xf0]  ;;  %v6202_v56 = vld [vmem:[#allocation7 + $0xf8] sm:$0xf] }
 0x18f   :  { %4224 = vmatpush.bf16.msrb.mxu1 %v6703_v10  ;;  %v7330_v10 = vld [vmem:[#allocation7 + $0x2ec] sm:$0xf0]  ;;  %v6227_v61 = vor.u32 %v7276_v7, %v6226_v30  ;;  %v7408_v30 = vld [vmem:[#allocation7 + $0x55c] sm:$0xf0] }
 0x190   :  { %4238 = vmatpush.bf16.msrb.mxu2 %v6895_v20  ;;  %v6634_v20 = vld [vmem:[#allocation7 + $0x458] sm:$0xf]  ;;  %v8246_v43 = vadd.f32 %v2538_v22, %v2525_v9  ;;  %v6443_v62 = vor.u32 %v7330_v10, %v6442_v28  ;;  %v7366_v9 = vld [vmem:[#allocation7 + $0x40c] sm:$0xf0]  ;;  %v7264_v10 = vld [vmem:[#allocation7 + $0xdc] sm:$0xf0] }
 0x191   :  { %4252 = vmatpush.bf16.msrb.mxu3 %v7087_v37  ;;  %v6826_v37 = vld [vmem:[#allocation7 + $0x5d8] sm:$0xf]  ;;  %v6635_v59 = vor.u32 %v7378_v29, %v6634_v20  ;;  %v7414_v22 = vld [vmem:[#allocation7 + $0x58c] sm:$0xf0]  ;;  %v6370_v20 = vld [vmem:[#allocation7 + $0x248] sm:$0xf] }
 0x192   :  { %4211 = vmatpush.bf16.msrb.mxu0 %v6487_v54  ;;  %v6418_v54 = vld [vmem:[#allocation7 + $0x2a8] sm:$0xf]  ;;  %v6827_v49 = vor.u32 %v7426_v5, %v6826_v37  ;;  %v6586_v28 = vld [vmem:[#allocation7 + $0x3f8] sm:$0xf]  ;;  %v7360_v37 = vld [vmem:[#allocation7 + $0x3dc] sm:$0xf0] }
 0x193   :  { %4225 = vmatpush.bf16.msrb.mxu1 %v6679_v46  ;;  %v7372_v46 = vld [vmem:[#allocation7 + $0x43c] sm:$0xf0]  ;;  %v6419_v63 = vor.u32 %v7324_v50, %v6418_v54 }
 0x194   :  { %4239 = vmatpush.bf16.msrb.mxu2 %v6871_v47  ;;  %v6802_v47 = vld [vmem:[#allocation7 + $0x5a8] sm:$0xf] }
 0x195   :  { %4253 = vmatpush.bf16.msrb.mxu3 %v7063_v1  ;;  %v6611_v1 = vor.u32 %v7372_v46, %v6610_v25  ;;  %v6803_v8 = vor.u32 %v7420_v53, %v6802_v47  ;;  %v6395_v25 = vor.u32 %v7318_v12, %v6394_v4  ;;  %v6154_v47 = vld [vmem:[#allocation7 + $0x98] sm:$0xf]  ;;  %v7258_v53 = vld [vmem:[#allocation7 + $0xac] sm:$0xf0] }
 0x196   :  { %4212 = vmatpush.bf16.msrb.mxu0 %v6463_v27  ;;  %v6178_v27 = vld [vmem:[#allocation7 + $0xc8] sm:$0xf]  ;;  %v2550_v5 = vpop.f32.mrf.mxu0  ;;  %v7354_v4 = vld [vmem:[#allocation7 + $0x3ac] sm:$0xf0] }
 0x197   :  { %4226 = vmatpush.bf16.msrb.mxu1 %v6655_v40  ;;  %v7312_v40 = vld [vmem:[#allocation7 + $0x25c] sm:$0xf0]  ;;  %v2551_v7 = vadd.f32 %v2550_v5, %v8244_v31  ;;  %v6179_v54 = vor.u32 %v7264_v10, %v6178_v27  ;;  %v7402_v12 = vld [vmem:[#allocation7 + $0x52c] sm:$0xf0]  ;;  %v6155_v31 = vor.u32 %v7258_v53, %v6154_v47  ;;  %v6514_v27 = vld [vmem:[#allocation7 + $0x368] sm:$0xf] }
 0x198   :  { %4240 = vmatpush.bf16.msrb.mxu2 %v6847_v42  ;;  %v6562_v42 = vld [vmem:[#allocation7 + $0x3c8] sm:$0xf]  ;;  %v6371_v50 = vor.u32 %v7312_v40, %v6370_v20  ;;  %v7348_v10 = vld [vmem:[#allocation7 + $0x37c] sm:$0xf0]  ;;  %v6298_v47 = vld [vmem:[#allocation7 + $0x1b8] sm:$0xf] }
 0x199   :  { %4254 = vmatpush.bf16.msrb.mxu3 %v7039_v44  ;;  %4213 = vmatmul.bf16.vlgmr.msrb.gmra.mxu0 %v8209_v35  ;;  %v6754_v44 = vld [vmem:[#allocation7 + $0x548] sm:$0xf]  ;;  %v6563_v46 = vor.u32 %v7360_v37, %v6562_v42  ;;  %v7396_v42 = vld [vmem:[#allocation7 + $0x4fc] sm:$0xf0] }
 0x19a   :  { %4261 = vmatpush.bf16.msra.mxu0 %v6251_v6  ;;  %4227 = vmatmul.bf16.vlgmr.msrb.gmra.mxu1 %v8213_v18  ;;  %v6778_v6 = vld [vmem:[#allocation7 + $0x578] sm:$0xf]  ;;  %v6706_v40 = vld [vmem:[#allocation7 + $0x4e8] sm:$0xf] }
 0x19b   :  { %4275 = vmatpush.bf16.msra.mxu1 %v6443_v62  ;;  %4241 = vmatmul.bf16.vlgmr.msrb.gmra.mxu2 %v8228_v0  ;;  %v6587_v62 = vor.u32 %v7366_v9, %v6586_v28  ;;  %v6779_v29 = vor.u32 %v7414_v22, %v6778_v6  ;;  %v6130_v6 = vld [vmem:[#allocation7 + $0x68] sm:$0xf]  ;;  %v7252_v22 = vld [vmem:[#allocation7 + $0x7c] sm:$0xf0]  ;;  %v6707_v53 = vor.u32 %v7396_v42, %v6706_v40  ;;  %v7210_v40 = vld [vmem:[#allocation7 + $0x8d8] sm:$0xf] }
 0x19c   :  { %4289 = vmatpush.bf16.msra.mxu2 %v6635_v59  ;;  %4255 = vmatmul.bf16.vlgmr.msrb.gmra.mxu3 %v8232_v17  ;;  %v6203_v59 = vor.u32 %v7270_v58, %v6202_v56  ;;  %v7306_v56 = vld [vmem:[#allocation7 + $0x22c] sm:$0xf0]  ;;  %v6538_v58 = vld [vmem:[#allocation7 + $0x398] sm:$0xf] }
 0x19d   :  { %4303 = vmatpush.bf16.msra.mxu3 %v6827_v49  ;;  %v2564_v49 = vpop.f32.mrf.mxu1  ;;  %v6539_v9 = vor.u32 %v7354_v4, %v6538_v58  ;;  %v7342_v58 = vld [vmem:[#allocation7 + $0x34c] sm:$0xf0]  ;;  %v6682_v4 = vld [vmem:[#allocation7 + $0x4b8] sm:$0xf] }
 0x19e   :  { %4262 = vmatpush.bf16.msra.mxu0 %v6227_v61  ;;  %v6346_v61 = vld [vmem:[#allocation7 + $0x218] sm:$0xf]  ;;  %v2578_v20 = vpop.f32.mrf.mxu2 }
 0x19f   :  { %4276 = vmatpush.bf16.msra.mxu1 %v6419_v63  ;;  %v6755_v63 = vor.u32 %v7408_v30, %v6754_v44  ;;  %v6347_v28 = vor.u32 %v7306_v56, %v6346_v61  ;;  %v2592_v37 = vpop.f32.mrf.mxu3  ;;  %v6131_v44 = vor.u32 %v7252_v22, %v6130_v6  ;;  %v6490_v56 = vld [vmem:[#allocation7 + $0x338] sm:$0xf]  ;;  %v6274_v6 = vld [vmem:[#allocation7 + $0x188] sm:$0xf]  ;;  %v7288_v22 = vld [vmem:[#allocation7 + $0x19c] sm:$0xf0] }
 0x1a0   :  { %4290 = vmatpush.bf16.msra.mxu2 %v6611_v1  ;;  %v8253_v1 = vadd.f32 %v2564_v49, %v2551_v7  ;;  %v8256_v7 = vadd.f32 %v2592_v37, %v2578_v20  ;;  %v6515_v49 = vor.u32 %v7348_v10, %v6514_v27  ;;  %v6658_v27 = vld [vmem:[#allocation7 + $0x488] sm:$0xf]  ;;  %v7384_v10 = vld [vmem:[#allocation7 + $0x49c] sm:$0xf0]  ;;  %v7018_v20 = vld [vmem:[#allocation7 + $0x758] sm:$0xf] }
 0x1a1   :  { %4304 = vmatpush.bf16.msra.mxu3 %v6803_v8  ;;  %v6730_v8 = vld [vmem:[#allocation7 + $0x518] sm:$0xf] }
 0x1a2   :  { %4263 = vmatpush.bf16.msra.mxu0 %v6203_v59  ;;  %8448 = vst [vmem:[#allocation20_spill] sm:$0xff] %v8253_v1  ;;  %v6322_v59 = vld [vmem:[#allocation7 + $0x1e8] sm:$0xf]  ;;  %v7273_v1 = vld [vmem:[#allocation7 + $0x12c] sm:$0xf] }
 0x1a3   :  { %4277 = vmatpush.bf16.msra.mxu1 %v6395_v25  ;;  %v6731_v25 = vor.u32 %v7402_v12, %v6730_v8  ;;  %v6082_v12 = vld [vmem:[#allocation7 + $0x8] sm:$0xf] }
 0x1a4   :  { %4291 = vmatpush.bf16.msra.mxu2 %v6587_v62  ;;  %v7300_v62 = vld [vmem:[#allocation7 + $0x1fc] sm:$0xf0] }
 0x1a5   :  { %4305 = vmatpush.bf16.msra.mxu3 %v6779_v29  ;;  %v2552_v29 = vpop.f32.mrf.mxu0  ;;  %v2566_v30 = vpop.f32.mrf.mxu1 }
 0x1a6   :  { %4264 = vmatpush.bf16.msra.mxu0 %v6179_v54  ;;  %v2553_v5 = vadd.f32 %v2552_v29, %v8246_v43  ;;  %v6323_v54 = vor.u32 %v7300_v62, %v6322_v59  ;;  %v7390_v43 = vld [vmem:[#allocation7 + $0x4cc] sm:$0xf0]  ;;  %v6466_v59 = vld [vmem:[#allocation7 + $0x308] sm:$0xf]  ;;  %v7336_v62 = vld [vmem:[#allocation7 + $0x31c] sm:$0xf0]  ;;  %v2580_v42 = vpop.f32.mrf.mxu2 }
 0x1a7   :  { %4278 = vmatpush.bf16.msra.mxu1 %v6371_v50  ;;  %v6106_v50 = vld [vmem:[#allocation7 + $0x38] sm:$0xf]  ;;  %v7474_v29 = vld [vmem:[#allocation7 + $0x76c] sm:$0xf0]  ;;  %v2594_v37 = vpop.f32.mrf.mxu3 }
 0x1a8   :  { %4292 = vmatpush.bf16.msra.mxu2 %v6563_v46  ;;  %v7246_v46 = vld [vmem:[#allocation7 + $0x4c] sm:$0xf0]  ;;  %v8258_v61 = vadd.f32 %v2566_v30, %v2553_v5  ;;  %v7279_v30 = vld [vmem:[#allocation7 + $0x15c] sm:$0xf] }
 0x1a9   :  { %4306 = vmatpush.bf16.msra.mxu3 %v6755_v63  ;;  %v7294_v63 = vld [vmem:[#allocation7 + $0x1cc] sm:$0xf0]  ;;  %v6107_v8 = vor.u32 %v7246_v46, %v6106_v50  ;;  %v6275_v50 = vor.u32 %v7288_v22, %v6274_v6  ;;  %v6467_v46 = vor.u32 %v7336_v62, %v6466_v59 }
 0x1aa   :  { %4265 = vmatpush.bf16.msra.mxu0 %v6155_v31  ;;  %8449 = vst [vmem:[#allocation21_spill] sm:$0xff] %v8258_v61  ;;  %v7240_v31 = vld [vmem:[#allocation7 + $0x1c] sm:$0xf0]  ;;  %v7462_v62 = vld [vmem:[#allocation7 + $0x70c] sm:$0xf0] }
 0x1ab   :  { %4279 = vmatpush.bf16.msra.mxu1 %v6347_v28  ;;  %v6299_v28 = vor.u32 %v7294_v63, %v6298_v47  ;;  %v6083_v5 = vor.u32 %v7240_v31, %v6082_v12  ;;  %v7327_v47 = vld [vmem:[#allocation7 + $0x2dc] sm:$0xf]  ;;  %v6659_v63 = vor.u32 %v7384_v10, %v6658_v27  ;;  %v7468_v61 = vld [vmem:[#allocation7 + $0x73c] sm:$0xf0]  ;;  %v7162_v27 = vld [vmem:[#allocation7 + $0x878] sm:$0xf] }
 0x1ac   :  { %4293 = vmatpush.bf16.msra.mxu2 %v6539_v9  ;;  %v6491_v9 = vor.u32 %v7342_v58, %v6490_v56  ;;  %v7019_v56 = vor.u32 %v7474_v29, %v7018_v20  ;;  %v7516_v31 = vld [vmem:[#allocation7 + $0x8bc] sm:$0xf0]  ;;  %v7510_v20 = vld [vmem:[#allocation7 + $0x88c] sm:$0xf0]  ;;  %v7267_v29 = vld [vmem:[#allocation7 + $0xfc] sm:$0xf] }
 0x1ad   :  { %4307 = vmatpush.bf16.msra.mxu3 %v6731_v25  ;;  %v6683_v25 = vor.u32 %v7390_v43, %v6682_v4  ;;  %v6994_v43 = vld [vmem:[#allocation7 + $0x728] sm:$0xf] }
 0x1ae   :  { %4266 = vmatpush.bf16.msra.mxu0 %v6131_v44  ;;  %v7522_v44 = vld [vmem:[#allocation7 + $0x8ec] sm:$0xf0]  ;;  %v6995_v6 = vor.u32 %v7468_v61, %v6994_v43  ;;  %v6396_v61 = vld [vmem:[#allocation7 + $0x290] sm:$0xf0] }
 0x1af   :  { %4280 = vmatpush.bf16.msra.mxu1 %v6323_v54  ;;  %v6252_v54 = vld [vmem:[#allocation7 + $0x170] sm:$0xf0]  ;;  %v7211_v58 = vor.u32 %v7522_v44, %v7210_v40 }
 0x1b0   :  { %4294 = vmatpush.bf16.msra.mxu2 %v6515_v49  ;;  %v8260_v49 = vadd.f32 %v2594_v37, %v2580_v42  ;;  %v6255_v4 = vor.u32 %v7279_v30, %v6252_v54  ;;  %v6228_v42 = vld [vmem:[#allocation7 + $0x140] sm:$0xf0]  ;;  %v6204_v40 = vld [vmem:[#allocation7 + $0x110] sm:$0xf0]  ;;  %v7315_v37 = vld [vmem:[#allocation7 + $0x27c] sm:$0xf] }
 0x1b1   :  { %4308 = vmatpush.bf16.msra.mxu3 %v6707_v53  ;;  %v6444_v53 = vld [vmem:[#allocation7 + $0x2f0] sm:$0xf0]  ;;  %v6231_v59 = vor.u32 %v7273_v1, %v6228_v42  ;;  %v6207_v44 = vor.u32 %v7267_v29, %v6204_v40  ;;  %v6946_v30 = vld [vmem:[#allocation7 + $0x6c8] sm:$0xf]  ;;  %v7456_v54 = vld [vmem:[#allocation7 + $0x6dc] sm:$0xf0] }
 0x1b2   :  { %4267 = vmatpush.bf16.msra.mxu0 %v6107_v8  ;;  %v7186_v8 = vld [vmem:[#allocation7 + $0x8a8] sm:$0xf]  ;;  %v6447_v12 = vor.u32 %v7327_v47, %v6444_v53  ;;  %v7504_v47 = vld [vmem:[#allocation7 + $0x85c] sm:$0xf0]  ;;  %v7261_v53 = vld [vmem:[#allocation7 + $0xcc] sm:$0xf] }
 0x1b3   :  { %4281 = vmatpush.bf16.msra.mxu1 %v6299_v28  ;;  %v7321_v28 = vld [vmem:[#allocation7 + $0x2ac] sm:$0xf]  ;;  %v7187_v22 = vor.u32 %v7516_v31, %v7186_v8  ;;  %v6947_v8 = vor.u32 %v7456_v54, %v6946_v30  ;;  %v7492_v30 = vld [vmem:[#allocation7 + $0x7fc] sm:$0xf0] }
 0x1b4   :  { %4295 = vmatpush.bf16.msra.mxu2 %v6491_v9  ;;  %v6420_v9 = vld [vmem:[#allocation7 + $0x2c0] sm:$0xf0]  ;;  %v7249_v54 = vld [vmem:[#allocation7 + $0x6c] sm:$0xf] }
 0x1b5   :  { %4309 = vmatpush.bf16.msra.mxu3 %v6683_v25  ;;  %v6970_v25 = vld [vmem:[#allocation7 + $0x6f8] sm:$0xf]  ;;  %v6423_v10 = vor.u32 %v7321_v28, %v6420_v9  ;;  %v7450_v9 = vld [vmem:[#allocation7 + $0x6ac] sm:$0xf0] }
 0x1b6   :  { %4268 = vmatpush.bf16.msra.mxu0 %v6083_v5  ;;  %v6971_v1 = vor.u32 %v7462_v62, %v6970_v25  ;;  %v7163_v5 = vor.u32 %v7510_v20, %v7162_v27  ;;  %v6922_v28 = vld [vmem:[#allocation7 + $0x698] sm:$0xf]  ;;  %v7498_v25 = vld [vmem:[#allocation7 + $0x82c] sm:$0xf0]  ;;  %v7255_v62 = vld [vmem:[#allocation7 + $0x9c] sm:$0xf] }
 0x1b7   :  { %4282 = vmatpush.bf16.msra.mxu1 %v6275_v50  ;;  %v7138_v50 = vld [vmem:[#allocation7 + $0x848] sm:$0xf]  ;;  %v6156_v27 = vld [vmem:[#allocation7 + $0xb0] sm:$0xf0]  ;;  %v6923_v29 = vor.u32 %v7450_v9, %v6922_v28  ;;  %v7438_v28 = vld [vmem:[#allocation7 + $0x64c] sm:$0xf0] }
 0x1b8   :  { %4296 = vmatpush.bf16.msra.mxu2 %v6467_v46  ;;  %v6399_v46 = vor.u32 %v7315_v37, %v6396_v61  ;;  %v7139_v31 = vor.u32 %v7504_v47, %v7138_v50  ;;  %v6348_v20 = vld [vmem:[#allocation7 + $0x230] sm:$0xf0]  ;;  %v6159_v40 = vor.u32 %v7255_v62, %v6156_v27  ;;  %v6898_v37 = vld [vmem:[#allocation7 + $0x668] sm:$0xf]  ;;  %v7444_v61 = vld [vmem:[#allocation7 + $0x67c] sm:$0xf0] }
 0x1b9   :  { %4310 = vmatpush.bf16.msra.mxu3 %v6659_v63  ;;  %4269 = vmatmul.bf16.vlgmr.msra.gmra.mxu0 %v8205_v11  ;;  %v6180_v63 = vld [vmem:[#allocation7 + $0xe0] sm:$0xf0]  ;;  %v7066_v9 = vld [vmem:[#allocation7 + $0x7b8] sm:$0xf]  ;;  %v6108_v62 = vld [vmem:[#allocation7 + $0x50] sm:$0xf0] }
 0x1ba   :  { %4317 = vmatpush.bf16.msrb.mxu0 %v7019_v56  ;;  %4283 = vmatmul.bf16.vlgmr.msra.gmra.mxu1 %v8211_v23  ;;  %v2606_v56 = vpop.f32.mrf.mxu0  ;;  %v6183_v42 = vor.u32 %v7261_v53, %v6180_v63  ;;  %v6132_v50 = vld [vmem:[#allocation7 + $0x80] sm:$0xf0]  ;;  %v7297_v63 = vld [vmem:[#allocation7 + $0x1ec] sm:$0xf]  ;;  %v7291_v27 = vld [vmem:[#allocation7 + $0x1bc] sm:$0xf] }
 0x1bb   :  { %4331 = vmatpush.bf16.msrb.mxu1 %v7211_v58  ;;  %4297 = vmatmul.bf16.vlgmr.msra.gmra.mxu2 %v8209_v35  ;;  %v7309_v58 = vld [vmem:[#allocation7 + $0x24c] sm:$0xf]  ;;  %v2607_v43 = vadd.f32 %v2606_v56, %v8256_v7  ;;  %v6324_v56 = vld [vmem:[#allocation7 + $0x200] sm:$0xf0] }
 0x1bc   :  { %4345 = vmatpush.bf16.msrb.mxu2 %v6255_v4  ;;  %4311 = vmatmul.bf16.vlgmr.msra.gmra.mxu3 %v8213_v18  ;;  %v6372_v4 = vld [vmem:[#allocation7 + $0x260] sm:$0xf0] }
 0x1bd   :  { %4359 = vmatpush.bf16.msrb.mxu3 %v6447_v12  ;;  %v2620_v12 = vpop.f32.mrf.mxu1 }
 0x1be   :  { %4318 = vmatpush.bf16.msrb.mxu0 %v6995_v6  ;;  %v7114_v6 = vld [vmem:[#allocation7 + $0x818] sm:$0xf] }
 0x1bf   :  { %4332 = vmatpush.bf16.msrb.mxu1 %v7187_v22  ;;  %v6375_v22 = vor.u32 %v7309_v58, %v6372_v4  ;;  %v7115_v7 = vor.u32 %v7498_v25, %v7114_v6  ;;  %v2648_v53 = vpop.f32.mrf.mxu3  ;;  %v6899_v4 = vor.u32 %v7444_v61, %v6898_v37  ;;  %v6327_v6 = vor.u32 %v7297_v63, %v6324_v56  ;;  %v7243_v25 = vld [vmem:[#allocation7 + $0x3c] sm:$0xf]  ;;  %v7042_v37 = vld [vmem:[#allocation7 + $0x788] sm:$0xf]  ;;  %v7480_v61 = vld [vmem:[#allocation7 + $0x79c] sm:$0xf0] }
 0x1c0   :  { %4346 = vmatpush.bf16.msrb.mxu2 %v6231_v59  ;;  %v2621_v59 = vadd.f32 %v2620_v12, %v2607_v43  ;;  %v6636_v63 = vld [vmem:[#allocation7 + $0x470] sm:$0xf0]  ;;  %v7423_v56 = vld [vmem:[#allocation7 + $0x5dc] sm:$0xf] }
 0x1c1   :  { %4360 = vmatpush.bf16.msrb.mxu3 %v6423_v10  ;;  %v7303_v10 = vld [vmem:[#allocation7 + $0x21c] sm:$0xf] }
 0x1c2   :  { %4319 = vmatpush.bf16.msrb.mxu0 %v6971_v1  ;;  %v7090_v1 = vld [vmem:[#allocation7 + $0x7e8] sm:$0xf]  ;;  %v2608_v47 = vpop.f32.mrf.mxu0 }
 0x1c3   :  { %4333 = vmatpush.bf16.msrb.mxu1 %v7163_v5  ;;  %v6351_v5 = vor.u32 %v7303_v10, %v6348_v20  ;;  %v2609_v58 = vadd.f32 %v2608_v47, %v8260_v49  ;;  %v7091_v12 = vor.u32 %v7492_v30, %v7090_v1  ;;  %v6300_v10 = vld [vmem:[#allocation7 + $0x1d0] sm:$0xf0]  ;;  %v6850_v20 = vld [vmem:[#allocation7 + $0x608] sm:$0xf]  ;;  %v7237_v1 = vld [vmem:[#allocation7 + $0xc] sm:$0xf] }
 0x1c4   :  { %4347 = vmatpush.bf16.msrb.mxu2 %v6207_v44  ;;  %v2634_v44 = vpop.f32.mrf.mxu2  ;;  %v6084_v30 = vld [vmem:[#allocation7 + $0x20] sm:$0xf0] }
 0x1c5   :  { %4361 = vmatpush.bf16.msrb.mxu3 %v6399_v46  ;;  %v2635_v46 = vadd.f32 %v2634_v44, %v2621_v59  ;;  %v2622_v43 = vpop.f32.mrf.mxu1  ;;  %v7486_v59 = vld [vmem:[#allocation7 + $0x7cc] sm:$0xf0] }
 0x1c6   :  { %4320 = vmatpush.bf16.msrb.mxu0 %v6947_v8 }
 0x1c7   :  { %4334 = vmatpush.bf16.msrb.mxu1 %v7139_v31  ;;  %v8268_v8 = vadd.f32 %v2648_v53, %v2635_v46  ;;  %v6135_v31 = vor.u32 %v7249_v54, %v6132_v50  ;;  %v7285_v54 = vld [vmem:[#allocation7 + $0x18c] sm:$0xf]  ;;  %v6276_v50 = vld [vmem:[#allocation7 + $0x1a0] sm:$0xf0]  ;;  %v2650_v47 = vpop.f32.mrf.mxu3  ;;  %v7375_v53 = vld [vmem:[#allocation7 + $0x45c] sm:$0xf] }
 0x1c8   :  { %4348 = vmatpush.bf16.msrb.mxu2 %v6183_v42  ;;  %v6874_v42 = vld [vmem:[#allocation7 + $0x638] sm:$0xf] }
 0x1c9   :  { %4362 = vmatpush.bf16.msrb.mxu3 %v6375_v22  ;;  %v2623_v22 = vadd.f32 %v2622_v43, %v2609_v58  ;;  %v6875_v49 = vor.u32 %v7438_v28, %v6874_v42  ;;  %v7471_v43 = vld [vmem:[#allocation7 + $0x75c] sm:$0xf]  ;;  %v7043_v42 = vor.u32 %v7480_v61, %v7042_v37  ;;  %v6087_v28 = vor.u32 %v7237_v1, %v6084_v30  ;;  %v7188_v37 = vld [vmem:[#allocation7 + $0x8c0] sm:$0xf0] }
 0x1ca   :  { %4321 = vmatpush.bf16.msrb.mxu0 %v6923_v29  ;;  %v7432_v29 = vld [vmem:[#allocation7 + $0x61c] sm:$0xf0]  ;;  %v7363_v30 = vld [vmem:[#allocation7 + $0x3fc] sm:$0xf] }
 0x1cb   :  { %4335 = vmatpush.bf16.msrb.mxu1 %v7115_v7  ;;  %v7067_v7 = vor.u32 %v7486_v59, %v7066_v9  ;;  %v6851_v58 = vor.u32 %v7432_v29, %v6850_v20  ;;  %v7519_v9 = vld [vmem:[#allocation7 + $0x8dc] sm:$0xf]  ;;  %v6279_v59 = vor.u32 %v7285_v54, %v6276_v50  ;;  %v6804_v29 = vld [vmem:[#allocation7 + $0x5c0] sm:$0xf0]  ;;  %v6588_v54 = vld [vmem:[#allocation7 + $0x410] sm:$0xf0] }
 0x1cc   :  { %4349 = vmatpush.bf16.msrb.mxu2 %v6159_v40  ;;  %v6111_v40 = vor.u32 %v7243_v25, %v6108_v62  ;;  %v2636_v44 = vpop.f32.mrf.mxu2  ;;  %v7411_v50 = vld [vmem:[#allocation7 + $0x57c] sm:$0xf] }
 0x1cd   :  { %4363 = vmatpush.bf16.msrb.mxu3 %v6351_v5  ;;  %v6303_v5 = vor.u32 %v7291_v27, %v6300_v10  ;;  %v2637_v46 = vadd.f32 %v2636_v44, %v2623_v22  ;;  %v6639_v22 = vor.u32 %v7375_v53, %v6636_v63  ;;  %v7369_v27 = vld [vmem:[#allocation7 + $0x42c] sm:$0xf]  ;;  %v6612_v10 = vld [vmem:[#allocation7 + $0x440] sm:$0xf0]  ;;  %v7459_v53 = vld [vmem:[#allocation7 + $0x6fc] sm:$0xf] }
 0x1ce   :  { %4322 = vmatpush.bf16.msrb.mxu0 %v6899_v4  ;;  %v6828_v4 = vld [vmem:[#allocation7 + $0x5f0] sm:$0xf0]  ;;  %v7465_v44 = vld [vmem:[#allocation7 + $0x72c] sm:$0xf]  ;;  %v6615_v61 = vor.u32 %v7369_v27, %v6612_v10  ;;  %v7140_v27 = vld [vmem:[#allocation7 + $0x860] sm:$0xf0] }
 0x1cf   :  { %4336 = vmatpush.bf16.msrb.mxu1 %v7091_v12  ;;  %v7020_v12 = vld [vmem:[#allocation7 + $0x770] sm:$0xf0]  ;;  %v6831_v25 = vor.u32 %v7423_v56, %v6828_v4  ;;  %v7507_v56 = vld [vmem:[#allocation7 + $0x87c] sm:$0xf]  ;;  %v6591_v4 = vor.u32 %v7363_v30, %v6588_v54 }
 0x1d0   :  { %4350 = vmatpush.bf16.msrb.mxu2 %v6135_v31  ;;  %v8270_v31 = vadd.f32 %v2650_v47, %v2637_v46  ;;  %v7023_v62 = vor.u32 %v7471_v43, %v7020_v12  ;;  %v6780_v47 = vld [vmem:[#allocation7 + $0x590] sm:$0xf0] }
 0x1d1   :  { %4364 = vmatpush.bf16.msrb.mxu3 %v6327_v6  ;;  %v7212_v6 = vld [vmem:[#allocation7 + $0x8f0] sm:$0xf0]  ;;  %v6783_v43 = vor.u32 %v7411_v50, %v6780_v47  ;;  %v7345_v47 = vld [vmem:[#allocation7 + $0x36c] sm:$0xf] }
 0x1d2   :  { %4323 = vmatpush.bf16.msrb.mxu0 %v6875_v49  ;;  %v7417_v49 = vld [vmem:[#allocation7 + $0x5ac] sm:$0xf]  ;;  %v7215_v20 = vor.u32 %v7519_v9, %v7212_v6  ;;  %v6972_v63 = vld [vmem:[#allocation7 + $0x710] sm:$0xf0] }
 0x1d3   :  { %4337 = vmatpush.bf16.msrb.mxu1 %v7067_v7  ;;  %v6996_v7 = vld [vmem:[#allocation7 + $0x740] sm:$0xf0]  ;;  %v6807_v1 = vor.u32 %v7417_v49, %v6804_v29  ;;  %v6975_v12 = vor.u32 %v7459_v53, %v6972_v63  ;;  %v7405_v9 = vld [vmem:[#allocation7 + $0x54c] sm:$0xf]  ;;  %v7351_v29 = vld [vmem:[#allocation7 + $0x39c] sm:$0xf] }
 0x1d4   :  { %4351 = vmatpush.bf16.msrb.mxu2 %v6111_v40  ;;  %v7513_v40 = vld [vmem:[#allocation7 + $0x8ac] sm:$0xf]  ;;  %v7116_v30 = vld [vmem:[#allocation7 + $0x830] sm:$0xf0]  ;;  %v6516_v53 = vld [vmem:[#allocation7 + $0x380] sm:$0xf0] }
 0x1d5   :  { %4365 = vmatpush.bf16.msrb.mxu3 %v6303_v5  ;;  %v6999_v5 = vor.u32 %v7465_v44, %v6996_v7  ;;  %v7191_v46 = vor.u32 %v7513_v40, %v7188_v37  ;;  %v6540_v44 = vld [vmem:[#allocation7 + $0x3b0] sm:$0xf0]  ;;  %v7399_v7 = vld [vmem:[#allocation7 + $0x51c] sm:$0xf]  ;;  %v7393_v63 = vld [vmem:[#allocation7 + $0x4ec] sm:$0xf] }
 0x1d6   :  { %4324 = vmatpush.bf16.msrb.mxu0 %v6851_v58  ;;  %v7164_v58 = vld [vmem:[#allocation7 + $0x890] sm:$0xf0]  ;;  %v6543_v54 = vor.u32 %v7351_v29, %v6540_v44  ;;  %v4102_v29 = vpop.f32.mrf.mxu0  ;;  %v7483_v44 = vld [vmem:[#allocation7 + $0x7bc] sm:$0xf] }
 0x1d7   :  { %4338 = vmatpush.bf16.msrb.mxu1 %v7043_v42  ;;  %v7357_v42 = vld [vmem:[#allocation7 + $0x3cc] sm:$0xf]  ;;  %v7167_v6 = vor.u32 %v7507_v56, %v7164_v58  ;;  %v6732_v37 = vld [vmem:[#allocation7 + $0x530] sm:$0xf0]  ;;  %v6708_v58 = vld [vmem:[#allocation7 + $0x500] sm:$0xf0] }
 0x1d8   :  { %4352 = vmatpush.bf16.msrb.mxu2 %v6087_v28  ;;  %v6564_v28 = vld [vmem:[#allocation7 + $0x3e0] sm:$0xf0]  ;;  %v6735_v50 = vor.u32 %v7399_v7, %v6732_v37  ;;  %v7068_v7 = vld [vmem:[#allocation7 + $0x7d0] sm:$0xf0] }
 0x1d9   :  { %4366 = vmatpush.bf16.msrb.mxu3 %v6279_v59  ;;  %4325 = vmatmul.bf16.vlgmr.msrb.gmra.mxu0 %v8228_v0  ;;  %v6756_v59 = vld [vmem:[#allocation7 + $0x560] sm:$0xf0]  ;;  %v6567_v10 = vor.u32 %v7357_v42, %v6564_v28  ;;  %v6519_v28 = vor.u32 %v7345_v47, %v6516_v53  ;;  %v7477_v53 = vld [vmem:[#allocation7 + $0x78c] sm:$0xf] }
 0x1da   :  { %4373 = vmatpush.bf16.msra.mxu0 %v6639_v22  ;;  %4339 = vmatmul.bf16.vlgmr.msrb.gmra.mxu1 %v8232_v17  ;;  %v7453_v22 = vld [vmem:[#allocation7 + $0x6cc] sm:$0xf]  ;;  %v6759_v49 = vor.u32 %v7405_v9, %v6756_v59  ;;  %v7092_v42 = vld [vmem:[#allocation7 + $0x800] sm:$0xf0]  ;;  %v6711_v9 = vor.u32 %v7393_v63, %v6708_v58  ;;  %v7339_v59 = vld [vmem:[#allocation7 + $0x33c] sm:$0xf] }
 0x1db   :  { %4387 = vmatpush.bf16.msra.mxu1 %v6831_v25  ;;  %4353 = vmatmul.bf16.vlgmr.msrb.gmra.mxu2 %v8205_v11  ;;  %v6948_v25 = vld [vmem:[#allocation7 + $0x6e0] sm:$0xf0]  ;;  %v7283_v58 = vld [vmem:[#allocation7 + $0x174] sm:$0xf0] }
 0x1dc   :  { %4401 = vmatpush.bf16.msra.mxu2 %v7023_v62  ;;  %4367 = vmatmul.bf16.vlgmr.msrb.gmra.mxu3 %v8211_v23  ;;  %v7501_v62 = vld [vmem:[#allocation7 + $0x84c] sm:$0xf]  ;;  %v6852_v47 = vld [vmem:[#allocation7 + $0x620] sm:$0xf0] }
 0x1dd   :  { %4415 = vmatpush.bf16.msra.mxu3 %v7215_v20  ;;  %v6951_v20 = vor.u32 %v7453_v22, %v6948_v25  ;;  %v7143_v40 = vor.u32 %v7501_v62, %v7140_v27  ;;  %v6492_v22 = vld [vmem:[#allocation7 + $0x350] sm:$0xf0]  ;;  %v7387_v25 = vld [vmem:[#allocation7 + $0x4bc] sm:$0xf]  ;;  %v2175_v62 = vadd.f32 %v8144_v26, %v8142_v15  ;;  %v7429_v15 = vld [vmem:[#allocation7 + $0x60c] sm:$0xf] }
 0x1de   :  { %4374 = vmatpush.bf16.msra.mxu0 %v6615_v61  ;;  %v7447_v61 = vld [vmem:[#allocation7 + $0x69c] sm:$0xf]  ;;  %v6495_v37 = vor.u32 %v7339_v59, %v6492_v22  ;;  %v7044_v63 = vld [vmem:[#allocation7 + $0x7a0] sm:$0xf0]  ;;  %v6834_v59 = vld [vmem:[#allocation7 + $0x5e0] sm:$0xf] }
 0x1df   :  { %4388 = vmatpush.bf16.msra.mxu1 %v6807_v1  ;;  %v6924_v1 = vld [vmem:[#allocation7 + $0x6b0] sm:$0xf0]  ;;  %v2189_v26 = vadd.f32 %v8150_v51, %v2175_v62  ;;  %v7427_v22 = vld [vmem:[#allocation7 + $0x5f4] sm:$0xf0]  ;;  %v7047_v62 = vor.u32 %v7477_v53, %v7044_v63  ;;  %v6210_v53 = vld [vmem:[#allocation7 + $0x100] sm:$0xf] }
 0x1e0   :  { %4402 = vmatpush.bf16.msra.mxu2 %v6999_v5  ;;  %v7495_v5 = vld [vmem:[#allocation7 + $0x81c] sm:$0xf]  ;;  %v7271_v63 = vld [vmem:[#allocation7 + $0x114] sm:$0xf0] }
 0x1e1   :  { %4416 = vmatpush.bf16.msra.mxu3 %v7191_v46  ;;  %v6927_v46 = vor.u32 %v7447_v61, %v6924_v1  ;;  %v7119_v56 = vor.u32 %v7495_v5, %v7116_v30  ;;  %v7333_v61 = vld [vmem:[#allocation7 + $0x30c] sm:$0xf]  ;;  %v6468_v1 = vld [vmem:[#allocation7 + $0x320] sm:$0xf0]  ;;  %v2203_v51 = vadd.f32 %v8152_v55, %v2189_v26  ;;  %v6810_v55 = vld [vmem:[#allocation7 + $0x5b0] sm:$0xf] }
 0x1e2   :  { %4375 = vmatpush.bf16.msra.mxu0 %v6591_v4  ;;  %v7441_v4 = vld [vmem:[#allocation7 + $0x66c] sm:$0xf] }
 0x1e3   :  { %4389 = vmatpush.bf16.msra.mxu1 %v6783_v43  ;;  %v6900_v43 = vld [vmem:[#allocation7 + $0x680] sm:$0xf0] }
 0x1e4   :  { %4403 = vmatpush.bf16.msra.mxu2 %v6975_v12  ;;  %v7489_v12 = vld [vmem:[#allocation7 + $0x7ec] sm:$0xf] }
 0x1e5   :  { %4417 = vmatpush.bf16.msra.mxu3 %v7167_v6  ;;  %v6903_v6 = vor.u32 %v7441_v4, %v6900_v43  ;;  %v7095_v27 = vor.u32 %v7489_v12, %v7092_v42  ;;  %v6450_v4 = vld [vmem:[#allocation7 + $0x2e0] sm:$0xf]  ;;  %v6471_v43 = vor.u32 %v7333_v61, %v6468_v1  ;;  %v7331_v12 = vld [vmem:[#allocation7 + $0x2f4] sm:$0xf0]  ;;  %v2217_v61 = vadd.f32 %v8159_v19, %v2203_v51 }
 0x1e6   :  { %4376 = vmatpush.bf16.msra.mxu0 %v6567_v10  ;;  %v6684_v10 = vld [vmem:[#allocation7 + $0x4d0] sm:$0xf0]  ;;  %v6642_v42 = vld [vmem:[#allocation7 + $0x460] sm:$0xf]  ;;  %v6835_v1 = vor.u32 %v7427_v22, %v6834_v59  ;;  %v6211_v59 = vor.u32 %v7271_v63, %v6210_v53 }
 0x1e7   :  { %4390 = vmatpush.bf16.msra.mxu1 %v6759_v49  ;;  %v7435_v49 = vld [vmem:[#allocation7 + $0x63c] sm:$0xf]  ;;  %v6687_v5 = vor.u32 %v7387_v25, %v6684_v10  ;;  %v4103_v25 = vadd.f32 %v4102_v29, %v8155_v3  ;;  %v4130_v10 = vpop.f32.mrf.mxu2  ;;  %v7421_v3 = vld [vmem:[#allocation7 + $0x5c4] sm:$0xf0] }
 0x1e8   :  { %4404 = vmatpush.bf16.msra.mxu2 %v6951_v20  ;;  %v6876_v20 = vld [vmem:[#allocation7 + $0x650] sm:$0xf0] }
 0x1e9   :  { %4418 = vmatpush.bf16.msra.mxu3 %v7143_v40  ;;  %v4116_v40 = vpop.f32.mrf.mxu1  ;;  %v6879_v30 = vor.u32 %v7435_v49, %v6876_v20  ;;  %v6451_v49 = vor.u32 %v7331_v12, %v6450_v4  ;;  %v6594_v12 = vld [vmem:[#allocation7 + $0x400] sm:$0xf] }
 0x1ea   :  { %4377 = vmatpush.bf16.msra.mxu0 %v6543_v54  ;;  %v7381_v54 = vld [vmem:[#allocation7 + $0x48c] sm:$0xf]  ;;  %v4117_v29 = vadd.f32 %v4116_v40, %v4103_v25  ;;  %v7319_v40 = vld [vmem:[#allocation7 + $0x294] sm:$0xf0]  ;;  %v7265_v25 = vld [vmem:[#allocation7 + $0xe4] sm:$0xf0] }
 0x1eb   :  { %4391 = vmatpush.bf16.msra.mxu1 %v6735_v50  ;;  %v6660_v50 = vld [vmem:[#allocation7 + $0x4a0] sm:$0xf0] }
 0x1ec   :  { %4405 = vmatpush.bf16.msra.mxu2 %v6927_v46  ;;  %v7071_v46 = vor.u32 %v7483_v44, %v7068_v7  ;;  %v6234_v44 = vld [vmem:[#allocation7 + $0x130] sm:$0xf]  ;;  %v7277_v7 = vld [vmem:[#allocation7 + $0x144] sm:$0xf0]  ;;  %v4131_v4 = vadd.f32 %v4130_v10, %v4117_v29 }
 0x1ed   :  { %4419 = vmatpush.bf16.msra.mxu3 %v7119_v56  ;;  %v6258_v56 = vld [vmem:[#allocation7 + $0x160] sm:$0xf]  ;;  %v6235_v26 = vor.u32 %v7277_v7, %v6234_v44  ;;  %v6570_v44 = vld [vmem:[#allocation7 + $0x3d0] sm:$0xf]  ;;  %v7361_v7 = vld [vmem:[#allocation7 + $0x3e4] sm:$0xf0] }
 0x1ee   :  { %4378 = vmatpush.bf16.msra.mxu0 %v6519_v28  ;;  %v7379_v28 = vld [vmem:[#allocation7 + $0x474] sm:$0xf0] }
 0x1ef   :  { %4392 = vmatpush.bf16.msra.mxu1 %v6711_v9  ;;  %v6663_v9 = vor.u32 %v7381_v54, %v6660_v50  ;;  %v6643_v20 = vor.u32 %v7379_v28, %v6642_v42  ;;  %v7373_v54 = vld [vmem:[#allocation7 + $0x444] sm:$0xf0]  ;;  %v4104_v50 = vpop.f32.mrf.mxu0  ;;  %v7367_v42 = vld [vmem:[#allocation7 + $0x414] sm:$0xf0]  ;;  %v6786_v28 = vld [vmem:[#allocation7 + $0x580] sm:$0xf] }
 0x1f0   :  { %4406 = vmatpush.bf16.msra.mxu2 %v6903_v6  ;;  %v6855_v6 = vor.u32 %v7429_v15, %v6852_v47  ;;  %v6595_v51 = vor.u32 %v7367_v42, %v6594_v12  ;;  %v7403_v12 = vld [vmem:[#allocation7 + $0x534] sm:$0xf0] }
 0x1f1   :  { %4420 = vmatpush.bf16.msra.mxu3 %v7095_v27  ;;  %v6259_v27 = vor.u32 %v7283_v58, %v6258_v56  ;;  %v4118_v15 = vpop.f32.mrf.mxu1  ;;  %v6402_v56 = vld [vmem:[#allocation7 + $0x280] sm:$0xf]  ;;  %v2231_v58 = vadd.f32 %v8161_v24, %v2217_v61  ;;  %v6186_v24 = vld [vmem:[#allocation7 + $0xd0] sm:$0xf] }
 0x1f2   :  { %4379 = vmatpush.bf16.msra.mxu0 %v6495_v37  ;;  %v6426_v37 = vld [vmem:[#allocation7 + $0x2b0] sm:$0xf]  ;;  %v6403_v22 = vor.u32 %v7319_v40, %v6402_v56  ;;  %v6738_v40 = vld [vmem:[#allocation7 + $0x520] sm:$0xf] }
 0x1f3   :  { %4393 = vmatpush.bf16.msra.mxu1 %v6687_v5  ;;  %v7325_v5 = vld [vmem:[#allocation7 + $0x2c4] sm:$0xf0] }
 0x1f4   :  { %4407 = vmatpush.bf16.msra.mxu2 %v6879_v30  ;;  %v6618_v30 = vld [vmem:[#allocation7 + $0x430] sm:$0xf]  ;;  %v6427_v47 = vor.u32 %v7325_v5, %v6426_v37  ;;  %v4132_v37 = vpop.f32.mrf.mxu2  ;;  %v7409_v5 = vld [vmem:[#allocation7 + $0x564] sm:$0xf0] }
 0x1f5   :  { %4421 = vmatpush.bf16.msra.mxu3 %v7071_v46  ;;  %v4144_v46 = vpop.f32.mrf.mxu3  ;;  %v6619_v19 = vor.u32 %v7373_v54, %v6618_v30 }
 0x1f6   :  { %4380 = vmatpush.bf16.msra.mxu0 %v6471_v43  ;;  %v6811_v43 = vor.u32 %v7421_v3, %v6810_v55  ;;  %v4145_v10 = vadd.f32 %v4144_v46, %v4131_v4  ;;  %v6162_v46 = vld [vmem:[#allocation7 + $0xa0] sm:$0xf] }
 0x1f7   :  { %4394 = vmatpush.bf16.msra.mxu1 %v6663_v9  ;;  %v7415_v9 = vld [vmem:[#allocation7 + $0x594] sm:$0xf0]  ;;  %v4158_v61 = vpop.f32.mrf.mxu0  ;;  %v6546_v4 = vld [vmem:[#allocation7 + $0x3a0] sm:$0xf] }
 0x1f8   :  { %4408 = vmatpush.bf16.msra.mxu2 %v6855_v6  ;;  %v4105_v6 = vadd.f32 %v4104_v50, %v2231_v58  ;;  %v4159_v54 = vadd.f32 %v4158_v61, %v4145_v10  ;;  %v6187_v50 = vor.u32 %v7265_v25, %v6186_v24  ;;  %v7307_v58 = vld [vmem:[#allocation7 + $0x234] sm:$0xf0]  ;;  %v7253_v24 = vld [vmem:[#allocation7 + $0x84] sm:$0xf0]  ;;  %v6739_v10 = vor.u32 %v7403_v12, %v6738_v40  ;;  %v6282_v40 = vld [vmem:[#allocation7 + $0x190] sm:$0xf] }
 0x1f9   :  { %4422 = vmatpush.bf16.msra.mxu3 %v7047_v62  ;;  %4381 = vmatmul.bf16.vlgmr.msra.gmra.mxu0 %v8209_v35  ;;  %v6378_v62 = vld [vmem:[#allocation7 + $0x250] sm:$0xf]  ;;  %v4172_v55 = vpop.f32.mrf.mxu1  ;;  %v7289_v12 = vld [vmem:[#allocation7 + $0x1a4] sm:$0xf0] }
 0x1fa   :  { %4429 = vmatpush.bf16.msrb.mxu0 %v6259_v27  ;;  %4395 = vmatmul.bf16.vlgmr.msra.gmra.mxu1 %v8213_v18  ;;  %v8287_v27 = vld [vmem:[#allocation10] sm:$0x3f]  ;;  %v4119_v30 = vadd.f32 %v4118_v15, %v4105_v6  ;;  %v4173_v56 = vadd.f32 %v4172_v55, %v4159_v54  ;;  %v7355_v15 = vld [vmem:[#allocation7 + $0x3b4] sm:$0xf0] }
 0x1fb   :  { %4443 = vmatpush.bf16.msrb.mxu1 %v6451_v49  ;;  %4409 = vmatmul.bf16.vlgmr.msra.gmra.mxu2 %v8228_v0  ;;  %v6787_v49 = vor.u32 %v7415_v9, %v6786_v28  ;;  %v4599_v3 = vperm.slane %v8287_v27, 0  ;;  %v6138_v9 = vld [vmem:[#allocation7 + $0x70] sm:$0xf]  ;;  %v7247_v55 = vld [vmem:[#allocation7 + $0x54] sm:$0xf0] }
 0x1fc   :  { %4457 = vmatpush.bf16.msrb.mxu2 %v6643_v20  ;;  %4423 = vmatmul.bf16.vlgmr.msra.gmra.mxu3 %v8232_v17  ;;  %v7313_v20 = vld [vmem:[#allocation7 + $0x264] sm:$0xf0]  ;;  %v4133_v53 = vadd.f32 %v4132_v37, %v4119_v30 }
 0x1fd   :  { %4471 = vmatpush.bf16.msrb.mxu3 %v6835_v1  ;;  %v6762_v1 = vld [vmem:[#allocation7 + $0x550] sm:$0xf]  ;;  %v6379_v29 = vor.u32 %v7313_v20, %v6378_v62  ;;  %v4611_v42 = vadd.f32 %v4599_v3, %v4173_v56  ;;  %v7349_v20 = vld [vmem:[#allocation7 + $0x384] sm:$0xf0]  ;;  %v7391_v56 = vld [vmem:[#allocation7 + $0x4d4] sm:$0xf0] }
 0x1fe   :  { %4430 = vmatpush.bf16.msrb.mxu0 %v6235_v26  ;;  %v6571_v26 = vor.u32 %v7361_v7, %v6570_v44  ;;  %v6763_v63 = vor.u32 %v7409_v5, %v6762_v1  ;;  %v6714_v7 = vld [vmem:[#allocation7 + $0x4f0] sm:$0xf]  ;;  %v7397_v37 = vld [vmem:[#allocation7 + $0x504] sm:$0xf0]  ;;  %v6139_v1 = vor.u32 %v7253_v24, %v6138_v9 }
 0x1ff   :  { %4444 = vmatpush.bf16.msrb.mxu1 %v6427_v47  ;;  %v7259_v47 = vld [vmem:[#allocation7 + $0xb4] sm:$0xf0]  ;;  %v7224_v62 = vmul.f32 -1.442695, %v4611_v42  ;;  %v4160_v44 = vpop.f32.mrf.mxu0  ;;  %v6474_v9 = vld [vmem:[#allocation7 + $0x310] sm:$0xf] }
 0x200   :  { %4458 = vmatpush.bf16.msrb.mxu2 %v6619_v19  ;;  %v6354_v19 = vld [vmem:[#allocation7 + $0x220] sm:$0xf]  ;;  %v6163_v28 = vor.u32 %v7259_v47, %v6162_v46  ;;  %v7295_v47 = vld [vmem:[#allocation7 + $0x1d4] sm:$0xf0] }
 0x201   :  { %4472 = vmatpush.bf16.msrb.mxu3 %v6811_v43  ;;  %v4146_v43 = vpop.f32.mrf.mxu3  ;;  %v6355_v6 = vor.u32 %v7307_v58, %v6354_v19  ;;  %7822 = vpow2.f32 %v7224_v62  ;;  %v4174_v5 = vpop.f32.mrf.mxu1  ;;  %v6498_v19 = vld [vmem:[#allocation7 + $0x340] sm:$0xf]  ;;  %v6090_v58 = vld [vmem:[#allocation7 + $0x10] sm:$0xf] }
 0x202   :  { %4431 = vmatpush.bf16.msrb.mxu0 %v6211_v59  ;;  %v6547_v59 = vor.u32 %v7355_v15, %v6546_v4  ;;  %v4147_v25 = vadd.f32 %v4146_v43, %v4133_v53  ;;  %v7343_v53 = vld [vmem:[#allocation7 + $0x354] sm:$0xf0]  ;;  %v7241_v43 = vld [vmem:[#allocation7 + $0x24] sm:$0xf0]  ;;  %v7026_v62 = vld [vmem:[#allocation7 + $0x760] sm:$0xf] }
 0x203   :  { %4445 = vmatpush.bf16.msrb.mxu1 %v6403_v22  ;;  %v6330_v22 = vld [vmem:[#allocation7 + $0x1f0] sm:$0xf] }
 0x204   :  { %4459 = vmatpush.bf16.msrb.mxu2 %v6595_v51  ;;  %v7301_v51 = vld [vmem:[#allocation7 + $0x204] sm:$0xf0]  ;;  %v4161_v61 = vadd.f32 %v4160_v44, %v4147_v25  ;;  %v7523_v44 = vld [vmem:[#allocation7 + $0x8f4] sm:$0xf0] }
 0x205   :  { %4473 = vmatpush.bf16.msrb.mxu3 %v6787_v49  ;;  %v6522_v49 = vld [vmem:[#allocation7 + $0x370] sm:$0xf]  ;;  %v6331_v30 = vor.u32 %v7301_v51, %v6330_v22  ;;  %v7385_v25 = vld [vmem:[#allocation7 + $0x4a4] sm:$0xf0] }
 0x206   :  { %4432 = vmatpush.bf16.msrb.mxu0 %v6187_v50  ;;  %v6523_v54 = vor.u32 %v7349_v20, %v6522_v49  ;;  %v6114_v50 = vld [vmem:[#allocation7 + $0x40] sm:$0xf]  ;;  %v4175_v46 = vadd.f32 %v4174_v5, %v4161_v61  ;;  %v6091_v20 = vor.u32 %v7241_v43, %v6090_v58  ;;  %v2259_v61 = vadd.f32 %v8169_v48, %v8166_v41  ;;  %v7469_v41 = vld [vmem:[#allocation7 + $0x744] sm:$0xf0]  ;;  %v7194_v48 = vld [vmem:[#allocation7 + $0x8b0] sm:$0xf] }
 0x207   :  { %4446 = vmatpush.bf16.msrb.mxu1 %v6379_v29  ;;  %v6306_v29 = vld [vmem:[#allocation7 + $0x1c0] sm:$0xf]  ;;  %v6115_v15 = vor.u32 %v7247_v55, %v6114_v50  ;;  %v7823_v24 = vpop.eup %7822  ;;  %v4186_v50 = vpop.f32.mrf.mxu2  ;;  %v7274_v58 = vld [vmem:[#allocation7 + $0x134] sm:$0xf]  ;;  %v6428_v43 = vld [vmem:[#allocation7 + $0x2c8] sm:$0xf0] }
 0x208   :  { %4460 = vmatpush.bf16.msrb.mxu2 %v6571_v26  ;;  %v6715_v26 = vor.u32 %v7397_v37, %v6714_v7  ;;  %v4617_v4 = vadd.f32 %v4599_v3, %v4175_v46  ;;  %v6307_v42 = vor.u32 %v7295_v47, %v6306_v29  ;;  %v7475_v3 = vld [vmem:[#allocation7 + $0x774] sm:$0xf0]  ;;  %v7218_v49 = vld [vmem:[#allocation7 + $0x8e0] sm:$0xf]  ;;  %v7280_v7 = vld [vmem:[#allocation7 + $0x164] sm:$0xf] }
 0x209   :  { %4474 = vmatpush.bf16.msrb.mxu3 %v6763_v63  ;;  %v6690_v63 = vld [vmem:[#allocation7 + $0x4c0] sm:$0xf]  ;;  %v6260_v37 = vld [vmem:[#allocation7 + $0x178] sm:$0xf0]  ;;  %v7027_v29 = vor.u32 %v7475_v3, %v7026_v62  ;;  %v8296_v46 = vpop.f32.mrf.mxu3  ;;  %v7219_v47 = vor.u32 %v7523_v44, %v7218_v49  ;;  %v7511_v62 = vld [vmem:[#allocation7 + $0x894] sm:$0xf0] }
 0x20a   :  { %4433 = vmatpush.bf16.msrb.mxu0 %v6163_v28  ;;  %v6499_v28 = vor.u32 %v7343_v53, %v6498_v19  ;;  %v7230_v22 = vmul.f32 -1.442695, %v4617_v4  ;;  %v6691_v51 = vor.u32 %v7391_v56, %v6690_v63  ;;  %v6263_v19 = vor.u32 %v7280_v7, %v6260_v37  ;;  %v7002_v53 = vld [vmem:[#allocation7 + $0x730] sm:$0xf]  ;;  %v7517_v56 = vld [vmem:[#allocation7 + $0x8c4] sm:$0xf0] }
 0x20b   :  { %4447 = vmatpush.bf16.msrb.mxu1 %v6355_v6  ;;  %v7337_v6 = vld [vmem:[#allocation7 + $0x324] sm:$0xf0]  ;;  %v6236_v4 = vld [vmem:[#allocation7 + $0x148] sm:$0xf0]  ;;  %v7268_v3 = vld [vmem:[#allocation7 + $0x104] sm:$0xf] }
 0x20c   :  { %4461 = vmatpush.bf16.msrb.mxu2 %v6547_v59  ;;  %v6666_v59 = vld [vmem:[#allocation7 + $0x490] sm:$0xf]  ;;  %7824 = vpow2.f32 %v7230_v22  ;;  %v6475_v5 = vor.u32 %v7337_v6, %v6474_v9  ;;  %v7195_v6 = vor.u32 %v7517_v56, %v7194_v48  ;;  %v7170_v22 = vld [vmem:[#allocation7 + $0x880] sm:$0xf]  ;;  %v6212_v49 = vld [vmem:[#allocation7 + $0x118] sm:$0xf0] }
 0x20d   :  { %4475 = vmatpush.bf16.msrb.mxu3 %v6739_v10  ;;  %v8290_v10 = vadd.f32 1.0, %v7823_v24  ;;  %v6667_v55 = vor.u32 %v7385_v25, %v6666_v59  ;;  %v6239_v59 = vor.u32 %v7274_v58, %v6236_v4  ;;  %v7463_v24 = vld [vmem:[#allocation7 + $0x714] sm:$0xf0]  ;;  %v7316_v44 = vld [vmem:[#allocation7 + $0x284] sm:$0xf] }
 0x20e   :  { %4434 = vmatpush.bf16.msrb.mxu0 %v6139_v1  ;;  %v6283_v1 = vor.u32 %v7289_v12, %v6282_v40  ;;  %v6978_v12 = vld [vmem:[#allocation7 + $0x700] sm:$0xf]  ;;  %v6404_v7 = vld [vmem:[#allocation7 + $0x298] sm:$0xf0]  ;;  %v7310_v58 = vld [vmem:[#allocation7 + $0x254] sm:$0xf] }
 0x20f   :  { %4448 = vmatpush.bf16.msrb.mxu1 %v6331_v30  ;;  %7826 = vrcp.f32 %v8290_v10  ;;  %v7328_v30 = vld [vmem:[#allocation7 + $0x2e4] sm:$0xf]  ;;  %v6380_v4 = vld [vmem:[#allocation7 + $0x268] sm:$0xf0]  ;;  %vm4676_vm1 = vweird.f32 %v8290_v10 }
 0x210   :  { %4462 = vmatpush.bf16.msrb.mxu2 %v6523_v54  ;;  %v6452_v54 = vld [vmem:[#allocation7 + $0x2f8] sm:$0xf0] }
 0x211   :  { %4476 = vmatpush.bf16.msrb.mxu3 %v6715_v26  ;;  %v2273_v26 = vadd.f32 %v8174_v32, %v2259_v61  ;;  %v6455_v63 = vor.u32 %v7328_v30, %v6452_v54  ;;  %v7003_v32 = vor.u32 %v7469_v41, %v7002_v53  ;;  %v6979_v61 = vor.u32 %v7463_v24, %v6978_v12  ;;  %v7146_v54 = vld [vmem:[#allocation7 + $0x850] sm:$0xf]  ;;  %v6188_v53 = vld [vmem:[#allocation7 + $0xe8] sm:$0xf0] }
 0x212   :  { %4435 = vmatpush.bf16.msrb.mxu0 %v6115_v15  ;;  %v7322_v15 = vld [vmem:[#allocation7 + $0x2b4] sm:$0xf]  ;;  %v7825_v40 = vpop.eup %7824  ;;  %v4682_v30 = vand.u32 2147483648, %v8290_v10 }
 0x213   :  { %4449 = vmatpush.bf16.msrb.mxu1 %v6307_v42  ;;  %v8301_v9 = vadd.f32 1.0, %v7825_v40  ;;  %v6431_v25 = vor.u32 %v7322_v15, %v6428_v43  ;;  %v8318_v15 = vld [vmem:[#allocation7 + $0x6a0] sm:$0xf] }
 0x214   :  { %4463 = vmatpush.bf16.msrb.mxu2 %v6499_v28  ;;  %v2287_v28 = vadd.f32 %v8176_v34, %v2273_v26  ;;  %v4188_v26 = vpop.f32.mrf.mxu2  ;;  %v7870_v43 = vld [vmem:[#allocation5] sm:$0xff] }
 0x215   :  { %4477 = vmatpush.bf16.msrb.mxu3 %v6691_v51  ;;  %v8298_v42 = vpop.eup %7826  ;;  %7828 = vrcp.f32 %v8301_v9  ;;  %v7871_v40 = vld [vmem:[#allocation2] sm:$0xff]  ;;  %vm4766_vm5 = vweird.f32 %v8301_v9 }
 0x216   :  { %4436 = vmatpush.bf16.msrb.mxu0 %v6091_v20  ;;  %v4672_v51 = vmul.f32 %v8298_v42, %v8290_v10  ;;  %v2301_v34 = vadd.f32 %v8182_v60, %v2287_v28  ;;  %v4187_v20 = vadd.f32 %v4186_v50, %v8172_v33  ;;  %v7171_v33 = vor.u32 %v7511_v62, %v7170_v22  ;;  %v7505_v50 = vld [vmem:[#allocation7 + $0x864] sm:$0xf0]  ;;  %v4214_v56 = vpop.f32.mrf.mxu0 }
 0x217   :  { %4450 = vmatpush.bf16.msrb.mxu1 %v6283_v1  ;;  %v6954_v1 = vld [vmem:[#allocation7 + $0x6d0] sm:$0xf]  ;;  %v6215_v60 = vor.u32 %v7268_v3, %v6212_v49  ;;  %vm4677_vm0 = vweird.f32 %v8298_v42  ;;  %v7256_v3 = vld [vmem:[#allocation7 + $0xa4] sm:$0xf]  ;;  %v6164_v49 = vld [vmem:[#allocation7 + $0xb8] sm:$0xf0] }
 0x218   :  { %4464 = vmatpush.bf16.msrb.mxu2 %v6475_v5  ;;  %v4673_v37 = vsub.f32 1.0, %v4672_v51  ;;  %v7457_v5 = vld [vmem:[#allocation7 + $0x6e4] sm:$0xf0]  ;;  %v2315_v41 = vadd.f32 %v8184_v2, %v2301_v34  ;;  %v4201_v48 = vadd.f32 %v8296_v46, %v4187_v20  ;;  %v8322_v2 = vld [vmem:[#allocation7 + $0x820] sm:$0xf]  ;;  %vm8330_vm2 = vmor %vm4676_vm1, %vm4677_vm0  ;;  %v4683_v51 = vor.u32 1.1754944e-38, %v4682_v30 }
 0x219   :  { %4478 = vmatpush.bf16.msrb.mxu3 %v6667_v55  ;;  %4437 = vmatmul.bf16.vlgmr.msrb.gmra.mxu0 %v8205_v11  ;;  %v6955_v28 = vor.u32 %v7457_v5, %v6954_v1  ;;  %v8324_v46 = vld [vmem:[#allocation7 + $0x834] sm:$0xf0] }
 0x21a   :  { %4485 = vmatpush.bf16.msra.mxu0 %v7027_v29  ;;  %4451 = vmatmul.bf16.vlgmr.msrb.gmra.mxu1 %v8211_v23  ;;  %v4674_v55 = vmul.f32 %v8298_v42, %v4673_v37  ;;  %v4680_v29 = vand.u32 2147483647, %v8290_v10  ;;  %v4215_v10 = vadd.f32 %v4214_v56, %v4201_v48  ;;  %v6356_v37 = vld [vmem:[#allocation7 + $0x238] sm:$0xf0]  ;;  %v4189_v1 = vadd.f32 %v4188_v26, %v2315_v41 }
 0x21b   :  { %4499 = vmatpush.bf16.msra.mxu1 %v7219_v47  ;;  %4465 = vmatmul.bf16.vlgmr.msrb.gmra.mxu2 %v8209_v35  ;;  %v6407_v47 = vor.u32 %v7316_v44, %v6404_v7  ;;  %v8326_v24 = vpop.eup %7828  ;;  %v6383_v44 = vor.u32 %v7310_v58, %v6380_v4  ;;  %v7304_v7 = vld [vmem:[#allocation7 + $0x224] sm:$0xf]  ;;  %v4770_v48 = vand.u32 2147483647, %v8301_v9  ;;  %v7250_v58 = vld [vmem:[#allocation7 + $0x74] sm:$0xf] }
 0x21c   :  { %4513 = vmatpush.bf16.msra.mxu2 %v6263_v19  ;;  %4479 = vmatmul.bf16.vlgmr.msrb.gmra.mxu3 %v8213_v18  ;;  %v7262_v19 = vld [vmem:[#allocation7 + $0xd4] sm:$0xf]  ;;  %v4675_v12 = vadd.f32 %v8298_v42, %v4674_v55  ;;  %vm4681_vm3 = vcmp.eq.f32.partialorder %v4680_v29, 8.507059e+37  ;;  %v4762_v20 = vmul.f32 %v8326_v24, %v8301_v9  ;;  %v6167_v29 = vor.u32 %v7256_v3, %v6164_v49  ;;  %v6140_v4 = vld [vmem:[#allocation7 + $0x88] sm:$0xf0] }
 0x21d   :  { %4527 = vmatpush.bf16.msra.mxu3 %v6455_v63  ;;  %v4202_v63 = vpop.f32.mrf.mxu3  ;;  %v6191_v62 = vor.u32 %v7262_v19, %v6188_v53  ;;  %v7098_v19 = vld [vmem:[#allocation7 + $0x7f0] sm:$0xf]  ;;  %v7493_v53 = vld [vmem:[#allocation7 + $0x804] sm:$0xf0]  ;;  %vm4767_vm4 = vweird.f32 %v8326_v24  ;;  %vm4771_vm7 = vcmp.eq.f32.partialorder %v4770_v48, 8.507059e+37 }
 0x21e   :  { %4486 = vmatpush.bf16.msra.mxu0 %v7003_v32  ;;  %v4851_v32 = vsub.f32 %v7871_v40, %v7870_v43  ;;  %v4679_v34 = vsel %vm8330_vm2, %v8298_v42, %v4675_v12  ;;  %v4763_v30 = vsub.f32 1.0, %v4762_v20  ;;  %v7445_v42 = vld [vmem:[#allocation7 + $0x684] sm:$0xf0]  ;;  %v4242_v56 = vpop.f32.mrf.mxu2  ;;  %v7873_v40 = vld [vmem:[#allocation2 + $0x30] sm:$0xff]  ;;  %v4203_v12 = vadd.f32 %v4202_v63, %v4189_v1  ;;  %vm8351_vm6 = vmor %vm4766_vm5, %vm4767_vm4 }
 0x21f   :  { %4500 = vmatpush.bf16.msra.mxu1 %v7195_v6  ;;  %v4228_v6 = vpop.f32.mrf.mxu1  ;;  %v6143_v20 = vor.u32 %v7250_v58, %v6140_v4  ;;  %v7244_v1 = vld [vmem:[#allocation7 + $0x44] sm:$0xf]  ;;  %v7238_v48 = vld [vmem:[#allocation7 + $0x14] sm:$0xf] }
 0x220   :  { %4514 = vmatpush.bf16.msra.mxu2 %v6239_v59  ;;  %v7451_v59 = vld [vmem:[#allocation7 + $0x6b4] sm:$0xf0]  ;;  %v4229_v55 = vadd.f32 %v4228_v6, %v4215_v10  ;;  %v4764_v41 = vmul.f32 %v8326_v24, %v4763_v30  ;;  %v4216_v6 = vpop.f32.mrf.mxu0  ;;  %v7099_v10 = vor.u32 %v7493_v53, %v7098_v19  ;;  %v7050_v19 = vld [vmem:[#allocation7 + $0x790] sm:$0xf]  ;;  %v7481_v53 = vld [vmem:[#allocation7 + $0x7a4] sm:$0xf0] }
 0x221   :  { %4528 = vmatpush.bf16.msra.mxu3 %v6431_v25  ;;  %v7147_v25 = vor.u32 %v7505_v50, %v7146_v54  ;;  %v6906_v54 = vld [vmem:[#allocation7 + $0x670] sm:$0xf]  ;;  %v4772_v50 = vand.u32 2147483648, %v8301_v9  ;;  %v4217_v49 = vadd.f32 %v4216_v6, %v4203_v12  ;;  %v7286_v12 = vld [vmem:[#allocation7 + $0x194] sm:$0xf] }
 0x222   :  { %4487 = vmatpush.bf16.msra.mxu0 %v6979_v61  ;;  %v4684_v61 = vsel %vm4681_vm3, %v4683_v51, %v4679_v34  ;;  %v4765_v22 = vadd.f32 %v8326_v24, %v4764_v41  ;;  %v6907_v51 = vor.u32 %v7445_v42, %v6906_v54  ;;  %v6308_v54 = vld [vmem:[#allocation7 + $0x1d8] sm:$0xf0]  ;;  %v6858_v42 = vld [vmem:[#allocation7 + $0x610] sm:$0xf] }
 0x223   :  { %4501 = vmatpush.bf16.msra.mxu1 %v7171_v33  ;;  %v4863_v5 = vmul.f32 %v4851_v32, %v4684_v61  ;;  %v6931_v33 = vor.u32 %v7451_v59, %v8318_v15  ;;  %v7872_v15 = vld [vmem:[#allocation5 + $0x30] sm:$0xff]  ;;  %v4773_v3 = vor.u32 1.1754944e-38, %v4772_v50 }
 0x224   :  { %4515 = vmatpush.bf16.msra.mxu2 %v6215_v60  ;;  %v7123_v60 = vor.u32 %v8324_v46, %v8322_v2  ;;  %v4857_v32 = vsub.f32 %v7873_v40, %v7872_v15  ;;  %v4600_v2 = vperm.slane %v8287_v27, 1  ;;  %v6332_v46 = vld [vmem:[#allocation7 + $0x208] sm:$0xf0]  ;;  %v4769_v9 = vsel %vm8351_vm6, %v8326_v24, %v4765_v22  ;;  %v6836_v22 = vld [vmem:[#allocation7 + $0x5f8] sm:$0xf0] }
 0x225   :  { %4529 = vmatpush.bf16.msra.mxu3 %v6407_v47  ;;  %v6359_v47 = vor.u32 %v7304_v7, %v6356_v37  ;;  %v4875_v26 = vadd.f32 %v7870_v43, %v4863_v5  ;;  %v4256_v59 = vpop.f32.mrf.mxu3  ;;  %v7298_v43 = vld [vmem:[#allocation7 + $0x1f4] sm:$0xf]  ;;  %v7487_v7 = vld [vmem:[#allocation7 + $0x7d4] sm:$0xf0]  ;;  %v6116_v5 = vld [vmem:[#allocation7 + $0x58] sm:$0xf0]  ;;  %v4774_v30 = vsel %vm4771_vm7, %v4773_v3, %v4769_v9 }
 0x226   :  { %4488 = vmatpush.bf16.msra.mxu0 %v6955_v28  ;;  %v4243_v28 = vadd.f32 %v4242_v56, %v4229_v55  ;;  %v6335_v37 = vor.u32 %v7298_v43, %v6332_v46  ;;  %v4869_v50 = vmul.f32 %v4857_v32, %v4774_v30  ;;  %v6119_v41 = vor.u32 %v7244_v1, %v6116_v5  ;;  %v6092_v56 = vld [vmem:[#allocation7 + $0x28] sm:$0xf0]  ;;  %v4244_v40 = vpop.f32.mrf.mxu2  ;;  %v7376_v32 = vld [vmem:[#allocation7 + $0x464] sm:$0xf]  ;;  %v6644_v43 = vld [vmem:[#allocation7 + $0x478] sm:$0xf0] }
 0x227   :  { %4502 = vmatpush.bf16.msra.mxu1 %v7147_v25  ;;  %4887 = vst [vmem:[#allocation11] sm:$0xff] %v4875_v26  ;;  %v6882_v25 = vld [vmem:[#allocation7 + $0x640] sm:$0xf]  ;;  %v4230_v61 = vpop.f32.mrf.mxu1  ;;  %v7424_v46 = vld [vmem:[#allocation7 + $0x5e4] sm:$0xf]  ;;  %v6095_v63 = vor.u32 %v7238_v48, %v6092_v56 }
 0x228   :  { %4516 = vmatpush.bf16.msra.mxu2 %v6191_v62  ;;  %v7439_v62 = vld [vmem:[#allocation7 + $0x654] sm:$0xf0]  ;;  %v4257_v34 = vadd.f32 %v4256_v59, %v4243_v28  ;;  %v4881_v58 = vadd.f32 %v7872_v15, %v4869_v50  ;;  %v6284_v28 = vld [vmem:[#allocation7 + $0x1a8] sm:$0xf0]  ;;  %v7520_v3 = vld [vmem:[#allocation7 + $0x8e4] sm:$0xf] }
 0x229   :  { %4530 = vmatpush.bf16.msra.mxu3 %v6383_v44  ;;  %v7074_v44 = vld [vmem:[#allocation7 + $0x7c0] sm:$0xf]  ;;  %v6883_v55 = vor.u32 %v7439_v62, %v6882_v25  ;;  %v7028_v25 = vld [vmem:[#allocation7 + $0x778] sm:$0xf0]  ;;  %v7051_v62 = vor.u32 %v7481_v53, %v7050_v19  ;;  %v7418_v1 = vld [vmem:[#allocation7 + $0x5b4] sm:$0xf] }
 0x22a   :  { %4489 = vmatpush.bf16.msra.mxu0 %v6931_v33  ;;  %v4612_v33 = vadd.f32 %v4600_v2, %v4257_v34  ;;  %v7075_v26 = vor.u32 %v7487_v7, %v7074_v44  ;;  %4893 = vst [vmem:[#allocation11 + $0x30] sm:$0xff] %v4881_v58  ;;  %v6287_v34 = vor.u32 %v7286_v12, %v6284_v28  ;;  %v6812_v30 = vld [vmem:[#allocation7 + $0x5c8] sm:$0xf0]  ;;  %v7514_v50 = vld [vmem:[#allocation7 + $0x8b4] sm:$0xf] }
 0x22b   :  { %4503 = vmatpush.bf16.msra.mxu1 %v7123_v60  ;;  %v7292_v60 = vld [vmem:[#allocation7 + $0x1c4] sm:$0xf]  ;;  %v6839_v7 = vor.u32 %v7424_v46, %v6836_v22  ;;  %v6980_v56 = vld [vmem:[#allocation7 + $0x718] sm:$0xf0]  ;;  %v6764_v46 = vld [vmem:[#allocation7 + $0x568] sm:$0xf0] }
 0x22c   :  { %4517 = vmatpush.bf16.msra.mxu2 %v6167_v29  ;;  %v7433_v29 = vld [vmem:[#allocation7 + $0x624] sm:$0xf0]  ;;  %v7225_v24 = vmul.f32 -1.442695, %v4612_v33  ;;  %v6311_v4 = vor.u32 %v7292_v60, %v6308_v54  ;;  %v7466_v33 = vld [vmem:[#allocation7 + $0x734] sm:$0xf] }
 0x22d   :  { %4531 = vmatpush.bf16.msra.mxu3 %v6359_v47  ;;  %v4231_v47 = vadd.f32 %v4230_v61, %v4217_v49  ;;  %v4258_v59 = vpop.f32.mrf.mxu3  ;;  %v7220_v49 = vld [vmem:[#allocation7 + $0x8f8] sm:$0xf0]  ;;  %v6620_v61 = vld [vmem:[#allocation7 + $0x448] sm:$0xf0]  ;;  %v7364_v53 = vld [vmem:[#allocation7 + $0x404] sm:$0xf] }
 0x22e   :  { %4490 = vmatpush.bf16.msra.mxu0 %v6907_v51  ;;  %7830 = vpow2.f32 %v7225_v24  ;;  %v6859_v51 = vor.u32 %v7433_v29, %v6858_v42  ;;  %v7223_v5 = vor.u32 %v7520_v3, %v7220_v49  ;;  %v7004_v60 = vld [vmem:[#allocation7 + $0x748] sm:$0xf0]  ;;  %v6596_v24 = vld [vmem:[#allocation7 + $0x418] sm:$0xf0]  ;;  %v7460_v48 = vld [vmem:[#allocation7 + $0x704] sm:$0xf] }
 0x22f   :  { %4504 = vmatpush.bf16.msra.mxu1 %v7099_v10  ;;  %v4245_v6 = vadd.f32 %v4244_v40, %v4231_v47  ;;  %v7472_v10 = vld [vmem:[#allocation7 + $0x764] sm:$0xf]  ;;  %v7007_v19 = vor.u32 %v7466_v33, %v7004_v60  ;;  %v6599_v40 = vor.u32 %v7364_v53, %v6596_v24  ;;  %v6983_v28 = vor.u32 %v7460_v48, %v6980_v56  ;;  %v7454_v22 = vld [vmem:[#allocation7 + $0x6d4] sm:$0xf]  ;;  %v6716_v53 = vld [vmem:[#allocation7 + $0x508] sm:$0xf0] }
 0x230   :  { %4518 = vmatpush.bf16.msra.mxu2 %v6143_v20  ;;  %v6647_v20 = vor.u32 %v7376_v32, %v6644_v43  ;;  %v7031_v9 = vor.u32 %v7472_v10, %v7028_v25  ;;  %v7412_v47 = vld [vmem:[#allocation7 + $0x584] sm:$0xf]  ;;  %v7358_v32 = vld [vmem:[#allocation7 + $0x3d4] sm:$0xf]  ;;  %v7148_v25 = vld [vmem:[#allocation7 + $0x868] sm:$0xf0] }
 0x231   :  { %4532 = vmatpush.bf16.msra.mxu3 %v6335_v37  ;;  %v4259_v15 = vadd.f32 %v4258_v59, %v4245_v6  ;;  %v7370_v37 = vld [vmem:[#allocation7 + $0x434] sm:$0xf]  ;;  %v7508_v58 = vld [vmem:[#allocation7 + $0x884] sm:$0xf]  ;;  %v6572_v6 = vld [vmem:[#allocation7 + $0x3e8] sm:$0xf0] }
 0x232   :  { %4491 = vmatpush.bf16.msra.mxu0 %v6883_v55  ;;  %v7196_v55 = vld [vmem:[#allocation7 + $0x8c8] sm:$0xf0]  ;;  %v6623_v27 = vor.u32 %v7370_v37, %v6620_v61  ;;  %v7406_v59 = vld [vmem:[#allocation7 + $0x554] sm:$0xf]  ;;  %v7448_v37 = vld [vmem:[#allocation7 + $0x6a4] sm:$0xf] }
 0x233   :  { %4505 = vmatpush.bf16.msra.mxu1 %v7075_v26  ;;  %v4618_v44 = vadd.f32 %v4600_v2, %v4259_v15  ;;  %v6815_v2 = vor.u32 %v7418_v1, %v6812_v30  ;;  %v7199_v26 = vor.u32 %v7514_v50, %v7196_v55  ;;  %v7502_v10 = vld [vmem:[#allocation7 + $0x854] sm:$0xf]  ;;  %v6767_v49 = vor.u32 %v7406_v59, %v6764_v46  ;;  %v6932_v61 = vld [vmem:[#allocation7 + $0x6b8] sm:$0xf0]  ;;  %v6524_v50 = vld [vmem:[#allocation7 + $0x388] sm:$0xf0] }
 0x234   :  { %4519 = vmatpush.bf16.msra.mxu2 %v6119_v41  ;;  %v7831_v54 = vpop.eup %7830  ;;  %v6788_v41 = vld [vmem:[#allocation7 + $0x598] sm:$0xf0]  ;;  %v7874_v48 = vld [vmem:[#allocation5 + $0x8] sm:$0xff] }
 0x235   :  { %4533 = vmatpush.bf16.msra.mxu3 %v6311_v4  ;;  %v7231_v42 = vmul.f32 -1.442695, %v4618_v44  ;;  %v8362_v29 = vadd.f32 1.0, %v7831_v54  ;;  %v7172_v4 = vld [vmem:[#allocation7 + $0x898] sm:$0xf0]  ;;  %v6791_v12 = vor.u32 %v7412_v47, %v6788_v41  ;;  %v7875_v56 = vld [vmem:[#allocation2 + $0x8] sm:$0xff] }
 0x236   :  { %4492 = vmatpush.bf16.msra.mxu0 %v6859_v51  ;;  %v7175_v43 = vor.u32 %v7508_v58, %v7172_v4  ;;  %v7400_v44 = vld [vmem:[#allocation7 + $0x524] sm:$0xf]  ;;  %v7124_v30 = vld [vmem:[#allocation7 + $0x838] sm:$0xf0]  ;;  %v7442_v47 = vld [vmem:[#allocation7 + $0x674] sm:$0xf]  ;;  %v4852_v58 = vsub.f32 %v7875_v56, %v7874_v48 }
 0x237   :  { %4506 = vmatpush.bf16.msra.mxu1 %v7051_v62  ;;  %7832 = vpow2.f32 %v7231_v42  ;;  %v6575_v62 = vor.u32 %v7358_v32, %v6572_v6  ;;  %v4697_v33 = vand.u32 2147483648, %v8362_v29  ;;  %v7346_v42 = vld [vmem:[#allocation7 + $0x374] sm:$0xf]  ;;  %vm4691_vm9 = vweird.f32 %v8362_v29 }
 0x238   :  { %4520 = vmatpush.bf16.msra.mxu2 %v6095_v63  ;;  %7834 = vrcp.f32 %v8362_v29  ;;  %v7352_v63 = vld [vmem:[#allocation7 + $0x3a4] sm:$0xf]  ;;  %v7490_v41 = vld [vmem:[#allocation7 + $0x7f4] sm:$0xf] }
 0x239   :  { %4534 = vmatpush.bf16.msra.mxu3 %v6287_v34  ;;  %4493 = vmatmul.bf16.vlgmr.msra.gmra.mxu0 %v8228_v0  ;;  %v4698_v59 = vor.u32 1.1754944e-38, %v4697_v33 }
 0x23a   :  { %4541 = vmatpush.bf16.msrb.mxu0 %v6647_v20  ;;  %4507 = vmatmul.bf16.vlgmr.msra.gmra.mxu1 %v8232_v17  ;;  %v6548_v20 = vld [vmem:[#allocation7 + $0x3b8] sm:$0xf0] }
 0x23b   :  { %4555 = vmatpush.bf16.msrb.mxu1 %v6839_v7  ;;  %4521 = vmatmul.bf16.vlgmr.msra.gmra.mxu2 %v8205_v11  ;;  %v6956_v11 = vld [vmem:[#allocation7 + $0x6e8] sm:$0xf0]  ;;  %v6740_v7 = vld [vmem:[#allocation7 + $0x538] sm:$0xf0]  ;;  %v6551_v60 = vor.u32 %v7352_v63, %v6548_v20  ;;  %v2343_v63 = vadd.f32 %v8190_v52, %v8188_v38 }
 0x23c   :  { %4569 = vmatpush.bf16.msrb.mxu2 %v7031_v9  ;;  %4535 = vmatmul.bf16.vlgmr.msra.gmra.mxu3 %v8211_v23  ;;  %v6959_v34 = vor.u32 %v7454_v22, %v6956_v11  ;;  %v7151_v9 = vor.u32 %v7502_v10, %v7148_v25  ;;  %v6743_v54 = vor.u32 %v7400_v44, %v6740_v7  ;;  %v7388_v22 = vld [vmem:[#allocation7 + $0x4c4] sm:$0xf]  ;;  %v6692_v11 = vld [vmem:[#allocation7 + $0x4d8] sm:$0xf0]  ;;  %v4270_v44 = vpop.f32.mrf.mxu0  ;;  %v6476_v52 = vld [vmem:[#allocation7 + $0x328] sm:$0xf0] }
 0x23d   :  { %4583 = vmatpush.bf16.msrb.mxu3 %v7223_v5  ;;  %v7833_v51 = vpop.eup %7832  ;;  %v7496_v5 = vld [vmem:[#allocation7 + $0x824] sm:$0xf] }
 0x23e   :  { %4542 = vmatpush.bf16.msrb.mxu0 %v6623_v27  ;;  %v8369_v15 = vpop.eup %7834  ;;  %v8371_v23 = vadd.f32 1.0, %v7833_v51  ;;  %v4695_v27 = vand.u32 2147483647, %v8362_v29  ;;  %v7127_v24 = vor.u32 %v7496_v5, %v7124_v30  ;;  %v7436_v25 = vld [vmem:[#allocation7 + $0x644] sm:$0xf] }
 0x23f   :  { %4556 = vmatpush.bf16.msrb.mxu1 %v6815_v2  ;;  %v4687_v3 = vmul.f32 %v8369_v15, %v8362_v29  ;;  %vm4692_vm8 = vweird.f32 %v8369_v15  ;;  %v6935_v2 = vor.u32 %v7448_v37, %v6932_v61  ;;  %v7484_v7 = vld [vmem:[#allocation7 + $0x7c4] sm:$0xf]  ;;  %v4284_v37 = vpop.f32.mrf.mxu1  ;;  %v7334_v30 = vld [vmem:[#allocation7 + $0x314] sm:$0xf] }
 0x240   :  { %4570 = vmatpush.bf16.msrb.mxu2 %v7007_v19  ;;  %7836 = vrcp.f32 %v8371_v23  ;;  %v7394_v19 = vld [vmem:[#allocation7 + $0x4f4] sm:$0xf]  ;;  %vm8386_vm10 = vmor %vm4691_vm9, %vm4692_vm8  ;;  %vm4696_vm11 = vcmp.eq.f32.partialorder %v4695_v27, 8.507059e+37  ;;  %v4785_v38 = vand.u32 2147483647, %v8371_v23  ;;  %vm4781_vm13 = vweird.f32 %v8371_v23 }
 0x241   :  { %4584 = vmatpush.bf16.msrb.mxu3 %v7199_v26  ;;  %v4688_v1 = vsub.f32 1.0, %v4687_v3  ;;  %v6908_v26 = vld [vmem:[#allocation7 + $0x688] sm:$0xf0]  ;;  %v6719_v46 = vor.u32 %v7394_v19, %v6716_v53  ;;  %v7430_v27 = vld [vmem:[#allocation7 + $0x614] sm:$0xf]  ;;  %v7876_v19 = vld [vmem:[#allocation5 + $0x38] sm:$0xff] }
 0x242   :  { %4543 = vmatpush.bf16.msrb.mxu0 %v6599_v40  ;;  %v7100_v40 = vld [vmem:[#allocation7 + $0x808] sm:$0xf0]  ;;  %v6911_v10 = vor.u32 %v7442_v47, %v6908_v26  ;;  %v7877_v53 = vld [vmem:[#allocation2 + $0x38] sm:$0xff]  ;;  %v7478_v26 = vld [vmem:[#allocation7 + $0x794] sm:$0xf]  ;;  %vm4786_vm15 = vcmp.eq.f32.partialorder %v4785_v38, 8.507059e+37 }
 0x243   :  { %4557 = vmatpush.bf16.msrb.mxu1 %v6791_v12  ;;  %v4689_v55 = vmul.f32 %v8369_v15, %v4688_v1  ;;  %v7340_v12 = vld [vmem:[#allocation7 + $0x344] sm:$0xf]  ;;  %v6695_v1 = vor.u32 %v7388_v22, %v6692_v11 }
 0x244   :  { %4571 = vmatpush.bf16.msrb.mxu2 %v6983_v28  ;;  %v6500_v28 = vld [vmem:[#allocation7 + $0x358] sm:$0xf0]  ;;  %v4272_v22 = vpop.f32.mrf.mxu0 }
 0x245   :  { %4585 = vmatpush.bf16.msrb.mxu3 %v7175_v43  ;;  %v4690_v4 = vadd.f32 %v8369_v15, %v4689_v55  ;;  %v6527_v43 = vor.u32 %v7346_v42, %v6524_v50  ;;  %v6503_v61 = vor.u32 %v7340_v12, %v6500_v28  ;;  %v2357_v42 = vadd.f32 %v8196_v14, %v2343_v63  ;;  %v6668_v55 = vld [vmem:[#allocation7 + $0x4a8] sm:$0xf0] }
 0x246   :  { %4544 = vmatpush.bf16.msrb.mxu0 %v6575_v62  ;;  %v8382_v32 = vpop.eup %7836  ;;  %v6884_v62 = vld [vmem:[#allocation7 + $0x658] sm:$0xf0]  ;;  %v6479_v14 = vor.u32 %v7334_v30, %v6476_v52 }
 0x247   :  { %4558 = vmatpush.bf16.msrb.mxu1 %v6767_v49  ;;  %v4694_v29 = vsel %vm8386_vm10, %v8369_v15, %v4690_v4  ;;  %v4777_v51 = vmul.f32 %v8382_v32, %v8371_v23  ;;  %v7103_v49 = vor.u32 %v7490_v41, %v7100_v40  ;;  %v7076_v15 = vld [vmem:[#allocation7 + $0x7d8] sm:$0xf0]  ;;  %v6887_v5 = vor.u32 %v7436_v25, %v6884_v62  ;;  %v7052_v41 = vld [vmem:[#allocation7 + $0x7a8] sm:$0xf0]  ;;  %v4286_v11 = vpop.f32.mrf.mxu1 }
 0x248   :  { %4572 = vmatpush.bf16.msrb.mxu2 %v6959_v34  ;;  %v4699_v3 = vsel %vm4696_vm11, %v4698_v59, %v4694_v29  ;;  %vm4782_vm12 = vweird.f32 %v8382_v32  ;;  %v7079_v50 = vor.u32 %v7484_v7, %v7076_v15  ;;  %v2371_v40 = vadd.f32 %v8198_v39, %v2357_v42  ;;  %v4298_v59 = vpop.f32.mrf.mxu2  ;;  %v4312_v29 = vpop.f32.mrf.mxu3 }
 0x249   :  { %4586 = vmatpush.bf16.msrb.mxu3 %v7151_v9  ;;  %v4864_v34 = vmul.f32 %v4852_v58, %v4699_v3  ;;  %v4778_v20 = vsub.f32 1.0, %v4777_v51  ;;  %v4787_v9 = vand.u32 2147483648, %v8371_v23  ;;  %vm4783_vm14 = vmor %vm4781_vm13, %vm4782_vm12  ;;  %v4271_v23 = vadd.f32 %v4270_v44, %v8201_v36 }
 0x24a   :  { %4545 = vmatpush.bf16.msrb.mxu0 %v6551_v60  ;;  %v7055_v28 = vor.u32 %v7478_v26, %v7052_v41 }
 0x24b   :  { %4559 = vmatpush.bf16.msrb.mxu1 %v6743_v54  ;;  %v4876_v33 = vadd.f32 %v7874_v48, %v4864_v34  ;;  %v4779_v60 = vmul.f32 %v8382_v32, %v4778_v20  ;;  %v7382_v54 = vld [vmem:[#allocation7 + $0x494] sm:$0xf]  ;;  %v4788_v48 = vor.u32 1.1754944e-38, %v4787_v9 }
 0x24c   :  { %4573 = vmatpush.bf16.msrb.mxu2 %v6935_v2  ;;  %v6860_v2 = vld [vmem:[#allocation7 + $0x628] sm:$0xf0]  ;;  %v6671_v58 = vor.u32 %v7382_v54, %v6668_v55 }
 0x24d   :  { %4587 = vmatpush.bf16.msrb.mxu3 %v7127_v24  ;;  %v4858_v24 = vsub.f32 %v7877_v53, %v7876_v19  ;;  %4888 = vst [vmem:[#allocation11 + $0x8] sm:$0xff] %v4876_v33  ;;  %v4780_v47 = vadd.f32 %v8382_v32, %v4779_v60  ;;  %v6863_v4 = vor.u32 %v7430_v27, %v6860_v2  ;;  %v8456_v55 = vld [vmem:[#allocation17_spill] sm:$0xff]  ;;  %v8457_v2 = vld [vmem:[#allocation16_spill] sm:$0xff] }
 0x24e   :  { %4546 = vmatpush.bf16.msrb.mxu0 %v6527_v43  ;;  %v2385_v43 = vadd.f32 %v8207_v13, %v2371_v40  ;;  %v2427_v33 = vadd.f32 %v8223_v57, %v8221_v45 }
 0x24f   :  { %4560 = vmatpush.bf16.msrb.mxu1 %v6719_v46  ;;  %v4784_v56 = vsel %vm4783_vm14, %v8382_v32, %v4780_v47  ;;  %v4285_v32 = vadd.f32 %v4284_v37, %v4271_v23 }
 0x250   :  { %4574 = vmatpush.bf16.msrb.mxu2 %v6911_v10  ;;  %v4789_v12 = vsel %vm4786_vm15, %v4788_v48, %v4784_v56  ;;  %v2399_v39 = vadd.f32 %v8215_v21, %v2385_v43  ;;  %v4300_v10 = vpop.f32.mrf.mxu2  ;;  %v4314_v20 = vpop.f32.mrf.mxu3  ;;  %v2441_v38 = vadd.f32 %v8230_v16, %v2427_v33  ;;  %v7879_v56 = vld [vmem:[#allocation5 + $0x10] sm:$0xff] }
 0x251   :  { %4588 = vmatpush.bf16.msrb.mxu3 %v7103_v49  ;;  %v4870_v6 = vmul.f32 %v4858_v24, %v4789_v12  ;;  %v4299_v36 = vadd.f32 %v4298_v59, %v4285_v32  ;;  %v8415_v49 = vld [vmem:[#allocation10] sm:$0x3f]  ;;  %v8458_v24 = vld [vmem:[#allocation18_spill] sm:$0xff] }
 0x252   :  { %4547 = vmatpush.bf16.msrb.mxu0 %v6503_v61  ;;  %v4273_v13 = vadd.f32 %v4272_v22, %v2399_v39  ;;  %v2455_v27 = vadd.f32 %v8456_v55, %v2441_v38 }
 0x253   :  { %4561 = vmatpush.bf16.msrb.mxu1 %v6695_v1  ;;  %v4882_v46 = vadd.f32 %v7876_v19, %v4870_v6  ;;  %v4313_v51 = vadd.f32 %v4312_v29, %v4299_v36 }
 0x254   :  { %4575 = vmatpush.bf16.msrb.mxu2 %v6887_v5  ;;  %v4287_v62 = vadd.f32 %v4286_v11, %v4273_v13  ;;  %v2469_v47 = vadd.f32 %v8458_v24, %v2455_v27 }
 0x255   :  { %4589 = vmatpush.bf16.msrb.mxu3 %v7079_v50  ;;  %4894 = vst [vmem:[#allocation11 + $0x38] sm:$0xff] %v4882_v46 }
 0x256   :  { %4548 = vmatpush.bf16.msrb.mxu0 %v6479_v14  ;;  %v4326_v25 = vpop.f32.mrf.mxu0  ;;  %v4301_v34 = vadd.f32 %v4300_v10, %v4287_v62 }
 0x257   :  { %4562 = vmatpush.bf16.msrb.mxu1 %v6671_v58  ;;  %v4327_v63 = vadd.f32 %v4326_v25, %v4313_v51  ;;  %v4340_v3 = vpop.f32.mrf.mxu1  ;;  %v7880_v58 = vld [vmem:[#allocation2 + $0x10] sm:$0xff] }
 0x258   :  { %4576 = vmatpush.bf16.msrb.mxu2 %v6863_v4  ;;  %v4853_v4 = vsub.f32 %v7880_v58, %v7879_v56 }
 0x259   :  { %4590 = vmatpush.bf16.msrb.mxu3 %v7055_v28  ;;  %4549 = vmatmul.bf16.vlgmr.msrb.gmra.mxu0 %v8209_v35  ;;  %v4601_v35 = vperm.slane %v8415_v49, 2  ;;  %v4341_v21 = vadd.f32 %v4340_v3, %v4327_v63  ;;  %v8459_v28 = vld [vmem:[#allocation19_spill] sm:$0xff] }
 0x25a   :  { %4563 = vmatmul.bf16.vlgmr.msrb.gmra.mxu1 %v8213_v18  ;;  %v4315_v18 = vadd.f32 %v4314_v20, %v4301_v34  ;;  %v2483_v6 = vadd.f32 %v8459_v28, %v2469_v47  ;;  %v7881_v20 = vld [vmem:[#allocation5 + $0x40] sm:$0xff] }
 0x25b   :  { %4577 = vmatmul.bf16.vlgmr.msrb.gmra.mxu2 %v8228_v0  ;;  %v4613_v44 = vadd.f32 %v4601_v35, %v4341_v21  ;;  %v4602_v21 = vperm.slane %v8415_v49, 3 }
 0x25c   :  { %4591 = vmatmul.bf16.vlgmr.msrb.gmra.mxu3 %v8232_v17 }
 0x25d   :  { %v7226_v7 = vmul.f32 -1.442695, %v4613_v44  ;;  %v7882_v44 = vld [vmem:[#allocation2 + $0x40] sm:$0xff] }
 0x25e   :  { %v4328_v0 = vpop.f32.mrf.mxu0  ;;  %v4354_v30 = vpop.f32.mrf.mxu2 }
 0x25f   :  { %7838 = vpow2.f32 %v7226_v7  ;;  %v4329_v17 = vadd.f32 %v4328_v0, %v4315_v18  ;;  %v4342_v15 = vpop.f32.mrf.mxu1  ;;  %v4368_v60 = vpop.f32.mrf.mxu3  ;;  %v4355_v19 = vadd.f32 %v4354_v30, %v8457_v2  ;;  %v4859_v18 = vsub.f32 %v7882_v44, %v7881_v20 }
 0x261   :  { %v4343_v9 = vadd.f32 %v4342_v15, %v4329_v17  ;;  %v4369_v57 = vadd.f32 %v4368_v60, %v4355_v19 }
 0x263   :  { %v4619_v37 = vadd.f32 %v4601_v35, %v4343_v9 }
 0x265   :  { %v7839_v61 = vpop.eup %7838  ;;  %v7232_v1 = vmul.f32 -1.442695, %v4619_v37 }
 0x266   :  { %v4661_v5 = vadd.f32 1.0, %v7839_v61  ;;  %v4356_v45 = vpop.f32.mrf.mxu2 }
 0x267   :  { %7840 = vpow2.f32 %v7232_v1  ;;  %v4370_v14 = vpop.f32.mrf.mxu3  ;;  %v4357_v11 = vadd.f32 %v4356_v45, %v2483_v6 }
 0x268   :  { %7842 = vrcp.f32 %v4661_v5  ;;  %v4712_v26 = vand.u32 2147483648, %v4661_v5  ;;  %v4710_v48 = vand.u32 2147483647, %v4661_v5  ;;  %vm4706_vm1 = vweird.f32 %v4661_v5 }
 0x269   :  { %v4371_v63 = vadd.f32 %v4370_v14, %v4357_v11  ;;  %v7884_v14 = vld [vmem:[#allocation2 + $0x18] sm:$0xff] }
 0x26a   :  { %v4713_v59 = vor.u32 1.1754944e-38, %v4712_v26  ;;  %vm4711_vm3 = vcmp.eq.f32.partialorder %v4710_v48, 8.507059e+37 }
 0x26d   :  { %v7841_v52 = vpop.eup %7840 }
 0x26e   :  { %v7843_v54 = vpop.eup %7842  ;;  %v4667_v42 = vadd.f32 1.0, %v7841_v52 }
 0x26f   :  { %v4702_v50 = vmul.f32 %v7843_v54, %v4661_v5  ;;  %vm4707_vm0 = vweird.f32 %v7843_v54 }
 0x270   :  { %7844 = vrcp.f32 %v4667_v42  ;;  %vm4708_vm2 = vmor %vm4706_vm1, %vm4707_vm0  ;;  %v4802_v36 = vand.u32 2147483648, %v4667_v42  ;;  %v4800_v25 = vand.u32 2147483647, %v4667_v42  ;;  %vm4796_vm5 = vweird.f32 %v4667_v42 }
 0x271   :  { %v4703_v53 = vsub.f32 1.0, %v4702_v50 }
 0x272   :  { %v4803_v0 = vor.u32 1.1754944e-38, %v4802_v36  ;;  %vm4801_vm7 = vcmp.eq.f32.partialorder %v4800_v25, 8.507059e+37 }
 0x273   :  { %v4704_v41 = vmul.f32 %v7843_v54, %v4703_v53 }
 0x275   :  { %v4705_v40 = vadd.f32 %v7843_v54, %v4704_v41 }
 0x276   :  { %v4382_v16 = vpop.f32.mrf.mxu0  ;;  %v7845_v23 = vpop.eup %7844 }
 0x277   :  { %v4396_v12 = vpop.f32.mrf.mxu1  ;;  %v4383_v43 = vadd.f32 %v4382_v16, %v4369_v57  ;;  %v4709_v46 = vsel %vm4708_vm2, %v7843_v54, %v4705_v40  ;;  %v4792_v22 = vmul.f32 %v7845_v23, %v4667_v42  ;;  %vm4797_vm4 = vweird.f32 %v7845_v23  ;;  %v7883_v57 = vld [vmem:[#allocation5 + $0x18] sm:$0xff] }
 0x278   :  { %v4714_v32 = vsel %vm4711_vm3, %v4713_v59, %v4709_v46  ;;  %vm4798_vm6 = vmor %vm4796_vm5, %vm4797_vm4  ;;  %v4854_v16 = vsub.f32 %v7884_v14, %v7883_v57 }
 0x279   :  { %v4865_v29 = vmul.f32 %v4853_v4, %v4714_v32  ;;  %v4793_v39 = vsub.f32 1.0, %v4792_v22  ;;  %v4397_v13 = vadd.f32 %v4396_v12, %v4383_v43 }
 0x27b   :  { %v4877_v51 = vadd.f32 %v7879_v56, %v4865_v29  ;;  %v4794_v10 = vmul.f32 %v7845_v23, %v4793_v39  ;;  %v7885_v29 = vld [vmem:[#allocation5 + $0x48] sm:$0xff] }
 0x27c   :  { %v7886_v39 = vld [vmem:[#allocation2 + $0x48] sm:$0xff] }
 0x27d   :  { %4889 = vst [vmem:[#allocation11 + $0x10] sm:$0xff] %v4877_v51  ;;  %v4795_v7 = vadd.f32 %v7845_v23, %v4794_v10  ;;  %v4860_v36 = vsub.f32 %v7886_v39, %v7885_v29 }
 0x27e   :  { %v4410_v62 = vpop.f32.mrf.mxu2  ;;  %v4384_v35 = vpop.f32.mrf.mxu0 }
 0x27f   :  { %v4411_v3 = vadd.f32 %v4410_v62, %v4397_v13  ;;  %v4424_v34 = vpop.f32.mrf.mxu3  ;;  %v4385_v17 = vadd.f32 %v4384_v35, %v4371_v63  ;;  %v4799_v9 = vsel %vm4798_vm6, %v7845_v23, %v4795_v7  ;;  %v4398_v37 = vpop.f32.mrf.mxu1  ;;  %v8460_v62 = vld [vmem:[#allocation20_spill] sm:$0xff] }
 0x280   :  { %v4804_v61 = vsel %vm4801_vm7, %v4803_v0, %v4799_v9  ;;  %v8461_v0 = vld [vmem:[#allocation21_spill] sm:$0xff] }
 0x281   :  { %v4425_v15 = vadd.f32 %v4424_v34, %v4411_v3  ;;  %v4871_v5 = vmul.f32 %v4859_v18, %v4804_v61  ;;  %v4399_v33 = vadd.f32 %v4398_v37, %v4385_v17 }
 0x283   :  { %v4614_v1 = vadd.f32 %v4602_v21, %v4425_v15  ;;  %v4883_v60 = vadd.f32 %v7881_v20, %v4871_v5 }
 0x285   :  { %v7227_v30 = vmul.f32 -1.442695, %v4614_v1  ;;  %4895 = vst [vmem:[#allocation11 + $0x40] sm:$0xff] %v4883_v60 }
 0x286   :  { %v4412_v38 = vpop.f32.mrf.mxu2 }
 0x287   :  { %7846 = vpow2.f32 %v7227_v30  ;;  %v4413_v52 = vadd.f32 %v4412_v38, %v4399_v33  ;;  %v4426_v54 = vpop.f32.mrf.mxu3  ;;  %v4603_v30 = vperm.slane %v8415_v49, 4 }
 0x289   :  { %v4427_v50 = vadd.f32 %v4426_v54, %v4413_v52 }
 0x28b   :  { %v4620_v42 = vadd.f32 %v4602_v21, %v4427_v50 }
 0x28d   :  { %v7847_v55 = vpop.eup %7846  ;;  %v7233_v27 = vmul.f32 -1.442695, %v4620_v42 }
 0x28e   :  { %v4662_v2 = vadd.f32 1.0, %v7847_v55 }
 0x28f   :  { %7848 = vpow2.f32 %v7233_v27 }
 0x290   :  { %7850 = vrcp.f32 %v4662_v2  ;;  %v4727_v41 = vand.u32 2147483648, %v4662_v2  ;;  %v4725_v45 = vand.u32 2147483647, %v4662_v2  ;;  %vm4721_vm9 = vweird.f32 %v4662_v2 }
 0x292   :  { %v4728_v4 = vor.u32 1.1754944e-38, %v4727_v41  ;;  %vm4726_vm11 = vcmp.eq.f32.partialorder %v4725_v45, 8.507059e+37 }
 0x295   :  { %v7849_v19 = vpop.eup %7848 }
 0x296   :  { %v7851_v53 = vpop.eup %7850  ;;  %v4668_v24 = vadd.f32 1.0, %v7849_v19  ;;  %v4438_v59 = vpop.f32.mrf.mxu0 }
 0x297   :  { %v4717_v47 = vmul.f32 %v7851_v53, %v4662_v2  ;;  %vm4722_vm8 = vweird.f32 %v7851_v53  ;;  %v4452_v46 = vpop.f32.mrf.mxu1  ;;  %v4439_v63 = vadd.f32 %v4438_v59, %v8460_v62  ;;  %v7887_v59 = vld [vmem:[#allocation5 + $0x20] sm:$0xff] }
 0x298   :  { %7852 = vrcp.f32 %v4668_v24  ;;  %vm4723_vm10 = vmor %vm4721_vm9, %vm4722_vm8  ;;  %v4817_v43 = vand.u32 2147483648, %v4668_v24  ;;  %v4815_v11 = vand.u32 2147483647, %v4668_v24  ;;  %vm4811_vm13 = vweird.f32 %v4668_v24 }
 0x299   :  { %v4718_v26 = vsub.f32 1.0, %v4717_v47  ;;  %v4453_v20 = vadd.f32 %v4452_v46, %v4439_v63 }
 0x29a   :  { %v4818_v51 = vor.u32 1.1754944e-38, %v4817_v43  ;;  %vm4816_vm15 = vcmp.eq.f32.partialorder %v4815_v11, 8.507059e+37  ;;  %v7888_v43 = vld [vmem:[#allocation2 + $0x20] sm:$0xff] }
 0x29b   :  { %v4719_v48 = vmul.f32 %v7851_v53, %v4718_v26  ;;  %v4855_v46 = vsub.f32 %v7888_v43, %v7887_v59 }
 0x29d   :  { %v4720_v56 = vadd.f32 %v7851_v53, %v4719_v48 }
 0x29e   :  { %v7853_v58 = vpop.eup %7852  ;;  %v4466_v35 = vpop.f32.mrf.mxu2 }
 0x29f   :  { %v4724_v40 = vsel %vm4723_vm10, %v7851_v53, %v4720_v56  ;;  %v4807_v12 = vmul.f32 %v7853_v58, %v4668_v24  ;;  %vm4812_vm12 = vweird.f32 %v7853_v58  ;;  %v4440_v21 = vpop.f32.mrf.mxu0  ;;  %v4454_v44 = vpop.f32.mrf.mxu1  ;;  %v4467_v7 = vadd.f32 %v4466_v35, %v4453_v20 }
 0x2a0   :  { %v4729_v23 = vsel %vm4726_vm11, %v4728_v4, %v4724_v40  ;;  %vm4813_vm14 = vmor %vm4811_vm13, %vm4812_vm12  ;;  %v4480_v18 = vpop.f32.mrf.mxu3  ;;  %v4441_v17 = vadd.f32 %v4440_v21, %v8461_v0  ;;  %v4604_v21 = vperm.slane %v8415_v49, 5  ;;  %v7889_v0 = vld [vmem:[#allocation5 + $0x50] sm:$0xff] }
 0x2a1   :  { %v4866_v28 = vmul.f32 %v4854_v16, %v4729_v23  ;;  %v4808_v6 = vsub.f32 1.0, %v4807_v12  ;;  %v4481_v15 = vadd.f32 %v4480_v18, %v4467_v7 }
 0x2a2   :  { %v4455_v61 = vadd.f32 %v4454_v44, %v4441_v17  ;;  %v7890_v17 = vld [vmem:[#allocation2 + $0x50] sm:$0xff] }
 0x2a3   :  { %v4878_v22 = vadd.f32 %v7883_v57, %v4866_v28  ;;  %v4809_v32 = vmul.f32 %v7853_v58, %v4808_v6 }
 0x2a5   :  { %4890 = vst [vmem:[#allocation11 + $0x18] sm:$0xff] %v4878_v22  ;;  %v4810_v13 = vadd.f32 %v7853_v58, %v4809_v32 }
 0x2a6   :  { %v4468_v9 = vpop.f32.mrf.mxu2 }
 0x2a7   :  { %v4814_v10 = vsel %vm4813_vm14, %v7853_v58, %v4810_v13  ;;  %v4469_v33 = vadd.f32 %v4468_v9, %v4455_v61 }
 0x2a8   :  { %v4819_v25 = vsel %vm4816_vm15, %v4818_v51, %v4814_v10  ;;  %v4482_v38 = vpop.f32.mrf.mxu3 }
 0x2a9   :  { %v4872_v3 = vmul.f32 %v4860_v36, %v4819_v25  ;;  %v4483_v54 = vadd.f32 %v4482_v38, %v4469_v33 }
 0x2ab   :  { %v4884_v34 = vadd.f32 %v7885_v29, %v4872_v3 }
 0x2ad   :  { %4896 = vst [vmem:[#allocation11 + $0x48] sm:$0xff] %v4884_v34 }
 0x2b6   :  { %v4494_v37 = vpop.f32.mrf.mxu0 }
 0x2b7   :  { %v4495_v1 = vadd.f32 %v4494_v37, %v4481_v15  ;;  %v4508_v5 = vpop.f32.mrf.mxu1  ;;  %v4861_v15 = vsub.f32 %v7890_v17, %v7889_v0 }
 0x2b9   :  { %v4509_v60 = vadd.f32 %v4508_v5, %v4495_v1 }
 0x2bb   :  { %v4615_v52 = vadd.f32 %v4603_v30, %v4509_v60 }
 0x2bd   :  { %v7228_v50 = vmul.f32 -1.442695, %v4615_v52 }
 0x2be   :  { %v4496_v42 = vpop.f32.mrf.mxu0  ;;  %v4522_v26 = vpop.f32.mrf.mxu2 }
 0x2bf   :  { %7854 = vpow2.f32 %v7228_v50  ;;  %v4497_v55 = vadd.f32 %v4496_v42, %v4483_v54  ;;  %v4510_v27 = vpop.f32.mrf.mxu1  ;;  %v4536_v41 = vpop.f32.mrf.mxu3  ;;  %v4523_v16 = vadd.f32 %v4522_v26, %v8268_v8 }
 0x2c1   :  { %v4511_v2 = vadd.f32 %v4510_v27, %v4497_v55  ;;  %v4537_v23 = vadd.f32 %v4536_v41, %v4523_v16 }
 0x2c3   :  { %v4621_v19 = vadd.f32 %v4603_v30, %v4511_v2 }
 0x2c5   :  { %v7855_v53 = vpop.eup %7854  ;;  %v7234_v24 = vmul.f32 -1.442695, %v4621_v19 }
 0x2c6   :  { %v4663_v47 = vadd.f32 1.0, %v7855_v53  ;;  %v4524_v4 = vpop.f32.mrf.mxu2 }
 0x2c7   :  { %7856 = vpow2.f32 %v7234_v24  ;;  %v4538_v28 = vpop.f32.mrf.mxu3  ;;  %v4525_v8 = vadd.f32 %v4524_v4, %v8270_v31 }
 0x2c8   :  { %7858 = vrcp.f32 %v4663_v47  ;;  %v4742_v58 = vand.u32 2147483648, %v4663_v47  ;;  %v4740_v12 = vand.u32 2147483647, %v4663_v47  ;;  %vm4736_vm1 = vweird.f32 %v4663_v47 }
 0x2c9   :  { %v4539_v35 = vadd.f32 %v4538_v28, %v4525_v8  ;;  %v7893_v8 = vld [vmem:[#allocation5 + $0x58] sm:$0xff] }
 0x2ca   :  { %v4743_v29 = vor.u32 1.1754944e-38, %v4742_v58  ;;  %vm4741_vm3 = vcmp.eq.f32.partialorder %v4740_v12, 8.507059e+37  ;;  %v7892_v58 = vld [vmem:[#allocation2 + $0x28] sm:$0xff] }
 0x2cd   :  { %v7857_v48 = vpop.eup %7856 }
 0x2ce   :  { %v7859_v45 = vpop.eup %7858  ;;  %v4669_v57 = vadd.f32 1.0, %v7857_v48 }
 0x2cf   :  { %v4732_v14 = vmul.f32 %v7859_v45, %v4663_v47  ;;  %vm4737_vm0 = vweird.f32 %v7859_v45 }
 0x2d0   :  { %7860 = vrcp.f32 %v4669_v57  ;;  %vm4738_vm2 = vmor %vm4736_vm1, %vm4737_vm0  ;;  %v4830_v63 = vand.u32 2147483647, %v4669_v57  ;;  %v4832_v3 = vand.u32 2147483648, %v4669_v57  ;;  %vm4826_vm5 = vweird.f32 %v4669_v57 }
 0x2d1   :  { %v4733_v56 = vsub.f32 1.0, %v4732_v14 }
 0x2d2   :  { %v4833_v1 = vor.u32 1.1754944e-38, %v4832_v3  ;;  %vm4831_vm7 = vcmp.eq.f32.partialorder %v4830_v63, 8.507059e+37 }
 0x2d3   :  { %v4734_v40 = vmul.f32 %v7859_v45, %v4733_v56  ;;  %v7891_v56 = vld [vmem:[#allocation5 + $0x28] sm:$0xff] }
 0x2d4   :  { %v4856_v4 = vsub.f32 %v7892_v58, %v7891_v56 }
 0x2d5   :  { %v4735_v22 = vadd.f32 %v7859_v45, %v4734_v40 }
 0x2d6   :  { %v4550_v6 = vpop.f32.mrf.mxu0  ;;  %v7861_v11 = vpop.eup %7860 }
 0x2d7   :  { %v4551_v32 = vadd.f32 %v4550_v6, %v4537_v23  ;;  %v4564_v39 = vpop.f32.mrf.mxu1  ;;  %v4739_v36 = vsel %vm4738_vm2, %v7859_v45, %v4735_v22  ;;  %v4822_v13 = vmul.f32 %v7861_v11, %v4669_v57  ;;  %vm4827_vm4 = vweird.f32 %v7861_v11 }
 0x2d8   :  { %v4744_v51 = vsel %vm4741_vm3, %v4743_v29, %v4739_v36  ;;  %vm4828_vm6 = vmor %vm4826_vm5, %vm4827_vm4 }
 0x2d9   :  { %v4867_v10 = vmul.f32 %v4855_v46, %v4744_v51  ;;  %v4823_v25 = vsub.f32 1.0, %v4822_v13  ;;  %v4565_v62 = vadd.f32 %v4564_v39, %v4551_v32  ;;  %v7894_v39 = vld [vmem:[#allocation2 + $0x58] sm:$0xff] }
 0x2da   :  { %v4862_v36 = vsub.f32 %v7894_v39, %v7893_v8 }
 0x2db   :  { %v4879_v20 = vadd.f32 %v7887_v59, %v4867_v10  ;;  %v4824_v44 = vmul.f32 %v7861_v11, %v4823_v25 }
 0x2dd   :  { %4891 = vst [vmem:[#allocation11 + $0x20] sm:$0xff] %v4879_v20  ;;  %v4825_v9 = vadd.f32 %v7861_v11, %v4824_v44 }
 0x2de   :  { %v4578_v34 = vpop.f32.mrf.mxu2  ;;  %v4552_v31 = vpop.f32.mrf.mxu0 }
 0x2df   :  { %v4579_v18 = vadd.f32 %v4578_v34, %v4565_v62  ;;  %v4592_v7 = vpop.f32.mrf.mxu3  ;;  %v4553_v61 = vadd.f32 %v4552_v31, %v4539_v35  ;;  %v4829_v5 = vsel %vm4828_vm6, %v7861_v11, %v4825_v9  ;;  %v4566_v33 = vpop.f32.mrf.mxu1 }
 0x2e0   :  { %v4834_v49 = vsel %vm4831_vm7, %v4833_v1, %v4829_v5 }
 0x2e1   :  { %v4593_v37 = vadd.f32 %v4592_v7, %v4579_v18  ;;  %v4873_v60 = vmul.f32 %v4861_v15, %v4834_v49  ;;  %v4567_v52 = vadd.f32 %v4566_v33, %v4553_v61 }
 0x2e3   :  { %v4616_v30 = vadd.f32 %v4604_v21, %v4593_v37  ;;  %v4885_v50 = vadd.f32 %v7889_v0, %v4873_v60 }
 0x2e5   :  { %v7229_v38 = vmul.f32 -1.442695, %v4616_v30  ;;  %4897 = vst [vmem:[#allocation11 + $0x50] sm:$0xff] %v4885_v50 }
 0x2e6   :  { %v4580_v54 = vpop.f32.mrf.mxu2 }
 0x2e7   :  { %7862 = vpow2.f32 %v7229_v38  ;;  %v4581_v42 = vadd.f32 %v4580_v54, %v4567_v52  ;;  %v4594_v55 = vpop.f32.mrf.mxu3 }
 0x2e9   :  { %v4595_v27 = vadd.f32 %v4594_v55, %v4581_v42 }
 0x2eb   :  { %v4622_v2 = vadd.f32 %v4604_v21, %v4595_v27 }
 0x2ed   :  { %v7863_v19 = vpop.eup %7862  ;;  %v7235_v53 = vmul.f32 -1.442695, %v4622_v2 }
 0x2ee   :  { %v4664_v24 = vadd.f32 1.0, %v7863_v19 }
 0x2ef   :  { %7864 = vpow2.f32 %v7235_v53 }
 0x2f0   :  { %7866 = vrcp.f32 %v4664_v24  ;;  %v4757_v57 = vand.u32 2147483648, %v4664_v24  ;;  %v4755_v16 = vand.u32 2147483647, %v4664_v24  ;;  %vm4751_vm9 = vweird.f32 %v4664_v24 }
 0x2f2   :  { %v4758_v23 = vor.u32 1.1754944e-38, %v4757_v57  ;;  %vm4756_vm11 = vcmp.eq.f32.partialorder %v4755_v16, 8.507059e+37 }
 0x2f5   :  { %v7865_v47 = vpop.eup %7864 }
 0x2f6   :  { %v7867_v26 = vpop.eup %7866  ;;  %v4670_v41 = vadd.f32 1.0, %v7865_v47 }
 0x2f7   :  { %v4747_v48 = vmul.f32 %v7867_v26, %v4664_v24  ;;  %vm4752_vm8 = vweird.f32 %v7867_v26 }
 0x2f8   :  { %7868 = vrcp.f32 %v4670_v41  ;;  %vm4753_vm10 = vmor %vm4751_vm9, %vm4752_vm8  ;;  %v4847_v22 = vand.u32 2147483648, %v4670_v41  ;;  %v4845_v29 = vand.u32 2147483647, %v4670_v41  ;;  %vm4841_vm13 = vweird.f32 %v4670_v41 }
 0x2f9   :  { %v4748_v45 = vsub.f32 1.0, %v4747_v48 }
 0x2fa   :  { %v4848_v51 = vor.u32 1.1754944e-38, %v4847_v22  ;;  %vm4846_vm15 = vcmp.eq.f32.partialorder %v4845_v29, 8.507059e+37 }
 0x2fb   :  { %v4749_v14 = vmul.f32 %v7867_v26, %v4748_v45 }
 0x2fd   :  { %v4750_v40 = vadd.f32 %v7867_v26, %v4749_v14 }
 0x2fe   :  { %v7869_v12 = vpop.eup %7868 }
 0x2ff   :  { %v4754_v28 = vsel %vm4753_vm10, %v7867_v26, %v4750_v40  ;;  %v4837_v6 = vmul.f32 %v7869_v12, %v4670_v41  ;;  %vm4842_vm12 = vweird.f32 %v7869_v12 }
 0x300   :  { %v4759_v59 = vsel %vm4756_vm11, %v4758_v23, %v4754_v28  ;;  %vm4843_vm14 = vmor %vm4841_vm13, %vm4842_vm12 }
 0x301   :  { %v4868_v43 = vmul.f32 %v4856_v4, %v4759_v59  ;;  %v4838_v46 = vsub.f32 1.0, %v4837_v6 }
 0x303   :  { %v4880_v32 = vadd.f32 %v7891_v56, %v4868_v43  ;;  %v4839_v11 = vmul.f32 %v7869_v12, %v4838_v46 }
 0x305   :  { %4892 = vst [vmem:[#allocation11 + $0x28] sm:$0xff] %v4880_v32  ;;  %v4840_v13 = vadd.f32 %v7869_v12, %v4839_v11 }
 0x307   :  { %v4844_v10 = vsel %vm4843_vm14, %v7869_v12, %v4840_v13 }
 0x308   :  { %v4849_v25 = vsel %vm4846_vm15, %v4848_v51, %v4844_v10 }
 0x309   :  { %v4874_v62 = vmul.f32 %v4862_v36, %v4849_v25 }
 0x30b   :  { %v4886_v63 = vadd.f32 %v7893_v8, %v4874_v62 }
 0x30d   :  { %4898 = vst [vmem:[#allocation11 + $0x58] sm:$0xff] %v4886_v63 }
 0x30e   :  { %4911 = dma.vmem_to_hbm [thread:$0]  %s4904_s4, 1536, %s4906_s21, [#allocation4], %s8048_s23, %s8048_s23, %s8049_s24  }
 0x30f   :  { %8045 = dma.done.wait [#allocation4], 1536  }
 0x310   :  { %8046 = vsyncadd [#allocation4], 4294965760 }
 0x311   :  { %4916 = vsyncpa [#allocation3], 1 }
 0x312   :  { %4917 = vsyncpa [#allocation6], 1 }
 0x313   :  { %4918 = vsyncpa [#allocation9], 1 }
 0x314   :  { %4919 = vsyncpa [#allocation4], 1 }

</bundles_post_ra>
